<compile_context>
chip_gen: v5e
topology: v5e:2x2
jax: 0.10.0
libtpu: 0.0.40
codegen_flags: <defaults>
</compile_context>

<pallas_src>
import functools

import numpy as np

import jax
import jax.numpy as jnp
from jax.experimental import pallas as pl
from jax.experimental.pallas import tpu as pltpu

_ZPAD = 8  # sublane-aligned zero-row padding used for in-kernel row shifts


# ----------------------------------------------------------------------------
# Fused kernel: per layer -> one wide matmul, shifted/masked tap accumulation,
# (optional) exact row-subsample matmul for stride-2, shift + ReLU epilogue.
# ----------------------------------------------------------------------------
def _feature_net_kernel(*refs, meta, num_layers, num_s):
    # meta[l] = (KH, pad, stride, hin, wc, relu, s_idx)
    x_ref = refs[0]
    m_refs = refs[1:1 + num_layers]
    s_refs = refs[1 + num_layers:1 + num_layers + num_s]
    shift_ref = refs[1 + num_layers + num_s]
    o_ref = refs[-1]

    x = x_ref[...]                                          # [B*H, L0] bf16
    y = None
    for l in range(num_layers):
        kh_sz, pad, stride, hin, wc, relu, s_idx = meta[l]
        r = x.shape[0]                                      # B_TILE * hin

        # --- one wide MXU matmul: all KH taps' width-convolutions at once ---
        p = jnp.dot(x, m_refs[l][...],
                    preferred_element_type=jnp.float32)     # [r, KH*wc] f32

        # Sublane-aligned zero rows at both ends so each tap's row-shifted view
        # is a static slice of one padded slab.
        z = jnp.zeros((_ZPAD, kh_sz * wc), jnp.float32)
        ppad = jnp.concatenate([z, p, z], axis=0)           # [r+16, KH*wc]

        # Per-image output-row index (full resolution) for boundary masking.
        row = jax.lax.broadcasted_iota(jnp.int32, (r, wc), 0)
        if (hin & (hin - 1)) == 0:                          # power of two
            ho = jnp.bitwise_and(row, hin - 1)
        else:
            ho = row % hin

        acc = None
        for kh in range(kh_sz):                             # static unroll
            d = kh - pad                                    # row offset
            start = _ZPAD + d
            pk = ppad[start:start + r, kh * wc:(kh + 1) * wc]   # pk[i]=p[i+d]
            if d > 0:       # row i+d valid only while (i mod hin) < hin-d
                pk = jnp.where(ho < (hin - d), pk, 0.0)
            elif d < 0:
                pk = jnp.where(ho >= (-d), pk, 0.0)
            acc = pk if acc is None else acc + pk           # f32 VPU adds

        if stride != 1:
            # Exact 0/1 row-subsample, block-diagonal over the batch tile.
            acc = jnp.dot(s_refs[s_idx][...], acc,
                          preferred_element_type=jnp.float32)

        ycur = acc + shift_ref[l:l + 1, :wc]                # folded bias/BN
        if relu:
            ycur = jnp.maximum(ycur, 0.0)
        y = ycur                                            # stays f32
        x = ycur.astype(jnp.bfloat16)                       # next matmul LHS
    o_ref[...] = y


# ----------------------------------------------------------------------------
# Host-side construction of the fused operands.
# ----------------------------------------------------------------------------
def prepare_fused_params(params, H, W, Cin, b_tile):
    m_list, s_list, shift_rows, meta = [], [], [], []
    h, w, cin = H, W, Cin
    l0 = -(-(W * Cin) // 128) * 128                 # lane-dense first layer
    lane_in = l0
    for p in params:
        weight = np.asarray(p["w"], np.float32)     # [Cout, Cin, KH, KW]
        bias = np.asarray(p["b"], np.float32)
        bn, stride, pad = p["bn"], p["stride"], p["pad"]
        cout, cin_l, KH, KW = weight.shape
        assert cin_l == cin and pad <= _ZPAD
        hout = (h + 2 * pad - KH) // stride + 1
        wout = (w + 2 * pad - KW) // stride + 1
        wc = wout * cout

        if bn is not None:
            eps = 1e-5
            inv_std = 1.0 / np.sqrt(np.asarray(bn["running_var"], np.float32) + eps)
            scale = np.asarray(bn["gamma"], np.float32) * inv_std
            shift = (bias - np.asarray(bn["running_mean"], np.float32)) * scale \
                    + np.asarray(bn["beta"], np.float32)
        else:
            scale = np.ones((cout,), np.float32)
            shift = bias

        wt = np.transpose(weight, (2, 3, 1, 0)) * scale[None, None, None, :]

        # Fused block-Toeplitz width-conv matrix for ALL KH taps:
        #   M[wi*cin + ci, kh*wc + wo*cout + co] = scale-folded weight.
        M = np.zeros((lane_in, KH * wc), np.float32)
        for kh in range(KH):
            for wo in range(wout):
                for kw in range(KW):
                    wi = wo * stride + kw - pad
                    if 0 <= wi < w:
                        M[wi * cin:(wi + 1) * cin,
                          kh * wc + wo * cout: kh * wc + (wo + 1) * cout] = wt[kh, kw]
        m_list.append(jnp.asarray(M, jnp.bfloat16))

        s_idx = -1
        if stride != 1:
            # Per-image even-row subsample (row stride*ho), block-diag per tile.
            S = np.zeros((b_tile * hout, b_tile * h), np.float32)
            for b in range(b_tile):
                for ho in range(hout):
                    S[b * hout + ho, b * h + stride * ho] = 1.0
            s_idx = len(s_list)
            s_list.append(jnp.asarray(S, jnp.float32))

        shift_rows.append(np.tile(shift, wout).astype(np.float32))   # [wc]
        meta.append((KH, pad, stride, h, wc, bool(p["relu"]), s_idx))

        h, w, cin = hout, wout, cout
        lane_in = w * cin

    max_wc = max(int(s.shape[0]) for s in shift_rows)
    shift_all = np.zeros((len(params), max_wc), np.float32)
    for i, srow in enumerate(shift_rows):
        shift_all[i, :srow.shape[0]] = srow

    return dict(m_list=m_list, s_list=s_list, shift_all=jnp.asarray(shift_all),
                meta=tuple(meta), out_dims=(h, w, cin), l0=l0, b_tile=b_tile)


# ----------------------------------------------------------------------------
# Wrapper: single fused pallas_call, grid over batch tiles.
# ----------------------------------------------------------------------------
def feature_net_forward_fused(x_nchw, fused):
    m_list, s_list = fused["m_list"], fused["s_list"]
    shift_all, meta = fused["shift_all"], fused["meta"]
    Hf, Wf, Cf = fused["out_dims"]
    l0, b_tile = fused["l0"], fused["b_tile"]
    num_layers, num_s = len(meta), len(s_list)

    N, Cin, H, W = x_nchw.shape
    n_pad = (-N) % b_tile
    if n_pad:
        x_nchw = jnp.concatenate(
            [x_nchw, jnp.zeros((n_pad, Cin, H, W), x_nchw.dtype)], axis=0)
    nt = N + n_pad

    # NCHW -> stacked [nt*H, W*Cin] (lane = (w, c)), zero-padded to l0 lanes.
    x2d = jnp.transpose(x_nchw.astype(jnp.float32), (0, 2, 3, 1)) \
             .reshape(nt, H, W * Cin)
    if l0 > W * Cin:
        x2d = jnp.pad(x2d, ((0, 0), (0, 0), (0, l0 - W * Cin)))
    x2d = x2d.reshape(nt * H, l0).astype(jnp.bfloat16)

    kernel = functools.partial(_feature_net_kernel, meta=meta,
                               num_layers=num_layers, num_s=num_s)

    in_specs = [pl.BlockSpec((b_tile * H, l0), lambda n: (n, 0))]
    for op in list(m_list) + list(s_list) + [shift_all]:
        in_specs.append(pl.BlockSpec(op.shape, lambda n: (0, 0)))
    out_specs = pl.BlockSpec((b_tile * Hf, Wf * Cf), lambda n: (n, 0))
    grid = (nt // b_tile,)

    # Advisory cost estimate for XLA scheduling.
    flops = 0
    for l, m in enumerate(m_list):
        hin, wc = meta[l][3], meta[l][4]
        flops += 2 * (b_tile * hin) * int(m.shape[0]) * int(m.shape[1])
        if meta[l][2] != 1:
            s = s_list[meta[l][6]]
            flops += 2 * int(s.shape[0]) * int(s.shape[1]) * wc
    flops *= grid[0]
    bytes_accessed = (x2d.size * x2d.dtype.itemsize
                      + sum(int(o.size) * o.dtype.itemsize
                            for o in list(m_list) + list(s_list) + [shift_all])
                      + nt * Hf * Wf * Cf * 4)

    out2d = pl.pallas_call(
        kernel,
        out_shape=jax.ShapeDtypeStruct((nt * Hf, Wf * Cf), jnp.float32),
        grid=grid,
        in_specs=in_specs,
        out_specs=out_specs,
        compiler_params=pltpu.CompilerParams(
            dimension_semantics=("parallel",),
            vmem_limit_bytes=32 * 1024 * 1024),
        cost_estimate=pl.CostEstimate(flops=int(flops), transcendentals=0,
                                      bytes_accessed=int(bytes_accessed)),
    )(x2d, *m_list, *s_list, shift_all)

    out = out2d.reshape(nt, Hf, Wf, Cf)[:N]
    return jnp.transpose(out, (0, 3, 1, 2))                 # back to NCHW


# ----------------------------------------------------------------------------
# Deterministic synthetic parameters (matches FeatureNet.__init__ shapes).
# ----------------------------------------------------------------------------
_LAYER_CFG = [
    # (cin, cout, k, stride, pad, has_bn, relu)
    (3, 8, 3, 1, 1, True, True),
    (8, 8, 3, 1, 1, True, True),
    (8, 16, 5, 2, 2, True, True),
    (16, 16, 3, 1, 1, True, True),
    (16, 16, 3, 1, 1, True, True),
    (16, 32, 5, 2, 2, True, True),
    (32, 32, 3, 1, 1, True, True),
    (32, 32, 3, 1, 1, True, True),
    (32, 32, 3, 1, 1, False, False),   # conv9: no BN, no ReLU
]


def make_params(key):
    params = []
    for (cin, cout, k, stride, pad, has_bn, relu) in _LAYER_CFG:
        key, kw_, kb_, kg_, kbe_, km_, kv_ = jax.random.split(key, 7)
        w = 0.1 * jax.random.normal(kw_, (cout, cin, k, k), jnp.float32)
        b = 0.05 * jax.random.normal(kb_, (cout,), jnp.float32)
        bn = None
        if has_bn:
            bn = {
                "gamma": 1.0 + 0.1 * jax.random.normal(kg_, (cout,), jnp.float32),
                "beta": 0.05 * jax.random.normal(kbe_, (cout,), jnp.float32),
                "running_mean": 0.1 * jax.random.normal(km_, (cout,), jnp.float32),
                "running_var": 1.0 + 0.1 * jax.random.uniform(kv_, (cout,), jnp.float32),
            }
        params.append({"w": w, "b": b, "bn": bn, "stride": stride, "pad": pad,
                       "relu": relu})
    return params


# ----------------------------------------------------------------------------
# Pure-JAX f32 reference (eval-mode BN).
# ----------------------------------------------------------------------------
def reference_forward(x_nchw, params):
    y = x_nchw.astype(jnp.float32)
    for p in params:
        y = jax.lax.conv_general_dilated(
            y, p["w"], window_strides=(p["stride"], p["stride"]),
            padding=((p["pad"], p["pad"]), (p["pad"], p["pad"])),
            dimension_numbers=("NCHW", "OIHW", "NCHW"))
        y = y + p["b"][None, :, None, None]
        bn = p["bn"]
        if bn is not None:
            inv = 1.0 / jnp.sqrt(bn["running_var"] + 1e-5)
            y = (y - bn["running_mean"][None, :, None, None]) \
                * (bn["gamma"] * inv)[None, :, None, None] \
                + bn["beta"][None, :, None, None]
        if p["relu"]:
            y = jnp.maximum(y, 0.0)
    return y


if __name__ == "__main__":
    key = jax.random.PRNGKey(0)
    key, kx = jax.random.split(key)

    # Small shapes: batch=16 (two grid steps of B_TILE=8), 3 channels, 16x16.
    N, C, H, W = 16, 3, 16, 16
    x = jax.random.normal(kx, (N, C, H, W), jnp.float32)
    params = make_params(key)

    fused = prepare_fused_params(params, H=H, W=W, Cin=C, b_tile=8)

    fwd = jax.jit(lambda xx: feature_net_forward_fused(xx, fused))
    out = jax.block_until_ready(fwd(x))

    assert out.shape == (N, 32, 4, 4), out.shape       # 16 -> 8 (conv3) -> 4 (conv6)
    assert out.dtype == jnp.float32
    assert bool(jnp.all(jnp.isfinite(out)))

    # Sanity check vs f32 XLA reference (bf16 matmul operands -> loose tol).
    ref = jax.block_until_ready(reference_forward(x, params))
    max_err = float(jnp.max(jnp.abs(out - ref)))
    max_ref = float(jnp.max(jnp.abs(ref)))
    assert max_err <= 0.1 * max_ref + 1e-2, (max_err, max_ref)

    print("KERNEL_OK")
</pallas_src>

<mosaic_0001>
module attributes {stable_mosaic.version = 11 : i64} {
  func.func @_feature_net_kernel(%arg0: i32, %arg1: memref<128x128xbf16, #tpu.memory_space<vmem>>, %arg2: memref<128x384xbf16, #tpu.memory_space<vmem>>, %arg3: memref<128x384xbf16, #tpu.memory_space<vmem>>, %arg4: memref<128x640xbf16, #tpu.memory_space<vmem>>, %arg5: memref<128x384xbf16, #tpu.memory_space<vmem>>, %arg6: memref<128x384xbf16, #tpu.memory_space<vmem>>, %arg7: memref<128x640xbf16, #tpu.memory_space<vmem>>, %arg8: memref<128x384xbf16, #tpu.memory_space<vmem>>, %arg9: memref<128x384xbf16, #tpu.memory_space<vmem>>, %arg10: memref<128x384xbf16, #tpu.memory_space<vmem>>, %arg11: memref<64x128xf32, #tpu.memory_space<vmem>>, %arg12: memref<32x64xf32, #tpu.memory_space<vmem>>, %arg13: memref<9x128xf32, #tpu.memory_space<vmem>>, %arg14: memref<32x128xf32, #tpu.memory_space<vmem>>) attributes {dimension_semantics = [#tpu.dimension_semantics<parallel>], iteration_bounds = array<i64: 2>, scalar_prefetch = 0 : i64, scratch_operands = 0 : i64, tpu.core_type = #tpu.core_type<tc>, window_params = [{transform_indices = @transform_0, window_bounds = array<i64: 128, 128>}, {pipeline_mode = #tpu.pipeline_mode<synchronous>, transform_indices = @transform_1, window_bounds = array<i64: 128, 384>}, {pipeline_mode = #tpu.pipeline_mode<synchronous>, transform_indices = @transform_2, window_bounds = array<i64: 128, 384>}, {pipeline_mode = #tpu.pipeline_mode<synchronous>, transform_indices = @transform_3, window_bounds = array<i64: 128, 640>}, {pipeline_mode = #tpu.pipeline_mode<synchronous>, transform_indices = @transform_4, window_bounds = array<i64: 128, 384>}, {pipeline_mode = #tpu.pipeline_mode<synchronous>, transform_indices = @transform_5, window_bounds = array<i64: 128, 384>}, {pipeline_mode = #tpu.pipeline_mode<synchronous>, transform_indices = @transform_6, window_bounds = array<i64: 128, 640>}, {pipeline_mode = #tpu.pipeline_mode<synchronous>, transform_indices = @transform_7, window_bounds = array<i64: 128, 384>}, {pipeline_mode = #tpu.pipeline_mode<synchronous>, transform_indices = @transform_8, window_bounds = array<i64: 128, 384>}, {pipeline_mode = #tpu.pipeline_mode<synchronous>, transform_indices = @transform_9, window_bounds = array<i64: 128, 384>}, {pipeline_mode = #tpu.pipeline_mode<synchronous>, transform_indices = @transform_10, window_bounds = array<i64: 64, 128>}, {pipeline_mode = #tpu.pipeline_mode<synchronous>, transform_indices = @transform_11, window_bounds = array<i64: 32, 64>}, {pipeline_mode = #tpu.pipeline_mode<synchronous>, transform_indices = @transform_12, window_bounds = array<i64: 9, 128>}, {transform_indices = @transform_13, window_bounds = array<i64: 32, 128>}]} {
    %c0 = arith.constant 0 : index
    %c0_0 = arith.constant 0 : index
    %0 = vector.load %arg1[%c0, %c0_0] : memref<128x128xbf16, #tpu.memory_space<vmem>>, vector<128x128xbf16>
    %c0_1 = arith.constant 0 : index
    %c0_2 = arith.constant 0 : index
    %1 = vector.load %arg2[%c0_1, %c0_2] : memref<128x384xbf16, #tpu.memory_space<vmem>>, vector<128x384xbf16>
    %cst = arith.constant dense<0.000000e+00> : vector<128x384xf32>
    %2 = tpu.matmul %0, %1, %cst {dimension_numbers = #tpu.dot_dimension_numbers<[1], [0], [0], [1], [0, 0, 1, 1], [], []>} : vector<128x128xbf16>, vector<128x384xbf16>, vector<128x384xf32> -> vector<128x384xf32>
    %cst_3 = arith.constant 0.000000e+00 : f32
    %3 = vector.broadcast %cst_3 : f32 to vector<8x384xf32>
    %4 = tpu.concatenate %3, %2, %3 in 0 : vector<8x384xf32>, vector<128x384xf32>, vector<8x384xf32> -> vector<144x384xf32>
    %5 = tpu.iota {dimensions = array<i32: 0>} : vector<128x128xi32>
    %c15_i32 = arith.constant 15 : i32
    %6 = vector.broadcast %c15_i32 : i32 to vector<128x128xi32>
    %7 = arith.andi %5, %6 : vector<128x128xi32>
    %8 = vector.extract_strided_slice %4 {offsets = [7, 0], sizes = [128, 128], strides = [1, 1]} : vector<144x384xf32> to vector<128x128xf32>
    %c1_i32 = arith.constant 1 : i32
    %9 = vector.broadcast %c1_i32 : i32 to vector<128x128xi32>
    %10 = arith.cmpi sge, %7, %9 : vector<128x128xi32>
    %cst_4 = arith.constant 0.000000e+00 : f32
    %11 = vector.broadcast %cst_4 : f32 to vector<128x128xf32>
    %12 = arith.select %10, %8, %11 : vector<128x128xi1>, vector<128x128xf32>
    %13 = vector.extract_strided_slice %4 {offsets = [8, 128], sizes = [128, 128], strides = [1, 1]} : vector<144x384xf32> to vector<128x128xf32>
    %14 = arith.addf %12, %13 : vector<128x128xf32>
    %15 = vector.extract_strided_slice %4 {offsets = [9, 256], sizes = [128, 128], strides = [1, 1]} : vector<144x384xf32> to vector<128x128xf32>
    %c15_i32_5 = arith.constant 15 : i32
    %16 = vector.broadcast %c15_i32_5 : i32 to vector<128x128xi32>
    %17 = arith.cmpi slt, %7, %16 : vector<128x128xi32>
    %cst_6 = arith.constant 0.000000e+00 : f32
    %18 = vector.broadcast %cst_6 : f32 to vector<128x128xf32>
    %19 = arith.select %17, %15, %18 : vector<128x128xi1>, vector<128x128xf32>
    %20 = arith.addf %14, %19 : vector<128x128xf32>
    %c0_7 = arith.constant 0 : index
    %c0_8 = arith.constant 0 : index
    %21 = vector.load %arg13[%c0_7, %c0_8] : memref<9x128xf32, #tpu.memory_space<vmem>>, vector<1x128xf32>
    %22 = vector.broadcast %21 : vector<1x128xf32> to vector<128x128xf32>
    %23 = arith.addf %20, %22 : vector<128x128xf32>
    %cst_9 = arith.constant 0.000000e+00 : f32
    %24 = vector.broadcast %cst_9 : f32 to vector<128x128xf32>
    %25 = arith.maximumf %23, %24 : vector<128x128xf32>
    %26 = arith.truncf %25 : vector<128x128xf32> to vector<128x128xbf16>
    %c0_10 = arith.constant 0 : index
    %c0_11 = arith.constant 0 : index
    %27 = vector.load %arg3[%c0_10, %c0_11] : memref<128x384xbf16, #tpu.memory_space<vmem>>, vector<128x384xbf16>
    %cst_12 = arith.constant dense<0.000000e+00> : vector<128x384xf32>
    %28 = tpu.matmul %26, %27, %cst_12 {dimension_numbers = #tpu.dot_dimension_numbers<[1], [0], [0], [1], [0, 0, 1, 1], [], []>} : vector<128x128xbf16>, vector<128x384xbf16>, vector<128x384xf32> -> vector<128x384xf32>
    %cst_13 = arith.constant 0.000000e+00 : f32
    %29 = vector.broadcast %cst_13 : f32 to vector<8x384xf32>
    %30 = tpu.concatenate %29, %28, %29 in 0 : vector<8x384xf32>, vector<128x384xf32>, vector<8x384xf32> -> vector<144x384xf32>
    %31 = tpu.iota {dimensions = array<i32: 0>} : vector<128x128xi32>
    %c15_i32_14 = arith.constant 15 : i32
    %32 = vector.broadcast %c15_i32_14 : i32 to vector<128x128xi32>
    %33 = arith.andi %31, %32 : vector<128x128xi32>
    %34 = vector.extract_strided_slice %30 {offsets = [7, 0], sizes = [128, 128], strides = [1, 1]} : vector<144x384xf32> to vector<128x128xf32>
    %c1_i32_15 = arith.constant 1 : i32
    %35 = vector.broadcast %c1_i32_15 : i32 to vector<128x128xi32>
    %36 = arith.cmpi sge, %33, %35 : vector<128x128xi32>
    %cst_16 = arith.constant 0.000000e+00 : f32
    %37 = vector.broadcast %cst_16 : f32 to vector<128x128xf32>
    %38 = arith.select %36, %34, %37 : vector<128x128xi1>, vector<128x128xf32>
    %39 = vector.extract_strided_slice %30 {offsets = [8, 128], sizes = [128, 128], strides = [1, 1]} : vector<144x384xf32> to vector<128x128xf32>
    %40 = arith.addf %38, %39 : vector<128x128xf32>
    %41 = vector.extract_strided_slice %30 {offsets = [9, 256], sizes = [128, 128], strides = [1, 1]} : vector<144x384xf32> to vector<128x128xf32>
    %c15_i32_17 = arith.constant 15 : i32
    %42 = vector.broadcast %c15_i32_17 : i32 to vector<128x128xi32>
    %43 = arith.cmpi slt, %33, %42 : vector<128x128xi32>
    %cst_18 = arith.constant 0.000000e+00 : f32
    %44 = vector.broadcast %cst_18 : f32 to vector<128x128xf32>
    %45 = arith.select %43, %41, %44 : vector<128x128xi1>, vector<128x128xf32>
    %46 = arith.addf %40, %45 : vector<128x128xf32>
    %c1 = arith.constant 1 : index
    %c0_19 = arith.constant 0 : index
    %47 = vector.load %arg13[%c1, %c0_19] : memref<9x128xf32, #tpu.memory_space<vmem>>, vector<1x128xf32>
    %48 = vector.broadcast %47 : vector<1x128xf32> to vector<128x128xf32>
    %49 = arith.addf %46, %48 : vector<128x128xf32>
    %cst_20 = arith.constant 0.000000e+00 : f32
    %50 = vector.broadcast %cst_20 : f32 to vector<128x128xf32>
    %51 = arith.maximumf %49, %50 : vector<128x128xf32>
    %52 = arith.truncf %51 : vector<128x128xf32> to vector<128x128xbf16>
    %c0_21 = arith.constant 0 : index
    %c0_22 = arith.constant 0 : index
    %53 = vector.load %arg4[%c0_21, %c0_22] : memref<128x640xbf16, #tpu.memory_space<vmem>>, vector<128x640xbf16>
    %cst_23 = arith.constant dense<0.000000e+00> : vector<128x640xf32>
    %54 = tpu.matmul %52, %53, %cst_23 {dimension_numbers = #tpu.dot_dimension_numbers<[1], [0], [0], [1], [0, 0, 1, 1], [], []>} : vector<128x128xbf16>, vector<128x640xbf16>, vector<128x640xf32> -> vector<128x640xf32>
    %cst_24 = arith.constant 0.000000e+00 : f32
    %55 = vector.broadcast %cst_24 : f32 to vector<8x640xf32>
    %56 = tpu.concatenate %55, %54, %55 in 0 : vector<8x640xf32>, vector<128x640xf32>, vector<8x640xf32> -> vector<144x640xf32>
    %57 = tpu.iota {dimensions = array<i32: 0>} : vector<128x128xi32>
    %c15_i32_25 = arith.constant 15 : i32
    %58 = vector.broadcast %c15_i32_25 : i32 to vector<128x128xi32>
    %59 = arith.andi %57, %58 : vector<128x128xi32>
    %60 = vector.extract_strided_slice %56 {offsets = [6, 0], sizes = [128, 128], strides = [1, 1]} : vector<144x640xf32> to vector<128x128xf32>
    %c2_i32 = arith.constant 2 : i32
    %61 = vector.broadcast %c2_i32 : i32 to vector<128x128xi32>
    %62 = arith.cmpi sge, %59, %61 : vector<128x128xi32>
    %cst_26 = arith.constant 0.000000e+00 : f32
    %63 = vector.broadcast %cst_26 : f32 to vector<128x128xf32>
    %64 = arith.select %62, %60, %63 : vector<128x128xi1>, vector<128x128xf32>
    %65 = vector.extract_strided_slice %56 {offsets = [7, 128], sizes = [128, 128], strides = [1, 1]} : vector<144x640xf32> to vector<128x128xf32>
    %c1_i32_27 = arith.constant 1 : i32
    %66 = vector.broadcast %c1_i32_27 : i32 to vector<128x128xi32>
    %67 = arith.cmpi sge, %59, %66 : vector<128x128xi32>
    %cst_28 = arith.constant 0.000000e+00 : f32
    %68 = vector.broadcast %cst_28 : f32 to vector<128x128xf32>
    %69 = arith.select %67, %65, %68 : vector<128x128xi1>, vector<128x128xf32>
    %70 = arith.addf %64, %69 : vector<128x128xf32>
    %71 = vector.extract_strided_slice %56 {offsets = [8, 256], sizes = [128, 128], strides = [1, 1]} : vector<144x640xf32> to vector<128x128xf32>
    %72 = arith.addf %70, %71 : vector<128x128xf32>
    %73 = vector.extract_strided_slice %56 {offsets = [9, 384], sizes = [128, 128], strides = [1, 1]} : vector<144x640xf32> to vector<128x128xf32>
    %c15_i32_29 = arith.constant 15 : i32
    %74 = vector.broadcast %c15_i32_29 : i32 to vector<128x128xi32>
    %75 = arith.cmpi slt, %59, %74 : vector<128x128xi32>
    %cst_30 = arith.constant 0.000000e+00 : f32
    %76 = vector.broadcast %cst_30 : f32 to vector<128x128xf32>
    %77 = arith.select %75, %73, %76 : vector<128x128xi1>, vector<128x128xf32>
    %78 = arith.addf %72, %77 : vector<128x128xf32>
    %79 = vector.extract_strided_slice %56 {offsets = [10, 512], sizes = [128, 128], strides = [1, 1]} : vector<144x640xf32> to vector<128x128xf32>
    %c14_i32 = arith.constant 14 : i32
    %80 = vector.broadcast %c14_i32 : i32 to vector<128x128xi32>
    %81 = arith.cmpi slt, %59, %80 : vector<128x128xi32>
    %cst_31 = arith.constant 0.000000e+00 : f32
    %82 = vector.broadcast %cst_31 : f32 to vector<128x128xf32>
    %83 = arith.select %81, %79, %82 : vector<128x128xi1>, vector<128x128xf32>
    %84 = arith.addf %78, %83 : vector<128x128xf32>
    %c0_32 = arith.constant 0 : index
    %c0_33 = arith.constant 0 : index
    %85 = vector.load %arg11[%c0_32, %c0_33] : memref<64x128xf32, #tpu.memory_space<vmem>>, vector<64x128xf32>
    %cst_34 = arith.constant dense<0.000000e+00> : vector<64x128xf32>
    %86 = tpu.matmul %85, %84, %cst_34 {dimension_numbers = #tpu.dot_dimension_numbers<[1], [0], [0], [1], [0, 0, 1, 1], [], []>} : vector<64x128xf32>, vector<128x128xf32>, vector<64x128xf32> -> vector<64x128xf32>
    %c2 = arith.constant 2 : index
    %c0_35 = arith.constant 0 : index
    %87 = vector.load %arg13[%c2, %c0_35] : memref<9x128xf32, #tpu.memory_space<vmem>>, vector<1x128xf32>
    %88 = vector.broadcast %87 : vector<1x128xf32> to vector<64x128xf32>
    %89 = arith.addf %86, %88 : vector<64x128xf32>
    %cst_36 = arith.constant 0.000000e+00 : f32
    %90 = vector.broadcast %cst_36 : f32 to vector<64x128xf32>
    %91 = arith.maximumf %89, %90 : vector<64x128xf32>
    %92 = arith.truncf %91 : vector<64x128xf32> to vector<64x128xbf16>
    %c0_37 = arith.constant 0 : index
    %c0_38 = arith.constant 0 : index
    %93 = vector.load %arg5[%c0_37, %c0_38] : memref<128x384xbf16, #tpu.memory_space<vmem>>, vector<128x384xbf16>
    %cst_39 = arith.constant dense<0.000000e+00> : vector<64x384xf32>
    %94 = tpu.matmul %92, %93, %cst_39 {dimension_numbers = #tpu.dot_dimension_numbers<[1], [0], [0], [1], [0, 0, 1, 1], [], []>} : vector<64x128xbf16>, vector<128x384xbf16>, vector<64x384xf32> -> vector<64x384xf32>
    %cst_40 = arith.constant 0.000000e+00 : f32
    %95 = vector.broadcast %cst_40 : f32 to vector<8x384xf32>
    %96 = tpu.concatenate %95, %94, %95 in 0 : vector<8x384xf32>, vector<64x384xf32>, vector<8x384xf32> -> vector<80x384xf32>
    %97 = tpu.iota {dimensions = array<i32: 0>} : vector<64x128xi32>
    %c7_i32 = arith.constant 7 : i32
    %98 = vector.broadcast %c7_i32 : i32 to vector<64x128xi32>
    %99 = arith.andi %97, %98 : vector<64x128xi32>
    %100 = vector.extract_strided_slice %96 {offsets = [7, 0], sizes = [64, 128], strides = [1, 1]} : vector<80x384xf32> to vector<64x128xf32>
    %c1_i32_41 = arith.constant 1 : i32
    %101 = vector.broadcast %c1_i32_41 : i32 to vector<64x128xi32>
    %102 = arith.cmpi sge, %99, %101 : vector<64x128xi32>
    %cst_42 = arith.constant 0.000000e+00 : f32
    %103 = vector.broadcast %cst_42 : f32 to vector<64x128xf32>
    %104 = arith.select %102, %100, %103 : vector<64x128xi1>, vector<64x128xf32>
    %105 = vector.extract_strided_slice %96 {offsets = [8, 128], sizes = [64, 128], strides = [1, 1]} : vector<80x384xf32> to vector<64x128xf32>
    %106 = arith.addf %104, %105 : vector<64x128xf32>
    %107 = vector.extract_strided_slice %96 {offsets = [9, 256], sizes = [64, 128], strides = [1, 1]} : vector<80x384xf32> to vector<64x128xf32>
    %c7_i32_43 = arith.constant 7 : i32
    %108 = vector.broadcast %c7_i32_43 : i32 to vector<64x128xi32>
    %109 = arith.cmpi slt, %99, %108 : vector<64x128xi32>
    %cst_44 = arith.constant 0.000000e+00 : f32
    %110 = vector.broadcast %cst_44 : f32 to vector<64x128xf32>
    %111 = arith.select %109, %107, %110 : vector<64x128xi1>, vector<64x128xf32>
    %112 = arith.addf %106, %111 : vector<64x128xf32>
    %c3 = arith.constant 3 : index
    %c0_45 = arith.constant 0 : index
    %113 = vector.load %arg13[%c3, %c0_45] : memref<9x128xf32, #tpu.memory_space<vmem>>, vector<1x128xf32>
    %114 = vector.broadcast %113 : vector<1x128xf32> to vector<64x128xf32>
    %115 = arith.addf %112, %114 : vector<64x128xf32>
    %cst_46 = arith.constant 0.000000e+00 : f32
    %116 = vector.broadcast %cst_46 : f32 to vector<64x128xf32>
    %117 = arith.maximumf %115, %116 : vector<64x128xf32>
    %118 = arith.truncf %117 : vector<64x128xf32> to vector<64x128xbf16>
    %c0_47 = arith.constant 0 : index
    %c0_48 = arith.constant 0 : index
    %119 = vector.load %arg6[%c0_47, %c0_48] : memref<128x384xbf16, #tpu.memory_space<vmem>>, vector<128x384xbf16>
    %cst_49 = arith.constant dense<0.000000e+00> : vector<64x384xf32>
    %120 = tpu.matmul %118, %119, %cst_49 {dimension_numbers = #tpu.dot_dimension_numbers<[1], [0], [0], [1], [0, 0, 1, 1], [], []>} : vector<64x128xbf16>, vector<128x384xbf16>, vector<64x384xf32> -> vector<64x384xf32>
    %cst_50 = arith.constant 0.000000e+00 : f32
    %121 = vector.broadcast %cst_50 : f32 to vector<8x384xf32>
    %122 = tpu.concatenate %121, %120, %121 in 0 : vector<8x384xf32>, vector<64x384xf32>, vector<8x384xf32> -> vector<80x384xf32>
    %123 = tpu.iota {dimensions = array<i32: 0>} : vector<64x128xi32>
    %c7_i32_51 = arith.constant 7 : i32
    %124 = vector.broadcast %c7_i32_51 : i32 to vector<64x128xi32>
    %125 = arith.andi %123, %124 : vector<64x128xi32>
    %126 = vector.extract_strided_slice %122 {offsets = [7, 0], sizes = [64, 128], strides = [1, 1]} : vector<80x384xf32> to vector<64x128xf32>
    %c1_i32_52 = arith.constant 1 : i32
    %127 = vector.broadcast %c1_i32_52 : i32 to vector<64x128xi32>
    %128 = arith.cmpi sge, %125, %127 : vector<64x128xi32>
    %cst_53 = arith.constant 0.000000e+00 : f32
    %129 = vector.broadcast %cst_53 : f32 to vector<64x128xf32>
    %130 = arith.select %128, %126, %129 : vector<64x128xi1>, vector<64x128xf32>
    %131 = vector.extract_strided_slice %122 {offsets = [8, 128], sizes = [64, 128], strides = [1, 1]} : vector<80x384xf32> to vector<64x128xf32>
    %132 = arith.addf %130, %131 : vector<64x128xf32>
    %133 = vector.extract_strided_slice %122 {offsets = [9, 256], sizes = [64, 128], strides = [1, 1]} : vector<80x384xf32> to vector<64x128xf32>
    %c7_i32_54 = arith.constant 7 : i32
    %134 = vector.broadcast %c7_i32_54 : i32 to vector<64x128xi32>
    %135 = arith.cmpi slt, %125, %134 : vector<64x128xi32>
    %cst_55 = arith.constant 0.000000e+00 : f32
    %136 = vector.broadcast %cst_55 : f32 to vector<64x128xf32>
    %137 = arith.select %135, %133, %136 : vector<64x128xi1>, vector<64x128xf32>
    %138 = arith.addf %132, %137 : vector<64x128xf32>
    %c4 = arith.constant 4 : index
    %c0_56 = arith.constant 0 : index
    %139 = vector.load %arg13[%c4, %c0_56] : memref<9x128xf32, #tpu.memory_space<vmem>>, vector<1x128xf32>
    %140 = vector.broadcast %139 : vector<1x128xf32> to vector<64x128xf32>
    %141 = arith.addf %138, %140 : vector<64x128xf32>
    %cst_57 = arith.constant 0.000000e+00 : f32
    %142 = vector.broadcast %cst_57 : f32 to vector<64x128xf32>
    %143 = arith.maximumf %141, %142 : vector<64x128xf32>
    %144 = arith.truncf %143 : vector<64x128xf32> to vector<64x128xbf16>
    %c0_58 = arith.constant 0 : index
    %c0_59 = arith.constant 0 : index
    %145 = vector.load %arg7[%c0_58, %c0_59] : memref<128x640xbf16, #tpu.memory_space<vmem>>, vector<128x640xbf16>
    %cst_60 = arith.constant dense<0.000000e+00> : vector<64x640xf32>
    %146 = tpu.matmul %144, %145, %cst_60 {dimension_numbers = #tpu.dot_dimension_numbers<[1], [0], [0], [1], [0, 0, 1, 1], [], []>} : vector<64x128xbf16>, vector<128x640xbf16>, vector<64x640xf32> -> vector<64x640xf32>
    %cst_61 = arith.constant 0.000000e+00 : f32
    %147 = vector.broadcast %cst_61 : f32 to vector<8x640xf32>
    %148 = tpu.concatenate %147, %146, %147 in 0 : vector<8x640xf32>, vector<64x640xf32>, vector<8x640xf32> -> vector<80x640xf32>
    %149 = tpu.iota {dimensions = array<i32: 0>} : vector<64x128xi32>
    %c7_i32_62 = arith.constant 7 : i32
    %150 = vector.broadcast %c7_i32_62 : i32 to vector<64x128xi32>
    %151 = arith.andi %149, %150 : vector<64x128xi32>
    %152 = vector.extract_strided_slice %148 {offsets = [6, 0], sizes = [64, 128], strides = [1, 1]} : vector<80x640xf32> to vector<64x128xf32>
    %c2_i32_63 = arith.constant 2 : i32
    %153 = vector.broadcast %c2_i32_63 : i32 to vector<64x128xi32>
    %154 = arith.cmpi sge, %151, %153 : vector<64x128xi32>
    %cst_64 = arith.constant 0.000000e+00 : f32
    %155 = vector.broadcast %cst_64 : f32 to vector<64x128xf32>
    %156 = arith.select %154, %152, %155 : vector<64x128xi1>, vector<64x128xf32>
    %157 = vector.extract_strided_slice %148 {offsets = [7, 128], sizes = [64, 128], strides = [1, 1]} : vector<80x640xf32> to vector<64x128xf32>
    %c1_i32_65 = arith.constant 1 : i32
    %158 = vector.broadcast %c1_i32_65 : i32 to vector<64x128xi32>
    %159 = arith.cmpi sge, %151, %158 : vector<64x128xi32>
    %cst_66 = arith.constant 0.000000e+00 : f32
    %160 = vector.broadcast %cst_66 : f32 to vector<64x128xf32>
    %161 = arith.select %159, %157, %160 : vector<64x128xi1>, vector<64x128xf32>
    %162 = arith.addf %156, %161 : vector<64x128xf32>
    %163 = vector.extract_strided_slice %148 {offsets = [8, 256], sizes = [64, 128], strides = [1, 1]} : vector<80x640xf32> to vector<64x128xf32>
    %164 = arith.addf %162, %163 : vector<64x128xf32>
    %165 = vector.extract_strided_slice %148 {offsets = [9, 384], sizes = [64, 128], strides = [1, 1]} : vector<80x640xf32> to vector<64x128xf32>
    %c7_i32_67 = arith.constant 7 : i32
    %166 = vector.broadcast %c7_i32_67 : i32 to vector<64x128xi32>
    %167 = arith.cmpi slt, %151, %166 : vector<64x128xi32>
    %cst_68 = arith.constant 0.000000e+00 : f32
    %168 = vector.broadcast %cst_68 : f32 to vector<64x128xf32>
    %169 = arith.select %167, %165, %168 : vector<64x128xi1>, vector<64x128xf32>
    %170 = arith.addf %164, %169 : vector<64x128xf32>
    %171 = vector.extract_strided_slice %148 {offsets = [10, 512], sizes = [64, 128], strides = [1, 1]} : vector<80x640xf32> to vector<64x128xf32>
    %c6_i32 = arith.constant 6 : i32
    %172 = vector.broadcast %c6_i32 : i32 to vector<64x128xi32>
    %173 = arith.cmpi slt, %151, %172 : vector<64x128xi32>
    %cst_69 = arith.constant 0.000000e+00 : f32
    %174 = vector.broadcast %cst_69 : f32 to vector<64x128xf32>
    %175 = arith.select %173, %171, %174 : vector<64x128xi1>, vector<64x128xf32>
    %176 = arith.addf %170, %175 : vector<64x128xf32>
    %c0_70 = arith.constant 0 : index
    %c0_71 = arith.constant 0 : index
    %177 = vector.load %arg12[%c0_70, %c0_71] : memref<32x64xf32, #tpu.memory_space<vmem>>, vector<32x64xf32>
    %cst_72 = arith.constant dense<0.000000e+00> : vector<32x128xf32>
    %178 = tpu.matmul %177, %176, %cst_72 {dimension_numbers = #tpu.dot_dimension_numbers<[1], [0], [0], [1], [0, 0, 1, 1], [], []>} : vector<32x64xf32>, vector<64x128xf32>, vector<32x128xf32> -> vector<32x128xf32>
    %c5 = arith.constant 5 : index
    %c0_73 = arith.constant 0 : index
    %179 = vector.load %arg13[%c5, %c0_73] : memref<9x128xf32, #tpu.memory_space<vmem>>, vector<1x128xf32>
    %180 = vector.broadcast %179 : vector<1x128xf32> to vector<32x128xf32>
    %181 = arith.addf %178, %180 : vector<32x128xf32>
    %cst_74 = arith.constant 0.000000e+00 : f32
    %182 = vector.broadcast %cst_74 : f32 to vector<32x128xf32>
    %183 = arith.maximumf %181, %182 : vector<32x128xf32>
    %184 = arith.truncf %183 : vector<32x128xf32> to vector<32x128xbf16>
    %c0_75 = arith.constant 0 : index
    %c0_76 = arith.constant 0 : index
    %185 = vector.load %arg8[%c0_75, %c0_76] : memref<128x384xbf16, #tpu.memory_space<vmem>>, vector<128x384xbf16>
    %cst_77 = arith.constant dense<0.000000e+00> : vector<32x384xf32>
    %186 = tpu.matmul %184, %185, %cst_77 {dimension_numbers = #tpu.dot_dimension_numbers<[1], [0], [0], [1], [0, 0, 1, 1], [], []>} : vector<32x128xbf16>, vector<128x384xbf16>, vector<32x384xf32> -> vector<32x384xf32>
    %cst_78 = arith.constant 0.000000e+00 : f32
    %187 = vector.broadcast %cst_78 : f32 to vector<8x384xf32>
    %188 = tpu.concatenate %187, %186, %187 in 0 : vector<8x384xf32>, vector<32x384xf32>, vector<8x384xf32> -> vector<48x384xf32>
    %189 = tpu.iota {dimensions = array<i32: 0>} : vector<32x128xi32>
    %c3_i32 = arith.constant 3 : i32
    %190 = vector.broadcast %c3_i32 : i32 to vector<32x128xi32>
    %191 = arith.andi %189, %190 : vector<32x128xi32>
    %192 = vector.extract_strided_slice %188 {offsets = [7, 0], sizes = [32, 128], strides = [1, 1]} : vector<48x384xf32> to vector<32x128xf32>
    %c1_i32_79 = arith.constant 1 : i32
    %193 = vector.broadcast %c1_i32_79 : i32 to vector<32x128xi32>
    %194 = arith.cmpi sge, %191, %193 : vector<32x128xi32>
    %cst_80 = arith.constant 0.000000e+00 : f32
    %195 = vector.broadcast %cst_80 : f32 to vector<32x128xf32>
    %196 = arith.select %194, %192, %195 : vector<32x128xi1>, vector<32x128xf32>
    %197 = vector.extract_strided_slice %188 {offsets = [8, 128], sizes = [32, 128], strides = [1, 1]} : vector<48x384xf32> to vector<32x128xf32>
    %198 = arith.addf %196, %197 : vector<32x128xf32>
    %199 = vector.extract_strided_slice %188 {offsets = [9, 256], sizes = [32, 128], strides = [1, 1]} : vector<48x384xf32> to vector<32x128xf32>
    %c3_i32_81 = arith.constant 3 : i32
    %200 = vector.broadcast %c3_i32_81 : i32 to vector<32x128xi32>
    %201 = arith.cmpi slt, %191, %200 : vector<32x128xi32>
    %cst_82 = arith.constant 0.000000e+00 : f32
    %202 = vector.broadcast %cst_82 : f32 to vector<32x128xf32>
    %203 = arith.select %201, %199, %202 : vector<32x128xi1>, vector<32x128xf32>
    %204 = arith.addf %198, %203 : vector<32x128xf32>
    %c6 = arith.constant 6 : index
    %c0_83 = arith.constant 0 : index
    %205 = vector.load %arg13[%c6, %c0_83] : memref<9x128xf32, #tpu.memory_space<vmem>>, vector<1x128xf32>
    %206 = vector.broadcast %205 : vector<1x128xf32> to vector<32x128xf32>
    %207 = arith.addf %204, %206 : vector<32x128xf32>
    %cst_84 = arith.constant 0.000000e+00 : f32
    %208 = vector.broadcast %cst_84 : f32 to vector<32x128xf32>
    %209 = arith.maximumf %207, %208 : vector<32x128xf32>
    %210 = arith.truncf %209 : vector<32x128xf32> to vector<32x128xbf16>
    %c0_85 = arith.constant 0 : index
    %c0_86 = arith.constant 0 : index
    %211 = vector.load %arg9[%c0_85, %c0_86] : memref<128x384xbf16, #tpu.memory_space<vmem>>, vector<128x384xbf16>
    %cst_87 = arith.constant dense<0.000000e+00> : vector<32x384xf32>
    %212 = tpu.matmul %210, %211, %cst_87 {dimension_numbers = #tpu.dot_dimension_numbers<[1], [0], [0], [1], [0, 0, 1, 1], [], []>} : vector<32x128xbf16>, vector<128x384xbf16>, vector<32x384xf32> -> vector<32x384xf32>
    %cst_88 = arith.constant 0.000000e+00 : f32
    %213 = vector.broadcast %cst_88 : f32 to vector<8x384xf32>
    %214 = tpu.concatenate %213, %212, %213 in 0 : vector<8x384xf32>, vector<32x384xf32>, vector<8x384xf32> -> vector<48x384xf32>
    %215 = tpu.iota {dimensions = array<i32: 0>} : vector<32x128xi32>
    %c3_i32_89 = arith.constant 3 : i32
    %216 = vector.broadcast %c3_i32_89 : i32 to vector<32x128xi32>
    %217 = arith.andi %215, %216 : vector<32x128xi32>
    %218 = vector.extract_strided_slice %214 {offsets = [7, 0], sizes = [32, 128], strides = [1, 1]} : vector<48x384xf32> to vector<32x128xf32>
    %c1_i32_90 = arith.constant 1 : i32
    %219 = vector.broadcast %c1_i32_90 : i32 to vector<32x128xi32>
    %220 = arith.cmpi sge, %217, %219 : vector<32x128xi32>
    %cst_91 = arith.constant 0.000000e+00 : f32
    %221 = vector.broadcast %cst_91 : f32 to vector<32x128xf32>
    %222 = arith.select %220, %218, %221 : vector<32x128xi1>, vector<32x128xf32>
    %223 = vector.extract_strided_slice %214 {offsets = [8, 128], sizes = [32, 128], strides = [1, 1]} : vector<48x384xf32> to vector<32x128xf32>
    %224 = arith.addf %222, %223 : vector<32x128xf32>
    %225 = vector.extract_strided_slice %214 {offsets = [9, 256], sizes = [32, 128], strides = [1, 1]} : vector<48x384xf32> to vector<32x128xf32>
    %c3_i32_92 = arith.constant 3 : i32
    %226 = vector.broadcast %c3_i32_92 : i32 to vector<32x128xi32>
    %227 = arith.cmpi slt, %217, %226 : vector<32x128xi32>
    %cst_93 = arith.constant 0.000000e+00 : f32
    %228 = vector.broadcast %cst_93 : f32 to vector<32x128xf32>
    %229 = arith.select %227, %225, %228 : vector<32x128xi1>, vector<32x128xf32>
    %230 = arith.addf %224, %229 : vector<32x128xf32>
    %c7 = arith.constant 7 : index
    %c0_94 = arith.constant 0 : index
    %231 = vector.load %arg13[%c7, %c0_94] : memref<9x128xf32, #tpu.memory_space<vmem>>, vector<1x128xf32>
    %232 = vector.broadcast %231 : vector<1x128xf32> to vector<32x128xf32>
    %233 = arith.addf %230, %232 : vector<32x128xf32>
    %cst_95 = arith.constant 0.000000e+00 : f32
    %234 = vector.broadcast %cst_95 : f32 to vector<32x128xf32>
    %235 = arith.maximumf %233, %234 : vector<32x128xf32>
    %236 = arith.truncf %235 : vector<32x128xf32> to vector<32x128xbf16>
    %c0_96 = arith.constant 0 : index
    %c0_97 = arith.constant 0 : index
    %237 = vector.load %arg10[%c0_96, %c0_97] : memref<128x384xbf16, #tpu.memory_space<vmem>>, vector<128x384xbf16>
    %cst_98 = arith.constant dense<0.000000e+00> : vector<32x384xf32>
    %238 = tpu.matmul %236, %237, %cst_98 {dimension_numbers = #tpu.dot_dimension_numbers<[1], [0], [0], [1], [0, 0, 1, 1], [], []>} : vector<32x128xbf16>, vector<128x384xbf16>, vector<32x384xf32> -> vector<32x384xf32>
    %cst_99 = arith.constant 0.000000e+00 : f32
    %239 = vector.broadcast %cst_99 : f32 to vector<8x384xf32>
    %240 = tpu.concatenate %239, %238, %239 in 0 : vector<8x384xf32>, vector<32x384xf32>, vector<8x384xf32> -> vector<48x384xf32>
    %241 = tpu.iota {dimensions = array<i32: 0>} : vector<32x128xi32>
    %c3_i32_100 = arith.constant 3 : i32
    %242 = vector.broadcast %c3_i32_100 : i32 to vector<32x128xi32>
    %243 = arith.andi %241, %242 : vector<32x128xi32>
    %244 = vector.extract_strided_slice %240 {offsets = [7, 0], sizes = [32, 128], strides = [1, 1]} : vector<48x384xf32> to vector<32x128xf32>
    %c1_i32_101 = arith.constant 1 : i32
    %245 = vector.broadcast %c1_i32_101 : i32 to vector<32x128xi32>
    %246 = arith.cmpi sge, %243, %245 : vector<32x128xi32>
    %cst_102 = arith.constant 0.000000e+00 : f32
    %247 = vector.broadcast %cst_102 : f32 to vector<32x128xf32>
    %248 = arith.select %246, %244, %247 : vector<32x128xi1>, vector<32x128xf32>
    %249 = vector.extract_strided_slice %240 {offsets = [8, 128], sizes = [32, 128], strides = [1, 1]} : vector<48x384xf32> to vector<32x128xf32>
    %250 = arith.addf %248, %249 : vector<32x128xf32>
    %251 = vector.extract_strided_slice %240 {offsets = [9, 256], sizes = [32, 128], strides = [1, 1]} : vector<48x384xf32> to vector<32x128xf32>
    %c3_i32_103 = arith.constant 3 : i32
    %252 = vector.broadcast %c3_i32_103 : i32 to vector<32x128xi32>
    %253 = arith.cmpi slt, %243, %252 : vector<32x128xi32>
    %cst_104 = arith.constant 0.000000e+00 : f32
    %254 = vector.broadcast %cst_104 : f32 to vector<32x128xf32>
    %255 = arith.select %253, %251, %254 : vector<32x128xi1>, vector<32x128xf32>
    %256 = arith.addf %250, %255 : vector<32x128xf32>
    %c8 = arith.constant 8 : index
    %c0_105 = arith.constant 0 : index
    %257 = vector.load %arg13[%c8, %c0_105] : memref<9x128xf32, #tpu.memory_space<vmem>>, vector<1x128xf32>
    %258 = vector.broadcast %257 : vector<1x128xf32> to vector<32x128xf32>
    %259 = arith.addf %256, %258 : vector<32x128xf32>
    %c0_106 = arith.constant 0 : index
    %c0_107 = arith.constant 0 : index
    %260 = vector.load %arg14[%c0_106, %c0_107] : memref<32x128xf32, #tpu.memory_space<vmem>>, vector<32x128xf32>
    tpu.vector_store %arg14[%c0_106, %c0_107], %259 {strides = array<i32>} : memref<32x128xf32, #tpu.memory_space<vmem>>, vector<32x128xf32>,
    return
  }
  func.func @transform_0(%arg0: i32) -> (i32, i32) {
    %c0_i32 = arith.constant 0 : i32
    %c0_i32_0 = arith.constant 0 : i32
    return %arg0, %c0_i32 : i32, i32
  }
  func.func @transform_1(%arg0: i32) -> (i32, i32) {
    %c0_i32 = arith.constant 0 : i32
    %c0_i32_0 = arith.constant 0 : i32
    %c0_i32_1 = arith.constant 0 : i32
    return %c0_i32, %c0_i32_0 : i32, i32
  }
  func.func @transform_2(%arg0: i32) -> (i32, i32) {
    %c0_i32 = arith.constant 0 : i32
    %c0_i32_0 = arith.constant 0 : i32
    %c0_i32_1 = arith.constant 0 : i32
    return %c0_i32, %c0_i32_0 : i32, i32
  }
  func.func @transform_3(%arg0: i32) -> (i32, i32) {
    %c0_i32 = arith.constant 0 : i32
    %c0_i32_0 = arith.constant 0 : i32
    %c0_i32_1 = arith.constant 0 : i32
    return %c0_i32, %c0_i32_0 : i32, i32
  }
  func.func @transform_4(%arg0: i32) -> (i32, i32) {
    %c0_i32 = arith.constant 0 : i32
    %c0_i32_0 = arith.constant 0 : i32
    %c0_i32_1 = arith.constant 0 : i32
    return %c0_i32, %c0_i32_0 : i32, i32
  }
  func.func @transform_5(%arg0: i32) -> (i32, i32) {
    %c0_i32 = arith.constant 0 : i32
    %c0_i32_0 = arith.constant 0 : i32
    %c0_i32_1 = arith.constant 0 : i32
    return %c0_i32, %c0_i32_0 : i32, i32
  }
  func.func @transform_6(%arg0: i32) -> (i32, i32) {
    %c0_i32 = arith.constant 0 : i32
    %c0_i32_0 = arith.constant 0 : i32
    %c0_i32_1 = arith.constant 0 : i32
    return %c0_i32, %c0_i32_0 : i32, i32
  }
  func.func @transform_7(%arg0: i32) -> (i32, i32) {
    %c0_i32 = arith.constant 0 : i32
    %c0_i32_0 = arith.constant 0 : i32
    %c0_i32_1 = arith.constant 0 : i32
    return %c0_i32, %c0_i32_0 : i32, i32
  }
  func.func @transform_8(%arg0: i32) -> (i32, i32) {
    %c0_i32 = arith.constant 0 : i32
    %c0_i32_0 = arith.constant 0 : i32
    %c0_i32_1 = arith.constant 0 : i32
    return %c0_i32, %c0_i32_0 : i32, i32
  }
  func.func @transform_9(%arg0: i32) -> (i32, i32) {
    %c0_i32 = arith.constant 0 : i32
    %c0_i32_0 = arith.constant 0 : i32
    %c0_i32_1 = arith.constant 0 : i32
    return %c0_i32, %c0_i32_0 : i32, i32
  }
  func.func @transform_10(%arg0: i32) -> (i32, i32) {
    %c0_i32 = arith.constant 0 : i32
    %c0_i32_0 = arith.constant 0 : i32
    %c0_i32_1 = arith.constant 0 : i32
    return %c0_i32, %c0_i32_0 : i32, i32
  }
  func.func @transform_11(%arg0: i32) -> (i32, i32) {
    %c0_i32 = arith.constant 0 : i32
    %c0_i32_0 = arith.constant 0 : i32
    %c0_i32_1 = arith.constant 0 : i32
    return %c0_i32, %c0_i32_0 : i32, i32
  }
  func.func @transform_12(%arg0: i32) -> (i32, i32) {
    %c0_i32 = arith.constant 0 : i32
    %c0_i32_0 = arith.constant 0 : i32
    %c0_i32_1 = arith.constant 0 : i32
    return %c0_i32, %c0_i32_0 : i32, i32
  }
  func.func @transform_13(%arg0: i32) -> (i32, i32) {
    %c0_i32 = arith.constant 0 : i32
    %c0_i32_0 = arith.constant 0 : i32
    return %arg0, %c0_i32 : i32, i32
  }
}

</mosaic_0001>

<bundles_post_ra>
// kernel: _lambda_.1
= control target key start
LH: loop header
LB: loop body
LE: loop exit
PB: predicated region body
PF: predicated region fallthrough
CT: control target
= control target key end

     0   :  { %s6366_s25 = smov 0   ;;  %s9175_s0 = inlined_call_operand.vmem [shape: bf16[256,128], index: 0, kind: input, shape index: {}]   ;;  %s9176_s1 = inlined_call_operand.vmem [shape: bf16[128,384], index: 1, kind: input, shape index: {}]   ;;  %s9177_s2 = inlined_call_operand.vmem [shape: bf16[128,384], index: 2, kind: input, shape index: {}]   ;;  %s9178_s3 = inlined_call_operand.vmem [shape: bf16[128,640], index: 3, kind: input, shape index: {}]   ;;  %s9179_s4 = inlined_call_operand.vmem [shape: bf16[128,384], index: 4, kind: input, shape index: {}]   ;;  %s9180_s5 = inlined_call_operand.vmem [shape: bf16[128,384], index: 5, kind: input, shape index: {}]   ;;  %s9181_s6 = inlined_call_operand.vmem [shape: bf16[128,640], index: 6, kind: input, shape index: {}]   ;;  %s9182_s7 = inlined_call_operand.vmem [shape: bf16[128,384], index: 7, kind: input, shape index: {}]   ;;  %s9183_s8 = inlined_call_operand.vmem [shape: bf16[128,384], index: 8, kind: input, shape index: {}]   ;;  %s9184_s9 = inlined_call_operand.vmem [shape: bf16[128,384], index: 9, kind: input, shape index: {}]   ;;  %s9185_s10 = inlined_call_operand.vmem [shape: f32[64,128], index: 10, kind: input, shape index: {}]   ;;  %s9186_s11 = inlined_call_operand.vmem [shape: f32[32,64], index: 11, kind: input, shape index: {}]   ;;  %s9187_s12 = inlined_call_operand.vmem [shape: f32[9,128], index: 12, kind: input, shape index: {}]   ;;  %s9188_s13 = inlined_call_operand.vmem [shape: f32[64,128], index: 13, kind: output, shape index: {}]  }
   0x1 LB: > { %s4958_s26 = sadd.s32 4294967295, %s6293_s25   ;;  %p4962_p0 = scmp.ge.s32.totalorder %s6293_s25, 1  ;;  %s6293_s25 = sphi %s6366_s25, %s23_s25  }
   0x2   : > { %p388_p1 = scmp.lt.s32.totalorder %s6293_s25, 3 }
   0x4   : > { %p389_p2 = pnand %p4962_p0, %p388_p1 }
   0x6   : > { %392 = sbr.rel (%p389_p2) target bundleno = 2179 (0x883), region = 72 }
   0xb   : > { %v5085_v0 = vld [vmem:[%s9176_s1 + $0xa8] sm:$0xf]  ;;  %v6027_v1 = vld [vmem:[%s9176_s1 + $0xb0] sm:$0xf0]  ;;  %v5093_v2 = vld [vmem:[%s9176_s1 + $0xb0] sm:$0xf] }
   0xc   : > { %v5086_v3 = vor.u32 %v6027_v1, %v5085_v0  ;;  %v6028_v4 = vld [vmem:[%s9176_s1 + $0xb8] sm:$0xf0]  ;;  %v5073_v5 = vld [vmem:[%s9176_s1 + $0x90] sm:$0xf]  ;;  %v6026_v8 = vld [vmem:[%s9176_s1 + $0xac] sm:$0xf] }
   0xd   : > { %v6024_v6 = vld [vmem:[%s9176_s1 + $0x98] sm:$0xf0]  ;;  %v5094_v7 = vor.u32 %v6028_v4, %v5093_v2  ;;  %v5087_v9 = vld [vmem:[%s9176_s1 + $0xb4] sm:$0xf0]  ;;  %v6025_v13 = vld [vmem:[%s9176_s1 + $0xa0] sm:$0xf0] }
   0xe   : > { %v5081_v10 = vld [vmem:[%s9176_s1 + $0x98] sm:$0xf]  ;;  %668 = vmatpush.bf16.msra.mxu0 %v5086_v3  ;;  %v5074_v11 = vor.u32 %v6024_v6, %v5073_v5  ;;  %v5090_v12 = vor.u32 %v6026_v8, %v5087_v9  ;;  %v6021_v16 = vld [vmem:[%s9176_s1 + $0x80] sm:$0xf0]  ;;  %v6023_v17 = vld [vmem:[%s9176_s1 + $0x94] sm:$0xf] }
   0xf   : > { %v5061_v14 = vld [vmem:[%s9176_s1 + $0x78] sm:$0xf]  ;;  %766 = vmatpush.bf16.msra.mxu2 %v5094_v7  ;;  %v5082_v15 = vor.u32 %v6025_v13, %v5081_v10  ;;  %v5075_v18 = vld [vmem:[%s9176_s1 + $0x9c] sm:$0xf0]  ;;  %v6022_v21 = vld [vmem:[%s9176_s1 + $0x88] sm:$0xf0] }
  0x10   : > { %717 = vmatpush.bf16.msra.mxu1 %v5090_v12  ;;  %v5078_v19 = vor.u32 %v6023_v17, %v5075_v18  ;;  %v5069_v20 = vld [vmem:[%s9176_s1 + $0x80] sm:$0xf]  ;;  %v6020_v22 = vld [vmem:[%s9176_s1 + $0x7c] sm:$0xf]  ;;  %v5063_v23 = vld [vmem:[%s9176_s1 + $0x84] sm:$0xf0]  ;;  %v5062_v24 = vor.u32 %v6021_v16, %v5061_v14 }
  0x11   : > { %v5070_v25 = vor.u32 %v6022_v21, %v5069_v20  ;;  %v5049_v26 = vld [vmem:[%s9176_s1 + $0x60] sm:$0xf]  ;;  %v6018_v27 = vld [vmem:[%s9176_s1 + $0x68] sm:$0xf0]  ;;  %v5066_v28 = vor.u32 %v6020_v22, %v5063_v23  ;;  %v5057_v29 = vld [vmem:[%s9176_s1 + $0x68] sm:$0xf] }
  0x12   : > { %669 = vmatpush.bf16.msra.mxu0 %v5074_v11  ;;  %v6019_v30 = vld [vmem:[%s9176_s1 + $0x70] sm:$0xf0]  ;;  %v6017_v31 = vld [vmem:[%s9176_s1 + $0x64] sm:$0xf]  ;;  %v5051_v32 = vld [vmem:[%s9176_s1 + $0x6c] sm:$0xf0]  ;;  %v5050_v33 = vor.u32 %v6018_v27, %v5049_v26 }
  0x13   : > { %767 = vmatpush.bf16.msra.mxu2 %v5082_v15  ;;  %v5058_v34 = vor.u32 %v6019_v30, %v5057_v29  ;;  %v5037_v35 = vld [vmem:[%s9176_s1 + $0x48] sm:$0xf]  ;;  %v6015_v36 = vld [vmem:[%s9176_s1 + $0x50] sm:$0xf0]  ;;  %v5054_v37 = vor.u32 %v6017_v31, %v5051_v32  ;;  %v5045_v38 = vld [vmem:[%s9176_s1 + $0x50] sm:$0xf] }
  0x14   : > { %718 = vmatpush.bf16.msra.mxu1 %v5078_v19  ;;  %v6016_v39 = vld [vmem:[%s9176_s1 + $0x58] sm:$0xf0]  ;;  %v5025_v40 = vld [vmem:[%s9176_s1 + $0x30] sm:$0xf]  ;;  %v6014_v42 = vld [vmem:[%s9176_s1 + $0x4c] sm:$0xf]  ;;  %v5038_v44 = vor.u32 %v6015_v36, %v5037_v35 }
  0x15   : > { %v6012_v41 = vld [vmem:[%s9176_s1 + $0x38] sm:$0xf0]  ;;  %v5039_v43 = vld [vmem:[%s9176_s1 + $0x54] sm:$0xf0]  ;;  %v6013_v46 = vld [vmem:[%s9176_s1 + $0x40] sm:$0xf0]  ;;  %v5046_v47 = vor.u32 %v6016_v39, %v5045_v38 }
  0x16   : > { %670 = vmatpush.bf16.msra.mxu0 %v5062_v24  ;;  %v5033_v45 = vld [vmem:[%s9176_s1 + $0x38] sm:$0xf]  ;;  %s4963_s18 = sshll.u32 %s4958_s26, 4  ;;  %v6011_v48 = vld [vmem:[%s9176_s1 + $0x34] sm:$0xf]  ;;  %v5042_v49 = vor.u32 %v6014_v42, %v5039_v43  ;;  %v5026_v51 = vor.u32 %v6012_v41, %v5025_v40  ;;  %vm9196_vm0 = vcmask 1040384  }
  0x17   : > { %768 = vmatpush.bf16.msra.mxu2 %v5070_v25  ;;  %p433_p3 = scmp.lt.s32.totalorder %s4963_s18, 31  ;;  %v5027_v50 = vld [vmem:[%s9176_s1 + $0x3c] sm:$0xf0]  ;;  %v5034_v52 = vor.u32 %v6013_v46, %v5033_v45  ;;  %v5013_v53 = vld [vmem:[%s9176_s1 + $0x18] sm:$0xf]  ;;  %vm9199_vm2 = vcmask 1046528  }
  0x18   : > { %719 = vmatpush.bf16.msra.mxu1 %v5066_v28  ;;  %v6009_v54 = vld [vmem:[%s9176_s1 + $0x20] sm:$0xf0]  ;;  %v5030_v55 = vor.u32 %v6011_v48, %v5027_v50  ;;  %v5021_v56 = vld [vmem:[%s9176_s1 + $0x20] sm:$0xf]  ;;  %v6010_v57 = vld [vmem:[%s9176_s1 + $0x28] sm:$0xf0] }
  0x19   : > { %s9490_s18 = smov (!%p433_p3, %s4963_s18), 31  ;;  %v6008_v58 = vld [vmem:[%s9176_s1 + $0x1c] sm:$0xf]  ;;  %v5015_v59 = vld [vmem:[%s9176_s1 + $0x24] sm:$0xf0]  ;;  %v5014_v60 = vor.u32 %v6009_v54, %v5013_v53  ;;  %v5022_v61 = vor.u32 %v6010_v57, %v5021_v56  ;;  %s4965_s15 = sshll.u32 %s4958_s26, 2 }
  0x1a   : > { %671 = vmatpush.bf16.msra.mxu0 %v5050_v33  ;;  %v5001_v62 = vld [vmem:[%s9176_s1] sm:$0xf]  ;;  %v6006_v63 = vld [vmem:[%s9176_s1 + $0x8] sm:$0xf0]  ;;  %s4964_s27 = sshll.u32 %s9490_s18, 2  ;;  %v5018_v0 = vor.u32 %v6008_v58, %v5015_v59  ;;  %p439_p4 = scmp.lt.s32.totalorder %s4965_s15, 7 }
  0x1b   : > { %769 = vmatpush.bf16.msra.mxu2 %v5058_v34  ;;  %v5009_v1 = vld [vmem:[%s9176_s1 + $0x8] sm:$0xf]  ;;  %v6007_v2 = vld [vmem:[%s9176_s1 + $0x10] sm:$0xf0]  ;;  %v6005_v3 = vld [vmem:[%s9176_s1 + $0x4] sm:$0xf]  ;;  %v5002_v5 = vor.u32 %v6006_v63, %v5001_v62  ;;  %s6523_s21 = scalar_lea.vmem %s9175_s0, %s4964_s27 }
  0x1c   : > { %720 = vmatpush.bf16.msra.mxu1 %v5054_v37  ;;  %v5003_v4 = vld [vmem:[%s9176_s1 + $0xc] sm:$0xf0]  ;;  %v5010_v6 = vor.u32 %v6007_v2, %v5009_v1  ;;  %v5997_v8 = vld [vmem:[%s6523_s21] sm:$0xff]  ;;  %v5998_v9 = vld [vmem:[%s6523_s21 + $0x8] sm:$0xff]  ;;  %s9492_s15 = smov (!%p439_p4, %s4965_s15), 7 }
  0x1d   : > { %v5006_v7 = vor.u32 %v6005_v3, %v5003_v4  ;;  %v5999_v10 = vld [vmem:[%s6523_s21 + $0x10] sm:$0xff]  ;;  %v6000_v11 = vld [vmem:[%s6523_s21 + $0x18] sm:$0xff]  ;;  %v6001_v12 = vld [vmem:[%s6523_s21 + $0x20] sm:$0xff]  ;;  %s4966_s16 = sshll.u32 %s9492_s15, 3 }
  0x1e   : > { %672 = vmatpush.bf16.msra.mxu0 %v5038_v44  ;;  %v6002_v13 = vld [vmem:[%s6523_s21 + $0x28] sm:$0xff]  ;;  %v6003_v14 = vld [vmem:[%s6523_s21 + $0x30] sm:$0xff]  ;;  %v5183_v19 = vld [vmem:[%s9177_s2 + $0xb4] sm:$0xf0]  ;;  %s9147_s20 = scalar_lea.vmem %s9188_s13, %s4966_s16 }
  0x1f   : > { %770 = vmatpush.bf16.msra.mxu2 %v5046_v47  ;;  %v5181_v15 = vld [vmem:[%s9177_s2 + $0xa8] sm:$0xf]  ;;  %v6051_v16 = vld [vmem:[%s9177_s2 + $0xb0] sm:$0xf0]  ;;  %v6050_v18 = vld [vmem:[%s9177_s2 + $0xac] sm:$0xf] }
  0x20   : > { %721 = vmatpush.bf16.msra.mxu1 %v5042_v49  ;;  %v5182_v17 = vor.u32 %v6051_v16, %v5181_v15  ;;  %v5186_v20 = vor.u32 %v6050_v18, %v5183_v19  ;;  %v5189_v21 = vld [vmem:[%s9177_s2 + $0xb0] sm:$0xf]  ;;  %v6052_v22 = vld [vmem:[%s9177_s2 + $0xb8] sm:$0xf0]  ;;  %v6047_v27 = vld [vmem:[%s9177_s2 + $0x94] sm:$0xf] }
  0x21   : > { %v5190_v23 = vor.u32 %v6052_v22, %v5189_v21  ;;  %v5169_v24 = vld [vmem:[%s9177_s2 + $0x90] sm:$0xf]  ;;  %v6048_v25 = vld [vmem:[%s9177_s2 + $0x98] sm:$0xf0]  ;;  %v5171_v28 = vld [vmem:[%s9177_s2 + $0x9c] sm:$0xf0] }
  0x22   : > { %673 = vmatpush.bf16.msra.mxu0 %v5026_v51  ;;  %1279 = vmatpush.bf16.msra.mxu3 %v5182_v17  ;;  %v5170_v26 = vor.u32 %v6048_v25, %v5169_v24  ;;  %v5177_v29 = vld [vmem:[%s9177_s2 + $0x98] sm:$0xf]  ;;  %v5174_v30 = vor.u32 %v6047_v27, %v5171_v28  ;;  %v6049_v31 = vld [vmem:[%s9177_s2 + $0xa0] sm:$0xf0]  ;;  %v6044_v35 = vld [vmem:[%s9177_s2 + $0x7c] sm:$0xf] }
  0x23   : > { %771 = vmatpush.bf16.msra.mxu2 %v5034_v52  ;;  %v5178_v32 = vor.u32 %v6049_v31, %v5177_v29  ;;  %v5157_v33 = vld [vmem:[%s9177_s2 + $0x78] sm:$0xf]  ;;  %v6045_v34 = vld [vmem:[%s9177_s2 + $0x80] sm:$0xf0]  ;;  %v5159_v37 = vld [vmem:[%s9177_s2 + $0x84] sm:$0xf0] }
  0x24   : > { %722 = vmatpush.bf16.msra.mxu1 %v5030_v55  ;;  %v5158_v36 = vor.u32 %v6045_v34, %v5157_v33  ;;  %v5165_v38 = vld [vmem:[%s9177_s2 + $0x80] sm:$0xf]  ;;  %v6046_v39 = vld [vmem:[%s9177_s2 + $0x88] sm:$0xf0]  ;;  %v5162_v40 = vor.u32 %v6044_v35, %v5159_v37  ;;  %v6041_v44 = vld [vmem:[%s9177_s2 + $0x64] sm:$0xf] }
  0x25   : > { %v5166_v41 = vor.u32 %v6046_v39, %v5165_v38  ;;  %v5145_v42 = vld [vmem:[%s9177_s2 + $0x60] sm:$0xf]  ;;  %v6042_v43 = vld [vmem:[%s9177_s2 + $0x68] sm:$0xf0]  ;;  %v6004_v45 = vld [vmem:[%s6523_s21 + $0x38] sm:$0xff] }
  0x26   : > { %674 = vmatpush.bf16.msra.mxu0 %v5014_v60  ;;  %1280 = vmatpush.bf16.msra.mxu3 %v5170_v26  ;;  %v5146_v46 = vor.u32 %v6042_v43, %v5145_v42  ;;  %v5147_v47 = vld [vmem:[%s9177_s2 + $0x6c] sm:$0xf0]  ;;  %v5153_v48 = vld [vmem:[%s9177_s2 + $0x68] sm:$0xf]  ;;  %v6043_v50 = vld [vmem:[%s9177_s2 + $0x70] sm:$0xf0]  ;;  %v815_v26 = vlaneseq }
  0x27   : > { %772 = vmatpush.bf16.msra.mxu2 %v5022_v61  ;;  %v5150_v49 = vor.u32 %v6041_v44, %v5147_v47  ;;  %v5154_v51 = vor.u32 %v6043_v50, %v5153_v48  ;;  %v5133_v52 = vld [vmem:[%s9177_s2 + $0x48] sm:$0xf]  ;;  %v6039_v53 = vld [vmem:[%s9177_s2 + $0x50] sm:$0xf0]  ;;  %v6038_v55 = vld [vmem:[%s9177_s2 + $0x4c] sm:$0xf] }
  0x28   : > { %723 = vmatpush.bf16.msra.mxu1 %v5018_v0  ;;  %v5134_v54 = vor.u32 %v6039_v53, %v5133_v52  ;;  %v5135_v56 = vld [vmem:[%s9177_s2 + $0x54] sm:$0xf0]  ;;  %v5141_v57 = vld [vmem:[%s9177_s2 + $0x50] sm:$0xf]  ;;  %v6040_v59 = vld [vmem:[%s9177_s2 + $0x58] sm:$0xf0] }
  0x29   : > { %v5138_v58 = vor.u32 %v6038_v55, %v5135_v56  ;;  %v5142_v60 = vor.u32 %v6040_v59, %v5141_v57  ;;  %v5121_v61 = vld [vmem:[%s9177_s2 + $0x30] sm:$0xf]  ;;  %v6036_v62 = vld [vmem:[%s9177_s2 + $0x38] sm:$0xf0]  ;;  %v6035_v0 = vld [vmem:[%s9177_s2 + $0x34] sm:$0xf] }
  0x2a   : > { %675 = vmatpush.bf16.msra.mxu0 %v5002_v5  ;;  %1281 = vmatpush.bf16.msra.mxu3 %v5158_v36  ;;  %v5122_v63 = vor.u32 %v6036_v62, %v5121_v61  ;;  %v5123_v1 = vld [vmem:[%s9177_s2 + $0x3c] sm:$0xf0]  ;;  %v5129_v2 = vld [vmem:[%s9177_s2 + $0x38] sm:$0xf]  ;;  %v6037_v4 = vld [vmem:[%s9177_s2 + $0x40] sm:$0xf0] }
  0x2b   : > { %773 = vmatpush.bf16.msra.mxu2 %v5010_v6  ;;  %v5126_v3 = vor.u32 %v6035_v0, %v5123_v1  ;;  %v5130_v5 = vor.u32 %v6037_v4, %v5129_v2  ;;  %v5109_v6 = vld [vmem:[%s9177_s2 + $0x18] sm:$0xf]  ;;  %v5097_v15 = vld [vmem:[%s9177_s2] sm:$0xf]  ;;  %v6030_v16 = vld [vmem:[%s9177_s2 + $0x8] sm:$0xf0] }
  0x2c   : > { %724 = vmatpush.bf16.msra.mxu1 %v5006_v7  ;;  %v6033_v7 = vld [vmem:[%s9177_s2 + $0x20] sm:$0xf0]  ;;  %v5098_v18 = vor.u32 %v6030_v16, %v5097_v15  ;;  %v5099_v19 = vld [vmem:[%s9177_s2 + $0xc] sm:$0xf0]  ;;  %v6031_v21 = vld [vmem:[%s9177_s2 + $0x10] sm:$0xf0] }
  0x2d   : > { %676 = vmatmul.bf16.vlgmr.msra.gmra.mxu0 %v5997_v8  ;;  %v6029_v17 = vld [vmem:[%s9177_s2 + $0x4] sm:$0xf]  ;;  %v6677_v27 = vshrl.u32 %v815_v26, 7  ;;  %v6711_v55 = vld [vmem:[%s9187_s12] ss:$0 sm:$0xff] }
  0x2e   : > { %774 = vmatmul.bf16.vlgmr.msra.gmra.mxu2 %v5997_v8  ;;  %1328 = vmatpush.bf16.msrb.mxu0 %v5186_v20  ;;  %v5105_v20 = vld [vmem:[%s9177_s2 + $0x8] sm:$0xf] }
  0x2f   : > { %725 = vmatmul.bf16.vlgmr.msra.gmra.mxu1 %v5997_v8  ;;  %1282 = vmatpush.bf16.msra.mxu3 %v5146_v46  ;;  %v5110_v8 = vor.u32 %v6033_v7, %v5109_v6  ;;  %v5106_v24 = vor.u32 %v6031_v21, %v5105_v20  ;;  %9241 = vst [vmem:[#allocation2_spill] sm:$0xff] %v6677_v27  ;;  %v832_v31 = vand.u32 15, %v6677_v27  ;;  %v6692_v39 = vadd.s32 8, %v6677_v27 }
  0x30   : > { %1377 = vmatpush.bf16.msrb.mxu1 %v5190_v23  ;;  %v5102_v23 = vor.u32 %v6029_v17, %v5099_v19  ;;  %v6727_v7 = vadd.s32 24, %v6677_v27  ;;  %v6735_v17 = vadd.s32 32, %v6677_v27 }
  0x31   : > { %vm6685_vm1 = vcmp.ge.s32.totalorder %v832_v31, 1  ;;  %9245 = vst [vmem:[#allocation4_spill] sm:$0xff] %v6692_v39  ;;  %v9207_v46 = vand.u32 15, %v6692_v39 }
  0x32   : > { %1329 = vmatpush.bf16.msrb.mxu0 %v5174_v30  ;;  %9251 = vst [vmem:[#allocation6_spill] sm:$0xff] %v6727_v7  ;;  %v9210_v26 = vand.u32 15, %v6735_v17 }
  0x33   : > { %1283 = vmatpush.bf16.msra.mxu3 %v5134_v54  ;;  %vm6704_vm3 = vcmp.lt.s32.totalorder %v9207_v46, 15  ;;  %9252 = vst [vmem:[#allocation7_spill] sm:$0xff] %v6735_v17 }
  0x34   : > { %1378 = vmatpush.bf16.msrb.mxu1 %v5178_v32  ;;  %v9214_v32 = vmov 0.0   ;;  %vm6751_vm6 = vcmp.ge.s32.totalorder %v9210_v26, 1 }
  0x35   : > { %v6681_v33 = vrot.slane %v9214_v32, 7 }
  0x36   : > { %1330 = vmatpush.bf16.msrb.mxu0 %v5162_v40 }
  0x37   : > { %1284 = vmatpush.bf16.msra.mxu3 %v5122_v63  ;;  %9242 = vst [vmem:[#allocation3_spill] sm:$0xff] %v6681_v33 }
  0x38   : > { %1379 = vmatpush.bf16.msrb.mxu1 %v5166_v41 }
  0x3a   : > { %1331 = vmatpush.bf16.msrb.mxu0 %v5150_v49  ;;  %v6700_v49 = vadd.s32 16, %v6677_v27 }
  0x3b   : > { %1285 = vmatpush.bf16.msra.mxu3 %v5110_v8 }
  0x3c   : > { %1380 = vmatpush.bf16.msrb.mxu1 %v5154_v51  ;;  %9246 = vst [vmem:[#allocation5_spill] sm:$0xff] %v6700_v49  ;;  %v9212_v59 = vand.u32 15, %v6700_v49 }
  0x3d   : > { %681 = vmatmul.bf16.gmra.mxu0 %v5998_v9 }
  0x3e   : > { %779 = vmatmul.bf16.gmra.mxu2 %v5998_v9  ;;  %1332 = vmatpush.bf16.msrb.mxu0 %v5138_v58  ;;  %vm6721_vm4 = vcmp.ge.s32.totalorder %v9212_v59, 1 }
  0x3f   : > { %730 = vmatmul.bf16.gmra.mxu1 %v5998_v9  ;;  %v6032_v9 = vld [vmem:[%s9177_s2 + $0x1c] sm:$0xf]  ;;  %1286 = vmatpush.bf16.msra.mxu3 %v5098_v18 }
  0x40   : > { %1381 = vmatpush.bf16.msrb.mxu1 %v5142_v60 }
  0x42   : > { %1333 = vmatpush.bf16.msrb.mxu0 %v5126_v3 }
  0x44   : > { %1382 = vmatpush.bf16.msrb.mxu1 %v5130_v5 }
  0x4d   : > { %686 = vmatmul.bf16.gmra.mxu0 %v5999_v10 }
  0x4e   : > { %784 = vmatmul.bf16.gmra.mxu2 %v5999_v10 }
  0x4f   : > { %735 = vmatmul.bf16.gmra.mxu1 %v5999_v10  ;;  %v5111_v10 = vld [vmem:[%s9177_s2 + $0x24] sm:$0xf0] }
  0x5d   : > { %691 = vmatmul.bf16.gmra.mxu0 %v6000_v11 }
  0x5e   : > { %789 = vmatmul.bf16.gmra.mxu2 %v6000_v11 }
  0x5f   : > { %740 = vmatmul.bf16.gmra.mxu1 %v6000_v11  ;;  %v5117_v11 = vld [vmem:[%s9177_s2 + $0x20] sm:$0xf] }
  0x6d   : > { %696 = vmatmul.bf16.gmra.mxu0 %v6001_v12 }
  0x6e   : > { %794 = vmatmul.bf16.gmra.mxu2 %v6001_v12 }
  0x6f   : > { %745 = vmatmul.bf16.gmra.mxu1 %v6001_v12  ;;  %v5114_v12 = vor.u32 %v6032_v9, %v5111_v10 }
  0x71   : > { %1334 = vmatpush.bf16.msrb.mxu0 %v5114_v12 }
  0x75   : > { %1335 = vmatpush.bf16.msrb.mxu0 %v5102_v23 }
  0x7d   : > { %701 = vmatmul.bf16.gmra.mxu0 %v6002_v13 }
  0x7e   : > { %799 = vmatmul.bf16.gmra.mxu2 %v6002_v13 }
  0x7f   : > { %750 = vmatmul.bf16.gmra.mxu1 %v6002_v13  ;;  %v6034_v13 = vld [vmem:[%s9177_s2 + $0x28] sm:$0xf0] }
  0x8d   : > { %706 = vmatmul.bf16.gmra.mxu0 %v6003_v14 }
  0x8e   : > { %804 = vmatmul.bf16.gmra.mxu2 %v6003_v14 }
  0x8f   : > { %755 = vmatmul.bf16.gmra.mxu1 %v6003_v14  ;;  %v5118_v14 = vor.u32 %v6034_v13, %v5117_v11  ;;  %v9206_v13 = vand.u32 15, %v6727_v7 }
  0x91   : > { %1383 = vmatpush.bf16.msrb.mxu1 %v5118_v14  ;;  %vm6739_vm5 = vcmp.lt.s32.totalorder %v9206_v13, 15 }
  0x95   : > { %1384 = vmatpush.bf16.msrb.mxu1 %v5106_v24 }
  0x9d   : > { %711 = vmatmul.bf16.gmra.mxu0 %v6004_v45 }
  0x9e   : > { %809 = vmatmul.bf16.gmra.mxu2 %v6004_v45 }
  0x9f   : > { %760 = vmatmul.bf16.gmra.mxu1 %v6004_v45 }
  0xaa   : > { %v677_v22 = vpop.f32.mrf.mxu0 }
  0xab   : > { %v883_v30 = vrot.slane %v677_v22, 7 }
  0xac   : > { %v726_v25 = vpop.f32.mrf.mxu1 }
  0xad   : > { %v884_v36 = vsel %vm9196_vm0, %v6681_v33, %v883_v30 }
  0xae   : > { %v931_v40 = vsel %vm6685_vm1, %v884_v36, 0.0 }
  0xaf   : > { %v947_v45 = vadd.f32 %v931_v40, %v726_v25 }
  0xb1   : > { %v775_v28 = vpop.f32.mrf.mxu2 }
  0xb2   : > { %v679_v29 = vpop.f32.mrf.mxu0  ;;  %v996_v43 = vrot.slane %v775_v28, 1 }
  0xb3   : > { %v885_v44 = vrot.slane %v679_v29, 7 }
  0xb4   : > { %v728_v34 = vpop.f32.mrf.mxu1 }
  0xb5   : > { %v886_v48 = vsel %vm9196_vm0, %v883_v30, %v885_v44 }
  0xb6   : > { %v948_v56 = vadd.f32 %v886_v48, %v728_v34 }
  0xb9   : > { %v777_v37 = vpop.f32.mrf.mxu2 }
  0xba   : > { %v682_v38 = vpop.f32.mrf.mxu0  ;;  %v997_v41 = vrot.slane %v777_v37, 1 }
  0xbb   : > { %v887_v61 = vrot.slane %v682_v38, 7 }
  0xbc   : > { %v731_v42 = vpop.f32.mrf.mxu1  ;;  %v998_v47 = vsel %vm9199_vm2, %v996_v43, %v997_v41 }
  0xbd   : > { %v1061_v51 = vadd.f32 %v998_v47, %v947_v45  ;;  %v888_v3 = vsel %vm9196_vm0, %v885_v44, %v887_v61  ;;  %v6757_v44 = vadd.s32 40, %v6677_v27 }
  0xbe   : > { %v933_v11 = vsel %vm6721_vm4, %v888_v3, 0.0 }
  0xbf   : > { %v1079_v63 = vadd.f32 %v6711_v55, %v1061_v51  ;;  %v949_v15 = vadd.f32 %v933_v11, %v731_v42  ;;  %9257 = vst [vmem:[#allocation8_spill] sm:$0xff] %v6757_v44 }
  0xc1   : > { %v780_v50 = vpop.f32.mrf.mxu2  ;;  %v1095_v5 = vmax.f32 %v1079_v63, 0.0 }
  0xc2   : > { %v999_v53 = vrot.slane %v780_v50, 1  ;;  %v684_v54 = vpop.f32.mrf.mxu0 }
  0xc3   : > { %v889_v12 = vrot.slane %v684_v54, 7 }
  0xc4   : > { %v1000_v57 = vsel %vm9199_vm2, %v997_v41, %v999_v53  ;;  %v733_v58 = vpop.f32.mrf.mxu1 }
  0xc5   : > { %v1046_v60 = vsel %vm6704_vm3, %v1000_v57, 0.0  ;;  %v890_v16 = vsel %vm9196_vm0, %v887_v61, %v889_v12 }
  0xc6   : > { %v1062_v62 = vadd.f32 %v1046_v60, %v948_v56  ;;  %v950_v23 = vadd.f32 %v890_v16, %v733_v58  ;;  %v6765_v58 = vadd.s32 48, %v6677_v27 }
  0xc8   : > { %v1080_v0 = vadd.f32 %v6711_v55, %v1062_v62  ;;  %9258 = vst [vmem:[#allocation9_spill] sm:$0xff] %v6765_v58 }
  0xc9   : > { %v782_v2 = vpop.f32.mrf.mxu2 }
  0xca   : > { %v687_v4 = vpop.f32.mrf.mxu0  ;;  %v1096_v6 = vmax.f32 %v1080_v0, 0.0  ;;  %v1001_v8 = vrot.slane %v782_v2, 1 }
  0xcb   : > { %v891_v29 = vrot.slane %v687_v4, 7 }
  0xcc   : > { %v1111_v9 = vpack.c.bf16 %v1096_v6, %v1095_v5  ;;  %v736_v10 = vpop.f32.mrf.mxu1  ;;  %v1002_v14 = vsel %vm9199_vm2, %v999_v53, %v1001_v8  ;;  %v9195_v53 = vand.u32 15, %v6757_v44  ;;  %v9209_v5 = vand.u32 15, %v6765_v58 }
  0xcd   : > { %v1063_v19 = vadd.f32 %v1002_v14, %v949_v15  ;;  %v892_v40 = vsel %vm9196_vm0, %v889_v12, %v891_v29 }
  0xce   : > { %1287 = vmatmul.bf16.vlgmr.msra.gmra.mxu3 %v1111_v9  ;;  %1336 = vmatmul.bf16.vlgmr.msrb.gmra.mxu0 %v1111_v9  ;;  %v935_v50 = vsel %vm6751_vm6, %v892_v40, 0.0  ;;  %vm6769_vm7 = vcmp.lt.s32.totalorder %v9195_v53, 15  ;;  %vm6781_vm8 = vcmp.ge.s32.totalorder %v9209_v5, 1 }
  0xcf   : > { %1385 = vmatmul.bf16.vlgmr.msrb.gmra.mxu1 %v1111_v9  ;;  %v1081_v34 = vadd.f32 %v6711_v55, %v1063_v19  ;;  %v951_v56 = vadd.f32 %v935_v50, %v736_v10 }
  0xd1   : > { %v785_v18 = vpop.f32.mrf.mxu2  ;;  %v1097_v42 = vmax.f32 %v1081_v34, 0.0 }
  0xd2   : > { %v1003_v21 = vrot.slane %v785_v18, 1  ;;  %v689_v22 = vpop.f32.mrf.mxu0 }
  0xd3   : > { %v893_v51 = vrot.slane %v689_v22, 7 }
  0xd4   : > { %v1004_v24 = vsel %vm9199_vm2, %v1001_v8, %v1003_v21  ;;  %v738_v25 = vpop.f32.mrf.mxu1 }
  0xd5   : > { %v1048_v28 = vsel %vm6739_vm5, %v1004_v24, 0.0  ;;  %v894_v57 = vsel %vm9196_vm0, %v891_v29, %v893_v51 }
  0xd6   : > { %v1064_v30 = vadd.f32 %v1048_v28, %v950_v23  ;;  %v952_v2 = vadd.f32 %v894_v57, %v738_v25 }
  0xd8   : > { %v1082_v36 = vadd.f32 %v6711_v55, %v1064_v30 }
  0xd9   : > { %v787_v38 = vpop.f32.mrf.mxu2 }
  0xda   : > { %v692_v41 = vpop.f32.mrf.mxu0  ;;  %v1098_v43 = vmax.f32 %v1082_v36, 0.0  ;;  %v1005_v45 = vrot.slane %v787_v38, 1  ;;  %v6795_v38 = vadd.s32 64, %v6677_v27 }
  0xdb   : > { %v895_v8 = vrot.slane %v692_v41, 7 }
  0xdc   : > { %v1112_v47 = vpack.c.bf16 %v1098_v43, %v1097_v42  ;;  %v741_v48 = vpop.f32.mrf.mxu1  ;;  %v1006_v54 = vsel %vm9199_vm2, %v1003_v21, %v1005_v45  ;;  %v6787_v21 = vadd.s32 56, %v6677_v27 }
  0xdd   : > { %v1065_v61 = vadd.f32 %v1006_v54, %v951_v56  ;;  %v896_v15 = vsel %vm9196_vm0, %v893_v51, %v895_v8 }
  0xde   : > { %1292 = vmatmul.bf16.gmra.mxu3 %v1112_v47  ;;  %1341 = vmatmul.bf16.gmra.mxu0 %v1112_v47  ;;  %9263 = vst [vmem:[#allocation10_spill] sm:$0xff] %v6787_v21  ;;  %v937_v25 = vsel %vm6781_vm8, %v896_v15, 0.0  ;;  %v9193_v29 = vand.u32 15, %v6787_v21 }
  0xdf   : > { %1390 = vmatmul.bf16.gmra.mxu1 %v1112_v47  ;;  %v1083_v10 = vadd.f32 %v6711_v55, %v1065_v61  ;;  %v953_v34 = vadd.f32 %v937_v25, %v741_v48  ;;  %v9208_v48 = vand.u32 15, %v6795_v38 }
  0xe0   : > { %vm6799_vm9 = vcmp.lt.s32.totalorder %v9193_v29, 15 }
  0xe1   : > { %v790_v60 = vpop.f32.mrf.mxu2  ;;  %v1099_v18 = vmax.f32 %v1083_v10, 0.0  ;;  %vm6811_vm10 = vcmp.ge.s32.totalorder %v9208_v48, 1 }
  0xe2   : > { %v1007_v63 = vrot.slane %v790_v60, 1  ;;  %v694_v0 = vpop.f32.mrf.mxu0 }
  0xe3   : > { %v897_v28 = vrot.slane %v694_v0, 7 }
  0xe4   : > { %v1008_v3 = vsel %vm9199_vm2, %v1005_v45, %v1007_v63  ;;  %v743_v4 = vpop.f32.mrf.mxu1 }
  0xe5   : > { %v1050_v6 = vsel %vm6769_vm7, %v1008_v3, 0.0  ;;  %v898_v36 = vsel %vm9196_vm0, %v895_v8, %v897_v28  ;;  %v6817_v8 = vadd.s32 72, %v6677_v27 }
  0xe6   : > { %v1066_v9 = vadd.f32 %v1050_v6, %v952_v2  ;;  %v954_v47 = vadd.f32 %v898_v36, %v743_v4 }
  0xe8   : > { %v1084_v11 = vadd.f32 %v6711_v55, %v1066_v9 }
  0xe9   : > { %v792_v14 = vpop.f32.mrf.mxu2 }
  0xea   : > { %v697_v16 = vpop.f32.mrf.mxu0  ;;  %v1100_v19 = vmax.f32 %v1084_v11, 0.0  ;;  %v1009_v22 = vrot.slane %v792_v14, 1 }
  0xeb   : > { %v899_v56 = vrot.slane %v697_v16, 7  ;;  %v9189_v16 = vand.u32 15, %v6817_v8 }
  0xec   : > { %v1113_v23 = vpack.c.bf16 %v1100_v19, %v1099_v18  ;;  %v746_v24 = vpop.f32.mrf.mxu1  ;;  %v1010_v30 = vsel %vm9199_vm2, %v1007_v63, %v1009_v22 }
  0xed   : > { %v1067_v41 = vadd.f32 %v1010_v30, %v953_v34  ;;  %v900_v2 = vsel %vm9196_vm0, %v897_v28, %v899_v56  ;;  %vm6829_vm11 = vcmp.lt.s32.totalorder %v9189_v16, 15  ;;  %v9268_v30 = vmov 0 }
  0xee   : > { %1297 = vmatmul.bf16.gmra.mxu3 %v1113_v23  ;;  %1346 = vmatmul.bf16.gmra.mxu0 %v1113_v23  ;;  %v939_v14 = vsel %vm6811_vm10, %v900_v2, 0.0  ;;  %v9269_v30 = vsel %vm6829_vm11, 4294967295, %v9268_v30  ;;  %v6909_v16 = vadd.s32 120, %v6677_v27 }
  0xef   : > { %1395 = vmatmul.bf16.gmra.mxu1 %v1113_v23  ;;  %v1085_v60 = vadd.f32 %v6711_v55, %v1067_v41  ;;  %v955_v19 = vadd.f32 %v939_v14, %v746_v24  ;;  %v6825_v23 = vadd.s32 80, %v6677_v27 }
  0xf1   : > { %v795_v40 = vpop.f32.mrf.mxu2  ;;  %v1101_v4 = vmax.f32 %v1085_v60, 0.0  ;;  %v9192_v24 = vand.u32 15, %v6825_v23 }
  0xf2   : > { %v1011_v43 = vrot.slane %v795_v40, 1  ;;  %v699_v45 = vpop.f32.mrf.mxu0 }
  0xf3   : > { %v901_v15 = vrot.slane %v699_v45, 7  ;;  %vm6841_vm12 = vcmp.ge.s32.totalorder %v9192_v24, 1 }
  0xf4   : > { %v1012_v50 = vsel %vm9199_vm2, %v1009_v22, %v1011_v43  ;;  %v748_v51 = vpop.f32.mrf.mxu1 }
  0xf5   : > { %v1052_v54 = vsel %vm6799_vm9, %v1012_v50, 0.0  ;;  %v902_v22 = vsel %vm9196_vm0, %v899_v56, %v901_v15 }
  0xf6   : > { %v1068_v57 = vadd.f32 %v1052_v54, %v954_v47  ;;  %v956_v40 = vadd.f32 %v902_v22, %v748_v51 }
  0xf8   : > { %v1086_v61 = vadd.f32 %v6711_v55, %v1068_v57 }
  0xf9   : > { %v797_v0 = vpop.f32.mrf.mxu2 }
  0xfa   : > { %v702_v3 = vpop.f32.mrf.mxu0  ;;  %v1102_v6 = vmax.f32 %v1086_v61, 0.0  ;;  %v1013_v9 = vrot.slane %v797_v0, 1 }
  0xfb   : > { %v903_v47 = vrot.slane %v702_v3, 7 }
  0xfc   : > { %v1114_v10 = vpack.c.bf16 %v1102_v6, %v1101_v4  ;;  %v751_v11 = vpop.f32.mrf.mxu1  ;;  %v1014_v18 = vsel %vm9199_vm2, %v1011_v43, %v1013_v9  ;;  %v6847_v4 = vadd.s32 88, %v6677_v27 }
  0xfd   : > { %v1069_v28 = vadd.f32 %v1014_v18, %v955_v19  ;;  %v904_v60 = vsel %vm9196_vm0, %v901_v15, %v903_v47 }
  0xfe   : > { %1302 = vmatmul.bf16.gmra.mxu3 %v1114_v10  ;;  %1351 = vmatmul.bf16.gmra.mxu0 %v1114_v10  ;;  %v9190_v18 = vand.u32 15, %v6847_v4 }
  0xff   : > { %1400 = vmatmul.bf16.gmra.mxu1 %v1114_v10  ;;  %v1087_v54 = vadd.f32 %v6711_v55, %v1069_v28 }
 0x100   : > { %vm6859_vm13 = vcmp.lt.s32.totalorder %v9190_v18, 15 }
 0x101   : > { %v800_v25 = vpop.f32.mrf.mxu2  ;;  %v1103_v0 = vmax.f32 %v1087_v54, 0.0 }
 0x102   : > { %v1015_v34 = vrot.slane %v800_v25, 1  ;;  %v704_v36 = vpop.f32.mrf.mxu0  ;;  %v6855_v25 = vadd.s32 96, %v6677_v27 }
 0x103   : > { %v905_v10 = vrot.slane %v704_v36, 7  ;;  %v9272_v36 = vmov 0 }
 0x104   : > { %v1016_v41 = vsel %vm9199_vm2, %v1013_v9, %v1015_v34  ;;  %v753_v43 = vpop.f32.mrf.mxu1  ;;  %v941_v9 = vsel %vm6841_vm12, %v904_v60, 0.0  ;;  %v9273_v36 = vsel %vm6859_vm13, 4294967295, %v9272_v36 }
 0x105   : > { %v1054_v45 = vsel %vm6829_vm11, %v1016_v41, 0.0  ;;  %v957_v15 = vadd.f32 %v941_v9, %v751_v11  ;;  %v906_v22 = vsel %vm9196_vm0, %v903_v47, %v905_v10  ;;  %v9191_v11 = vand.u32 15, %v6855_v25 }
 0x106   : > { %v1070_v50 = vadd.f32 %v1054_v45, %v956_v40 }
 0x107   : > { %vm6873_vm14 = vcmp.ge.s32.totalorder %v9191_v11, 1 }
 0x108   : > { %v1088_v56 = vadd.f32 %v6711_v55, %v1070_v50  ;;  %v958_v50 = vadd.f32 %v906_v22, %v753_v43 }
 0x109   : > { %v802_v51 = vpop.f32.mrf.mxu2 }
 0x10a   : > { %v707_v61 = vpop.f32.mrf.mxu0  ;;  %v1104_v2 = vmax.f32 %v1088_v56, 0.0  ;;  %v1017_v3 = vrot.slane %v802_v51, 1 }
 0x10b   : > { %v907_v54 = vrot.slane %v707_v61, 7  ;;  %v6879_v61 = vadd.s32 104, %v6677_v27 }
 0x10c   : > { %v1115_v6 = vpack.c.bf16 %v1104_v2, %v1103_v0  ;;  %v756_v14 = vpop.f32.mrf.mxu1  ;;  %v1018_v19 = vsel %vm9199_vm2, %v1015_v34, %v1017_v3  ;;  %v9274_v2 = vmov 0 }
 0x10d   : > { %v1071_v40 = vadd.f32 %v1018_v19, %v957_v15  ;;  %v9275_v2 = vsel %vm6873_vm14, 4294967295, %v9274_v2 }
 0x10e   : > { %1307 = vmatmul.bf16.gmra.mxu3 %v1115_v6  ;;  %1356 = vmatmul.bf16.gmra.mxu0 %v1115_v6 }
 0x10f   : > { %1405 = vmatmul.bf16.gmra.mxu1 %v1115_v6  ;;  %v1089_v51 = vadd.f32 %v6711_v55, %v1071_v40 }
 0x111   : > { %v805_v28 = vpop.f32.mrf.mxu2  ;;  %v1105_v9 = vmax.f32 %v1089_v51, 0.0 }
 0x112   : > { %v1019_v41 = vrot.slane %v805_v28, 1  ;;  %v6863_v45 = vpop.f32.mrf.mxu0 }
 0x113   : > { %v909_v40 = vrot.slane %v6863_v45, 7  ;;  %v6088_v45 = vld [vmem:[%s9178_s3 + $0x11c] sm:$0xf] }
 0x114   : > { %v1020_v34 = vsel %vm9199_vm2, %v1017_v3, %v1019_v41  ;;  %v758_v60 = vpop.f32.mrf.mxu1  ;;  %v908_v3 = vsel %vm9196_vm0, %v905_v10, %v907_v54  ;;  %v9194_v10 = vand.u32 15, %v6879_v61 }
 0x115   : > { %v1056_v47 = vsel %vm6859_vm13, %v1020_v34, 0.0  ;;  %v943_v28 = vsel %vm6873_vm14, %v908_v3, 0.0  ;;  %v6091_v3 = vld [vmem:[%s9178_s3 + $0x130] sm:$0xf0]  ;;  %vm9280_vm14 = vcmask 1040384  }
 0x116   : > { %v1072_v56 = vadd.f32 %v1056_v47, %v958_v50  ;;  %v6885_v50 = vadd.s32 112, %v6677_v27  ;;  %v5333_v47 = vld [vmem:[%s9178_s3 + $0x118] sm:$0xf]  ;;  %v959_v51 = vadd.f32 %v943_v28, %v756_v14  ;;  %vm6919_vm15 = vcmp.lt.s32.totalorder %v9194_v10, 15 }
 0x117   : > { %v9202_v10 = vand.u32 15, %v6909_v16 }
 0x118   : > { %v1090_v0 = vadd.f32 %v6711_v55, %v1072_v56  ;;  %v6090_v56 = vld [vmem:[%s9178_s3 + $0x128] sm:$0xf0] }
 0x119   : > { %v807_v43 = vpop.f32.mrf.mxu2 }
 0x11a   : > { %v712_v6 = vpop.f32.mrf.mxu0  ;;  %v1106_v19 = vmax.f32 %v1090_v0, 0.0  ;;  %v1021_v15 = vrot.slane %v807_v43, 1  ;;  %v5334_v0 = vor.u32 %v6090_v56, %v5333_v47  ;;  %v5335_v43 = vld [vmem:[%s9178_s3 + $0x12c] sm:$0xf0]  ;;  %v6089_v47 = vld [vmem:[%s9178_s3 + $0x124] sm:$0xf] }
 0x11b   : > { %v5338_v14 = vor.u32 %v6088_v45, %v5335_v43  ;;  %v5343_v56 = vld [vmem:[%s9178_s3 + $0x134] sm:$0xf0]  ;;  %v911_v43 = vrot.slane %v712_v6, 7 }
 0x11c   : > { %v1116_v22 = vpack.c.bf16 %v1106_v19, %v1105_v9  ;;  %v1022_v34 = vsel %vm9199_vm2, %v1019_v41, %v1021_v15  ;;  %v5341_v41 = vld [vmem:[%s9178_s3 + $0x120] sm:$0xf]  ;;  %v910_v9 = vsel %vm9196_vm0, %v907_v54, %v909_v40  ;;  %v761_v19 = vpop.f32.mrf.mxu1  ;;  %v9276_v54 = vmov 0  ;;  %1916 = vmatpush.bf16.msrb.mxu2 %v5334_v0 }
 0x11d   : > { %v5342_v28 = vor.u32 %v6091_v3, %v5341_v41  ;;  %v1073_v18 = vadd.f32 %v1022_v34, %v959_v51  ;;  %v9277_v54 = vsel %vm6919_vm15, 4294967295, %v9276_v54  ;;  %v5346_v45 = vor.u32 %v6089_v47, %v5343_v56  ;;  %1965 = vmatpush.bf16.msrb.mxu3 %v5338_v14  ;;  %v6085_v56 = vld [vmem:[%s9178_s3 + $0x100] sm:$0xf0] }
 0x11e   : > { %1312 = vmatmul.bf16.gmra.mxu3 %v1116_v22  ;;  %1361 = vmatmul.bf16.gmra.mxu0 %v1116_v22  ;;  %v9205_v41 = vand.u32 15, %v6885_v50  ;;  %v960_v3 = vadd.f32 %v910_v9, %v758_v60  ;;  %v912_v60 = vsel %vm9280_vm14, %v909_v40, %v911_v43 }
 0x11f   : > { %1410 = vmatmul.bf16.gmra.mxu1 %v1116_v22  ;;  %2014 = vmatpush.bf16.msra.mxu0 %v5342_v28 }
 0x120   : > { %2063 = vmatpush.bf16.msra.mxu1 %v5346_v45  ;;  %vm6931_vm0 = vcmp.ge.s32.totalorder %v9205_v41, 1  ;;  %v6083_v45 = vld [vmem:[%s9178_s3 + $0xf4] sm:$0xf] }
 0x121   : > { %v810_v22 = vpop.f32.mrf.mxu2  ;;  %v945_v14 = vsel %vm6931_vm0, %v912_v60, 0.0  ;;  %v5321_v60 = vld [vmem:[%s9178_s3 + $0xf8] sm:$0xf] }
 0x122   : > { %v1023_v11 = vrot.slane %v810_v22, 1  ;;  %v714_v24 = vpop.f32.mrf.mxu0  ;;  %v1091_v22 = vadd.f32 %v6711_v55, %v1073_v18  ;;  %v9282_v18 = vmov 0 }
 0x123   : > { %v913_v51 = vrot.slane %v714_v24, 7 }
 0x124   : > { %v1024_v29 = vsel %vm9199_vm2, %v1021_v15, %v1023_v11  ;;  %v6937_v15 = vrot.slane %v9214_v32, 1  ;;  %v763_v24 = vpop.f32.mrf.mxu1  ;;  %vm9281_vm2 = vmmov %vm9280_vm14  ;;  %v1107_v40 = vmax.f32 %v1091_v22, 0.0  ;;  %v5315_v22 = vld [vmem:[%s9178_s3 + $0x104] sm:$0xf0] }
 0x125   : > { %v1058_v34 = vsel %vm6919_vm15, %v1024_v29, 0.0  ;;  %v914_v9 = vsel %vm9281_vm2, %v911_v43, %v913_v51  ;;  %vm6943_vm15 = vcmp.lt.s32.totalorder %v9202_v10, 15  ;;  %vm9284_vm2 = vcmask 1046528  }
 0x126   : > { %v1074_v53 = vadd.f32 %v1058_v34, %v960_v3  ;;  %v9283_v18 = vsel %vm6943_vm15, 4294967295, %v9282_v18  ;;  %v962_v43 = vadd.f32 %v914_v9, %v763_v24  ;;  %vm9285_vm14 = vmmov %vm9284_vm2  ;;  %v5318_v9 = vor.u32 %v6083_v45, %v5315_v22  ;;  %v6078_v45 = vld [vmem:[%s9178_s3 + $0xcc] sm:$0xf] }
 0x128   : > { %v1092_v0 = vadd.f32 %v6711_v55, %v1074_v53  ;;  %v5313_v53 = vld [vmem:[%s9178_s3 + $0xf0] sm:$0xf]  ;;  %1966 = vmatpush.bf16.msrb.mxu3 %v5318_v9  ;;  %v5273_v9 = vld [vmem:[%s9178_s3 + $0xa0] sm:$0xf] }
 0x129   : > { %v812_v29 = vpop.f32.mrf.mxu2  ;;  %v5314_v51 = vor.u32 %v6085_v56, %v5313_v53  ;;  %v5323_v53 = vld [vmem:[%s9178_s3 + $0x10c] sm:$0xf0]  ;;  %v961_v56 = vadd.f32 %v945_v14, %v761_v19  ;;  %v5295_v14 = vld [vmem:[%s9178_s3 + $0xdc] sm:$0xf0] }
 0x12a   : > { %v1025_v28 = vrot.slane %v812_v29, 1  ;;  %v1108_v47 = vmax.f32 %v1092_v0, 0.0  ;;  %v6086_v0 = vld [vmem:[%s9178_s3 + $0x108] sm:$0xf0] }
 0x12b   : > { %1917 = vmatpush.bf16.msrb.mxu2 %v5314_v51  ;;  %v6081_v51 = vld [vmem:[%s9178_s3 + $0xe0] sm:$0xf0] }
 0x12c   : > { %v1028_v3 = vsel %vm9284_vm2, %v1025_v28, %v6937_v15  ;;  %v1117_v34 = vpack.c.bf16 %v1108_v47, %v1107_v40  ;;  %v1026_v29 = vsel %vm9285_vm14, %v1023_v11, %v1025_v28  ;;  %v5322_v40 = vor.u32 %v6086_v0, %v5321_v60  ;;  %v6084_v47 = vld [vmem:[%s9178_s3 + $0xfc] sm:$0xf]  ;;  %v5293_v11 = vld [vmem:[%s9178_s3 + $0xc8] sm:$0xf] }
 0x12d   : > { %v1060_v24 = vsel %vm6943_vm15, %v1028_v3, 0.0  ;;  %v5326_v10 = vor.u32 %v6084_v47, %v5323_v53  ;;  %v6080_v28 = vld [vmem:[%s9178_s3 + $0xd8] sm:$0xf0]  ;;  %v1075_v3 = vadd.f32 %v1026_v29, %v961_v56  ;;  %v5298_v60 = vor.u32 %v6078_v45, %v5295_v14  ;;  %v5303_v29 = vld [vmem:[%s9178_s3 + $0xe4] sm:$0xf0] }
 0x12e   : > { %1317 = vmatmul.bf16.gmra.mxu3 %v1117_v34  ;;  %1366 = vmatmul.bf16.gmra.mxu0 %v1117_v34  ;;  %v1076_v22 = vadd.f32 %v1060_v24, %v962_v43  ;;  %v5294_v19 = vor.u32 %v6080_v28, %v5293_v11  ;;  %v6079_v43 = vld [vmem:[%s9178_s3 + $0xd4] sm:$0xf]  ;;  %v5275_v11 = vld [vmem:[%s9178_s3 + $0xb4] sm:$0xf0]  ;;  %v5281_v28 = vld [vmem:[%s9178_s3 + $0xa8] sm:$0xf] }
 0x12f   : > { %1415 = vmatmul.bf16.gmra.mxu1 %v1117_v34  ;;  %2015 = vmatpush.bf16.msra.mxu0 %v5322_v40  ;;  %v5301_v34 = vld [vmem:[%s9178_s3 + $0xd0] sm:$0xf]  ;;  %v5306_v24 = vor.u32 %v6079_v43, %v5303_v29  ;;  %v6073_v40 = vld [vmem:[%s9178_s3 + $0xa4] sm:$0xf]  ;;  %v1093_v53 = vadd.f32 %v6711_v55, %v1075_v3  ;;  %v6076_v45 = vld [vmem:[%s9178_s3 + $0xb8] sm:$0xf0] }
 0x130   : > { %2064 = vmatpush.bf16.msra.mxu1 %v5326_v10  ;;  %v5302_v0 = vor.u32 %v6081_v51, %v5301_v34  ;;  %1918 = vmatpush.bf16.msrb.mxu2 %v5294_v19  ;;  %v6075_v10 = vld [vmem:[%s9178_s3 + $0xb0] sm:$0xf0]  ;;  %v1094_v47 = vadd.f32 %v6711_v55, %v1076_v22  ;;  %v5278_v19 = vor.u32 %v6073_v40, %v5275_v11  ;;  %v6074_v55 = vld [vmem:[%s9178_s3 + $0xac] sm:$0xf]  ;;  %v5283_v3 = vld [vmem:[%s9178_s3 + $0xbc] sm:$0xf0] }
 0x131   : > { %1967 = vmatpush.bf16.msrb.mxu3 %v5298_v60  ;;  %v5274_v56 = vor.u32 %v6075_v10, %v5273_v9  ;;  %v5282_v22 = vor.u32 %v6076_v45, %v5281_v28  ;;  %v5286_v14 = vor.u32 %v6074_v55, %v5283_v3  ;;  %v5253_v34 = vld [vmem:[%s9178_s3 + $0x78] sm:$0xf]  ;;  %v6070_v51 = vld [vmem:[%s9178_s3 + $0x88] sm:$0xf0]  ;;  %v6068_v60 = vld [vmem:[%s9178_s3 + $0x7c] sm:$0xf] }
 0x132   : > { %v1110_v43 = vmax.f32 %v1094_v47, 0.0  ;;  %v5254_v29 = vor.u32 %v6070_v51, %v5253_v34  ;;  %v5261_v9 = vld [vmem:[%s9178_s3 + $0x80] sm:$0xf]  ;;  %v6071_v40 = vld [vmem:[%s9178_s3 + $0x90] sm:$0xf0]  ;;  %vm9286_vm2 = vcmask 1040384  }
 0x133   : > { %2016 = vmatpush.bf16.msra.mxu0 %v5302_v0  ;;  %v1109_v0 = vmax.f32 %v1093_v53, 0.0  ;;  %v6069_v47 = vld [vmem:[%s9178_s3 + $0x84] sm:$0xf]  ;;  %v5263_v53 = vld [vmem:[%s9178_s3 + $0x94] sm:$0xf0]  ;;  %vm9287_vm15 = vmmov %vm9286_vm2 }
 0x134   : > { %2065 = vmatpush.bf16.msra.mxu1 %v5306_v24  ;;  %1919 = vmatpush.bf16.msrb.mxu2 %v5274_v56  ;;  %v5255_v24 = vld [vmem:[%s9178_s3 + $0x8c] sm:$0xf0]  ;;  %v5262_v56 = vor.u32 %v6071_v40, %v5261_v9  ;;  %v5266_v11 = vor.u32 %v6069_v47, %v5263_v53  ;;  %v6065_v45 = vld [vmem:[%s9178_s3 + $0x60] sm:$0xf0]  ;;  %v5235_v3 = vld [vmem:[%s9178_s3 + $0x64] sm:$0xf0] }
 0x135   : > { %1968 = vmatpush.bf16.msrb.mxu3 %v5278_v19  ;;  %v5258_v10 = vor.u32 %v6068_v60, %v5255_v24  ;;  %v5233_v28 = vld [vmem:[%s9178_s3 + $0x50] sm:$0xf]  ;;  %v6063_v19 = vld [vmem:[%s9178_s3 + $0x54] sm:$0xf]  ;;  %v6066_v34 = vld [vmem:[%s9178_s3 + $0x68] sm:$0xf0] }
 0x136   : > { %v5234_v55 = vor.u32 %v6065_v45, %v5233_v28  ;;  %v5238_v51 = vor.u32 %v6063_v19, %v5235_v3  ;;  %v5213_v24 = vld [vmem:[%s9178_s3 + $0x28] sm:$0xf]  ;;  %v6060_v9 = vld [vmem:[%s9178_s3 + $0x38] sm:$0xf0]  ;;  %v5215_v47 = vld [vmem:[%s9178_s3 + $0x3c] sm:$0xf0] }
 0x137   : > { %2017 = vmatpush.bf16.msra.mxu0 %v5282_v22  ;;  %v1118_v22 = vpack.c.bf16 %v1110_v43, %v1109_v0  ;;  %v6064_v0 = vld [vmem:[%s9178_s3 + $0x5c] sm:$0xf]  ;;  %v5243_v43 = vld [vmem:[%s9178_s3 + $0x6c] sm:$0xf0]  ;;  %v5214_v40 = vor.u32 %v6060_v9, %v5213_v24  ;;  %v6059_v45 = vld [vmem:[%s9178_s3 + $0x34] sm:$0xf] }
 0x138   : > { %2066 = vmatpush.bf16.msra.mxu1 %v5286_v14  ;;  %1920 = vmatpush.bf16.msrb.mxu2 %v5254_v29  ;;  %v5241_v14 = vld [vmem:[%s9178_s3 + $0x58] sm:$0xf]  ;;  %v5246_v29 = vor.u32 %v6064_v0, %v5243_v43  ;;  %v5221_v53 = vld [vmem:[%s9178_s3 + $0x30] sm:$0xf]  ;;  %v5223_v19 = vld [vmem:[%s9178_s3 + $0x44] sm:$0xf0] }
 0x139   : > { %1969 = vmatpush.bf16.msrb.mxu3 %v5258_v10  ;;  %v5242_v60 = vor.u32 %v6066_v34, %v5241_v14  ;;  %v6058_v10 = vld [vmem:[%s9178_s3 + $0x2c] sm:$0xf]  ;;  %v6055_v3 = vld [vmem:[%s9178_s3 + $0x10] sm:$0xf0]  ;;  %v6053_v14 = vld [vmem:[%s9178_s3 + $0x4] sm:$0xf] }
 0x13a   : > { %v6056_v0 = vld [vmem:[%s9178_s3 + $0x18] sm:$0xf0]  ;;  %v6054_v24 = vld [vmem:[%s9178_s3 + $0xc] sm:$0xf]  ;;  %v5203_v9 = vld [vmem:[%s9178_s3 + $0x1c] sm:$0xf0] }
 0x13b   : > { %2018 = vmatpush.bf16.msra.mxu0 %v5262_v56  ;;  %v6061_v56 = vld [vmem:[%s9178_s3 + $0x40] sm:$0xf0] }
 0x13c   : > { %2067 = vmatpush.bf16.msra.mxu1 %v5266_v11  ;;  %1921 = vmatpush.bf16.msrb.mxu2 %v5234_v55  ;;  %v5218_v11 = vor.u32 %v6058_v10, %v5215_v47  ;;  %v5222_v28 = vor.u32 %v6061_v56, %v5221_v53  ;;  %v5193_v55 = vld [vmem:[%s9178_s3] sm:$0xf]  ;;  %v5206_v10 = vor.u32 %v6054_v24, %v5203_v9 }
 0x13d   : > { %1970 = vmatpush.bf16.msrb.mxu3 %v5238_v51  ;;  %v5194_v34 = vor.u32 %v6055_v3, %v5193_v55  ;;  %v5195_v51 = vld [vmem:[%s9178_s3 + $0x14] sm:$0xf0]  ;;  %v7133_v24 = vld [vmem:[%s9187_s12 + $0x1] ss:$0 sm:$0xff] }
 0x13e   : > { %1322 = vmatmul.bf16.gmra.mxu3 %v1118_v22  ;;  %1371 = vmatmul.bf16.gmra.mxu0 %v1118_v22  ;;  %v5198_v43 = vor.u32 %v6053_v14, %v5195_v51 }
 0x13f   : > { %1420 = vmatmul.bf16.gmra.mxu1 %v1118_v22  ;;  %2019 = vmatpush.bf16.msra.mxu0 %v5242_v60  ;;  %v5226_v22 = vor.u32 %v6059_v45, %v5223_v19  ;;  %v5201_v60 = vld [vmem:[%s9178_s3 + $0x8] sm:$0xf] }
 0x140   : > { %2068 = vmatpush.bf16.msra.mxu1 %v5246_v29  ;;  %1922 = vmatpush.bf16.msrb.mxu2 %v5214_v40  ;;  %v5202_v29 = vor.u32 %v6056_v0, %v5201_v60 }
 0x141   : > { %1971 = vmatpush.bf16.msrb.mxu3 %v5218_v11 }
 0x143   : > { %2020 = vmatpush.bf16.msra.mxu0 %v5222_v28 }
 0x144   : > { %2069 = vmatpush.bf16.msra.mxu1 %v5226_v22  ;;  %1923 = vmatpush.bf16.msrb.mxu2 %v5194_v34 }
 0x145   : > { %1972 = vmatpush.bf16.msrb.mxu3 %v5198_v43 }
 0x147   : > { %2021 = vmatpush.bf16.msra.mxu0 %v5202_v29 }
 0x148   : > { %2070 = vmatpush.bf16.msra.mxu1 %v5206_v10 }
 0x14b   : > { %v1337_v40 = vpop.f32.mrf.mxu0 }
 0x14c   : > { %v1386_v47 = vpop.f32.mrf.mxu1 }
 0x14d   : > { %v1538_v55 = vrot.slane %v1386_v47, 1 }
 0x151   : > { %v1288_v53 = vpop.f32.mrf.mxu3 }
 0x152   : > { %v1442_v56 = vrot.slane %v1288_v53, 7 }
 0x153   : > { %v1339_v11 = vpop.f32.mrf.mxu0 }
 0x154   : > { %v1443_v28 = vsel %vm9286_vm2, %v6681_v33, %v1442_v56  ;;  %v1388_v45 = vpop.f32.mrf.mxu1  ;;  %vm9288_vm2 = vmmov %vm9285_vm14 }
 0x155   : > { %v1490_v19 = vsel %vm6685_vm1, %v1443_v28, 0.0  ;;  %v1539_v22 = vrot.slane %v1388_v45, 1 }
 0x156   : > { %v1506_v3 = vadd.f32 %v1490_v19, %v1337_v40 }
 0x157   : > { %v1540_v34 = vsel %vm9285_vm14, %v1538_v55, %v1539_v22  ;;  %vm9289_vm14 = vmmov %vm9288_vm2 }
 0x158   : > { %v1602_v29 = vadd.f32 %v1540_v34, %v1506_v3 }
 0x159   : > { %v1290_v14 = vpop.f32.mrf.mxu3 }
 0x15a   : > { %v1444_v51 = vrot.slane %v1290_v14, 7  ;;  %v1620_v47 = vadd.f32 %v7133_v24, %v1602_v29 }
 0x15b   : > { %v1342_v60 = vpop.f32.mrf.mxu0 }
 0x15c   : > { %v1445_v0 = vsel %vm9287_vm15, %v1442_v56, %v1444_v51  ;;  %v1391_v43 = vpop.f32.mrf.mxu1  ;;  %v1636_v34 = vmax.f32 %v1620_v47, 0.0 }
 0x15d   : > { %v1507_v9 = vadd.f32 %v1445_v0, %v1339_v11  ;;  %v1541_v10 = vrot.slane %v1391_v43, 1 }
 0x15f   : > { %v1542_v53 = vsel %vm9288_vm2, %v1539_v22, %v1541_v10  ;;  %vm9290_vm2 = vmmov %vm9287_vm15 }
 0x160   : > { %v1587_v40 = vsel %vm6704_vm3, %v1542_v53, 0.0 }
 0x161   : > { %v1603_v28 = vadd.f32 %v1587_v40, %v1507_v9  ;;  %v1293_v45 = vpop.f32.mrf.mxu3 }
 0x162   : > { %v1446_v19 = vrot.slane %v1293_v45, 7 }
 0x163   : > { %v1621_v56 = vadd.f32 %v7133_v24, %v1603_v28  ;;  %v1344_v55 = vpop.f32.mrf.mxu0 }
 0x164   : > { %v1447_v3 = vsel %vm9287_vm15, %v1444_v51, %v1446_v19  ;;  %v1393_v14 = vpop.f32.mrf.mxu1  ;;  %vm9291_vm15 = vmmov %vm9289_vm14 }
 0x165   : > { %v1637_v41 = vmax.f32 %v1621_v56, 0.0  ;;  %v1492_v11 = vsel %vm6721_vm4, %v1447_v3, 0.0  ;;  %v1543_v22 = vrot.slane %v1393_v14, 1 }
 0x166   : > { %v1508_v43 = vadd.f32 %v1492_v11, %v1342_v60 }
 0x167   : > { %v7143_v0 = vpack.c.bf16 %v1637_v41, %v1636_v34  ;;  %v1544_v9 = vsel %vm9289_vm14, %v1541_v10, %v1543_v22  ;;  %vm9292_vm14 = vmmov %vm9290_vm2 }
 0x168   : > { %v1604_v28 = vadd.f32 %v1544_v9, %v1508_v43 }
 0x169   : > { %1924 = vmatmul.bf16.vlgmr.msrb.gmra.mxu2 %v7143_v0  ;;  %1973 = vmatmul.bf16.vlgmr.msrb.gmra.mxu3 %v7143_v0  ;;  %v1295_v29 = vpop.f32.mrf.mxu3 }
 0x16a   : > { %2022 = vmatmul.bf16.vlgmr.msra.gmra.mxu0 %v7143_v0  ;;  %2071 = vmatmul.bf16.vlgmr.msra.gmra.mxu1 %v7143_v0  ;;  %v1448_v51 = vrot.slane %v1295_v29, 7  ;;  %v1622_v3 = vadd.f32 %v7133_v24, %v1604_v28 }
 0x16b   : > { %v1347_v53 = vpop.f32.mrf.mxu0 }
 0x16c   : > { %v1449_v40 = vsel %vm9290_vm2, %v1446_v19, %v1448_v51  ;;  %v1396_v47 = vpop.f32.mrf.mxu1  ;;  %v1638_v46 = vmax.f32 %v1622_v3, 0.0  ;;  %vm9293_vm2 = vmmov %vm9291_vm15 }
 0x16d   : > { %v1509_v41 = vadd.f32 %v1449_v40, %v1344_v55  ;;  %v1545_v45 = vrot.slane %v1396_v47, 1 }
 0x16f   : > { %v1546_v60 = vsel %vm9291_vm15, %v1543_v22, %v1545_v45  ;;  %vm9294_vm15 = vmmov %vm9292_vm14 }
 0x170   : > { %v1589_v56 = vsel %vm6739_vm5, %v1546_v60, 0.0 }
 0x171   : > { %v1605_v10 = vadd.f32 %v1589_v56, %v1509_v41  ;;  %v1298_v14 = vpop.f32.mrf.mxu3 }
 0x172   : > { %v1450_v34 = vrot.slane %v1298_v14, 7 }
 0x173   : > { %v1623_v11 = vadd.f32 %v7133_v24, %v1605_v10  ;;  %v1349_v29 = vpop.f32.mrf.mxu0 }
 0x174   : > { %v1451_v13 = vsel %vm9292_vm14, %v1448_v51, %v1450_v34  ;;  %v1398_v19 = vpop.f32.mrf.mxu1  ;;  %vm9295_vm14 = vmmov %vm9293_vm2 }
 0x175   : > { %v1639_v43 = vmax.f32 %v1623_v11, 0.0  ;;  %v1494_v55 = vsel %vm6751_vm6, %v1451_v13, 0.0  ;;  %v1547_v22 = vrot.slane %v1398_v19, 1 }
 0x176   : > { %v1510_v40 = vadd.f32 %v1494_v55, %v1347_v53 }
 0x177   : > { %v7159_v9 = vpack.c.bf16 %v1639_v43, %v1638_v46  ;;  %v1548_v28 = vsel %vm9293_vm2, %v1545_v45, %v1547_v22  ;;  %vm9296_vm2 = vmmov %vm9294_vm15 }
 0x178   : > { %v1606_v56 = vadd.f32 %v1548_v28, %v1510_v40 }
 0x179   : > { %1929 = vmatmul.bf16.gmra.mxu2 %v7159_v9  ;;  %1978 = vmatmul.bf16.gmra.mxu3 %v7159_v9  ;;  %v1300_v47 = vpop.f32.mrf.mxu3 }
 0x17a   : > { %2027 = vmatmul.bf16.gmra.mxu0 %v7159_v9  ;;  %2076 = vmatmul.bf16.gmra.mxu1 %v7159_v9  ;;  %v1452_v51 = vrot.slane %v1300_v47, 7  ;;  %v1624_v14 = vadd.f32 %v7133_v24, %v1606_v56 }
 0x17b   : > { %v1352_v41 = vpop.f32.mrf.mxu0 }
 0x17c   : > { %v1453_v60 = vsel %vm9294_vm15, %v1450_v34, %v1452_v51  ;;  %v1401_v13 = vpop.f32.mrf.mxu1  ;;  %v1640_v48 = vmax.f32 %v1624_v14, 0.0  ;;  %vm9297_vm15 = vmmov %vm9295_vm14 }
 0x17d   : > { %v1511_v46 = vadd.f32 %v1453_v60, %v1349_v29  ;;  %v1549_v3 = vrot.slane %v1401_v13, 1 }
 0x17f   : > { %v1550_v53 = vsel %vm9295_vm14, %v1547_v22, %v1549_v3  ;;  %vm9298_vm14 = vmmov %vm9296_vm2 }
 0x180   : > { %v1591_v10 = vsel %vm6769_vm7, %v1550_v53, 0.0 }
 0x181   : > { %v1607_v45 = vadd.f32 %v1591_v10, %v1511_v46  ;;  %v1303_v11 = vpop.f32.mrf.mxu3 }
 0x182   : > { %v1454_v19 = vrot.slane %v1303_v11, 7 }
 0x183   : > { %v1625_v43 = vadd.f32 %v7133_v24, %v1607_v45  ;;  %v1354_v55 = vpop.f32.mrf.mxu0 }
 0x184   : > { %v1455_v47 = vsel %vm9296_vm2, %v1452_v51, %v1454_v19  ;;  %v1403_v34 = vpop.f32.mrf.mxu1  ;;  %vm9299_vm2 = vmmov %vm9297_vm15 }
 0x185   : > { %v1641_v40 = vmax.f32 %v1625_v43, 0.0  ;;  %v1496_v29 = vsel %vm6781_vm8, %v1455_v47, 0.0  ;;  %v1551_v22 = vrot.slane %v1403_v34, 1 }
 0x186   : > { %v1512_v60 = vadd.f32 %v1496_v29, %v1352_v41 }
 0x187   : > { %v7175_v28 = vpack.c.bf16 %v1641_v40, %v1640_v48  ;;  %v1552_v56 = vsel %vm9297_vm15, %v1549_v3, %v1551_v22  ;;  %vm9300_vm15 = vmmov %vm9298_vm14 }
 0x188   : > { %v1608_v14 = vadd.f32 %v1552_v56, %v1512_v60 }
 0x189   : > { %1934 = vmatmul.bf16.gmra.mxu2 %v7175_v28  ;;  %1983 = vmatmul.bf16.gmra.mxu3 %v7175_v28  ;;  %v1305_v13 = vpop.f32.mrf.mxu3 }
 0x18a   : > { %2032 = vmatmul.bf16.gmra.mxu0 %v7175_v28  ;;  %2081 = vmatmul.bf16.gmra.mxu1 %v7175_v28  ;;  %v1456_v51 = vrot.slane %v1305_v13, 7  ;;  %v1626_v43 = vadd.f32 %v7133_v24, %v1608_v14 }
 0x18b   : > { %v1357_v46 = vpop.f32.mrf.mxu0 }
 0x18c   : > { %v1457_v53 = vsel %vm9298_vm14, %v1454_v19, %v1456_v51  ;;  %v1406_v10 = vpop.f32.mrf.mxu1  ;;  %v1642_v5 = vmax.f32 %v1626_v43, 0.0  ;;  %vm9301_vm14 = vmmov %vm9299_vm2 }
 0x18d   : > { %v1513_v48 = vadd.f32 %v1457_v53, %v1354_v55  ;;  %v1553_v45 = vrot.slane %v1406_v10, 1 }
 0x18f   : > { %v1554_v41 = vsel %vm9299_vm2, %v1551_v22, %v1553_v45  ;;  %vm9302_vm2 = vmmov %vm9300_vm15 }
 0x190   : > { %v1593_v11 = vsel %vm6799_vm9, %v1554_v41, 0.0 }
 0x191   : > { %v1609_v3 = vadd.f32 %v1593_v11, %v1513_v48  ;;  %v1308_v47 = vpop.f32.mrf.mxu3 }
 0x192   : > { %v1458_v34 = vrot.slane %v1308_v47, 7 }
 0x193   : > { %v1627_v40 = vadd.f32 %v7133_v24, %v1609_v3  ;;  %v1359_v29 = vpop.f32.mrf.mxu0 }
 0x194   : > { %v1459_v13 = vsel %vm9300_vm15, %v1456_v51, %v1458_v34  ;;  %v1408_v19 = vpop.f32.mrf.mxu1  ;;  %vm9303_vm15 = vmmov %vm9301_vm14 }
 0x195   : > { %v1643_v60 = vmax.f32 %v1627_v40, 0.0  ;;  %v1498_v55 = vsel %vm6811_vm10, %v1459_v13, 0.0  ;;  %v1555_v22 = vrot.slane %v1408_v19, 1 }
 0x196   : > { %v1514_v53 = vadd.f32 %v1498_v55, %v1357_v46 }
 0x197   : > { %v7191_v56 = vpack.c.bf16 %v1643_v60, %v1642_v5  ;;  %v1556_v14 = vsel %vm9301_vm14, %v1553_v45, %v1555_v22  ;;  %vm9304_vm14 = vmmov %vm9302_vm2 }
 0x198   : > { %v1610_v43 = vadd.f32 %v1556_v14, %v1514_v53 }
 0x199   : > { %1939 = vmatmul.bf16.gmra.mxu2 %v7191_v56  ;;  %1988 = vmatmul.bf16.gmra.mxu3 %v7191_v56  ;;  %v1310_v10 = vpop.f32.mrf.mxu3 }
 0x19a   : > { %2037 = vmatmul.bf16.gmra.mxu0 %v7191_v56  ;;  %2086 = vmatmul.bf16.gmra.mxu1 %v7191_v56  ;;  %v1460_v51 = vrot.slane %v1310_v10, 7  ;;  %v1628_v40 = vadd.f32 %v7133_v24, %v1610_v43 }
 0x19b   : > { %v1362_v48 = vpop.f32.mrf.mxu0 }
 0x19c   : > { %v1461_v41 = vsel %vm9302_vm2, %v1458_v34, %v1460_v51  ;;  %v1411_v11 = vpop.f32.mrf.mxu1  ;;  %v1644_v26 = vmax.f32 %v1628_v40, 0.0  ;;  %vm9305_vm2 = vmmov %vm9303_vm15 }
 0x19d   : > { %v1515_v5 = vadd.f32 %v1461_v41, %v1359_v29  ;;  %v1557_v3 = vrot.slane %v1411_v11, 1  ;;  %v5349_v41 = vld [vmem:[%s9178_s3 + $0x128] sm:$0xf]  ;;  %v6092_v11 = vld [vmem:[%s9178_s3 + $0x138] sm:$0xf0] }
 0x19f   : > { %v1558_v46 = vsel %vm9303_vm15, %v1555_v22, %v1557_v3  ;;  %vm9306_vm15 = vmmov %vm9304_vm14 }
 0x1a0   : > { %v1595_v47 = vsel %vm6829_vm11, %v1558_v46, 0.0  ;;  %vm9310_vm11 = vnez %v9277_v54 }
 0x1a1   : > { %v1611_v45 = vadd.f32 %v1595_v47, %v1515_v5  ;;  %v1313_v13 = vpop.f32.mrf.mxu3  ;;  %v5350_v5 = vor.u32 %v6092_v11, %v5349_v41  ;;  %v6082_v41 = vld [vmem:[%s9178_s3 + $0xe8] sm:$0xf0] }
 0x1a2   : > { %v1462_v19 = vrot.slane %v1313_v13, 7 }
 0x1a3   : > { %v1629_v60 = vadd.f32 %v7133_v24, %v1611_v45  ;;  %v1364_v10 = vpop.f32.mrf.mxu0  ;;  %2112 = vmatpush.bf16.msra.mxu2 %v5350_v5  ;;  %v6087_v45 = vld [vmem:[%s9178_s3 + $0x110] sm:$0xf0] }
 0x1a4   : > { %v1463_v55 = vsel %vm9304_vm14, %v1460_v51, %v1462_v19  ;;  %v1413_v34 = vpop.f32.mrf.mxu1  ;;  %vm9307_vm14 = vmmov %vm9305_vm2 }
 0x1a5   : > { %v1645_v53 = vmax.f32 %v1629_v60, 0.0  ;;  %v1500_v29 = vsel %vm6841_vm12, %v1463_v55, 0.0  ;;  %v1559_v22 = vrot.slane %v1413_v34, 1 }
 0x1a6   : > { %v1516_v43 = vadd.f32 %v1500_v29, %v1362_v48  ;;  %v5329_v48 = vld [vmem:[%s9178_s3 + $0x100] sm:$0xf]  ;;  %v5309_v29 = vld [vmem:[%s9178_s3 + $0xd8] sm:$0xf] }
 0x1a7   : > { %v7207_v14 = vpack.c.bf16 %v1645_v53, %v1644_v26  ;;  %v1560_v46 = vsel %vm9305_vm2, %v1557_v3, %v1559_v22  ;;  %v5330_v55 = vor.u32 %v6087_v45, %v5329_v48  ;;  %vm9308_vm2 = vmmov %vm9306_vm15 }
 0x1a8   : > { %v1612_v13 = vadd.f32 %v1560_v46, %v1516_v43  ;;  %v5289_v46 = vld [vmem:[%s9178_s3 + $0xb0] sm:$0xf] }
 0x1a9   : > { %1944 = vmatmul.bf16.gmra.mxu2 %v7207_v14  ;;  %1993 = vmatmul.bf16.gmra.mxu3 %v7207_v14  ;;  %v1315_v51 = vpop.f32.mrf.mxu3 }
 0x1aa   : > { %2042 = vmatmul.bf16.gmra.mxu0 %v7207_v14  ;;  %2091 = vmatmul.bf16.gmra.mxu1 %v7207_v14  ;;  %v1464_v26 = vrot.slane %v1315_v51, 7  ;;  %v1630_v11 = vadd.f32 %v7133_v24, %v1612_v13  ;;  %v5310_v51 = vor.u32 %v6082_v41, %v5309_v29 }
 0x1ab   : > { %v1367_v34 = vpop.f32.mrf.mxu0  ;;  %2113 = vmatpush.bf16.msra.mxu2 %v5330_v55 }
 0x1ac   : > { %v1465_v47 = vsel %vm9306_vm15, %v1462_v19, %v1464_v26  ;;  %v1416_v40 = vpop.f32.mrf.mxu1  ;;  %v1646_v13 = vmax.f32 %v1630_v11, 0.0  ;;  %vm9309_vm15 = vnez %v9275_v2  ;;  %v9363_v2 = vmov 0.0  }
 0x1ad   : > { %v1517_v60 = vadd.f32 %v1465_v47, %v1364_v10  ;;  %v1561_v3 = vrot.slane %v1416_v40, 1  ;;  %v6077_v47 = vld [vmem:[%s9178_s3 + $0xc0] sm:$0xf0] }
 0x1ae   : > { %v5290_v45 = vor.u32 %v6077_v47, %v5289_v46  ;;  %v6067_v46 = vld [vmem:[%s9178_s3 + $0x70] sm:$0xf0] }
 0x1af   : > { %v1562_v53 = vsel %vm9307_vm14, %v1559_v22, %v1561_v3  ;;  %2114 = vmatpush.bf16.msra.mxu2 %v5310_v51 }
 0x1b0   : > { %v1597_v19 = vsel %vm6859_vm13, %v1562_v53, 0.0  ;;  %vm9312_vm13 = vcmask 1040384  }
 0x1b1   : > { %v1613_v10 = vadd.f32 %v1597_v19, %v1517_v60  ;;  %v1318_v43 = vpop.f32.mrf.mxu3 }
 0x1b2   : > { %v1466_v5 = vrot.slane %v1318_v43, 7 }
 0x1b3   : > { %v1631_v22 = vadd.f32 %v7133_v24, %v1613_v10  ;;  %2115 = vmatpush.bf16.msra.mxu2 %v5290_v45  ;;  %v1369_v41 = vpop.f32.mrf.mxu0  ;;  %v5269_v10 = vld [vmem:[%s9178_s3 + $0x88] sm:$0xf]  ;;  %v5229_v45 = vld [vmem:[%s9178_s3 + $0x38] sm:$0xf] }
 0x1b4   : > { %v1467_v40 = vsel %vm9308_vm2, %v1464_v26, %v1466_v5  ;;  %v1418_v48 = vpop.f32.mrf.mxu1  ;;  %v6072_v26 = vld [vmem:[%s9178_s3 + $0x98] sm:$0xf0] }
 0x1b5   : > { %v1647_v60 = vmax.f32 %v1631_v22, 0.0  ;;  %v1502_v55 = vsel %vm9309_vm15, %v1467_v40, 0.0  ;;  %v1563_v53 = vrot.slane %v1418_v48, 1  ;;  %v5270_v51 = vor.u32 %v6072_v26, %v5269_v10  ;;  %v5249_v22 = vld [vmem:[%s9178_s3 + $0x60] sm:$0xf] }
 0x1b6   : > { %v1518_v29 = vadd.f32 %v1502_v55, %v1367_v34 }
 0x1b7   : > { %v7247_v19 = vpack.c.bf16 %v1647_v60, %v1646_v13  ;;  %v1564_v11 = vsel %vm9307_vm14, %v1561_v3, %v1563_v53  ;;  %2116 = vmatpush.bf16.msra.mxu2 %v5270_v51  ;;  %v5250_v3 = vor.u32 %v6067_v46, %v5249_v22  ;;  %v6062_v13 = vld [vmem:[%s9178_s3 + $0x48] sm:$0xf0] }
 0x1b8   : > { %v1614_v47 = vadd.f32 %v1564_v11, %v1518_v29  ;;  %v5230_v26 = vor.u32 %v6062_v13, %v5229_v45 }
 0x1b9   : > { %1949 = vmatmul.bf16.gmra.mxu2 %v7247_v19  ;;  %1998 = vmatmul.bf16.gmra.mxu3 %v7247_v19  ;;  %v1320_v43 = vpop.f32.mrf.mxu3 }
 0x1ba   : > { %2047 = vmatmul.bf16.gmra.mxu0 %v7247_v19  ;;  %2096 = vmatmul.bf16.gmra.mxu1 %v7247_v19  ;;  %v1468_v34 = vrot.slane %v1320_v43, 7  ;;  %v1632_v43 = vadd.f32 %v7133_v24, %v1614_v47 }
 0x1bb   : > { %2117 = vmatpush.bf16.msra.mxu2 %v5250_v3  ;;  %v1372_v51 = vpop.f32.mrf.mxu0  ;;  %v6057_v3 = vld [vmem:[%s9178_s3 + $0x20] sm:$0xf0] }
 0x1bc   : > { %v1469_v40 = vsel %vm9308_vm2, %v1466_v5, %v1468_v34  ;;  %v1421_v48 = vpop.f32.mrf.mxu1  ;;  %v1648_v59 = vmax.f32 %v1632_v43, 0.0 }
 0x1bd   : > { %v1519_v60 = vadd.f32 %v1469_v40, %v1369_v41  ;;  %v1565_v55 = vrot.slane %v1421_v48, 1 }
 0x1bf   : > { %v1566_v10 = vsel %vm9307_vm14, %v1563_v53, %v1565_v55  ;;  %2118 = vmatpush.bf16.msra.mxu2 %v5230_v26  ;;  %v5209_v53 = vld [vmem:[%s9178_s3 + $0x10] sm:$0xf] }
 0x1c0   : > { %v1599_v5 = vsel %vm9310_vm11, %v1566_v10, 0.0  ;;  %v5210_v13 = vor.u32 %v6057_v3, %v5209_v53  ;;  %vm9315_vm11 = vcmask 1040384  }
 0x1c1   : > { %v1615_v29 = vadd.f32 %v1599_v5, %v1519_v60  ;;  %v1323_v11 = vpop.f32.mrf.mxu3 }
 0x1c2   : > { %v1470_v22 = vrot.slane %v1323_v11, 7 }
 0x1c3   : > { %v1633_v46 = vadd.f32 %v7133_v24, %v1615_v29  ;;  %2119 = vmatpush.bf16.msra.mxu2 %v5210_v13 }
 0x1c4   : > { %v1471_v41 = vsel %vm9308_vm2, %v1468_v34, %v1470_v22  ;;  %v1423_v40 = vpop.f32.mrf.mxu1  ;;  %vm9311_vm2 = vmmov %vm9307_vm14 }
 0x1c5   : > { %v1649_v47 = vmax.f32 %v1633_v46, 0.0  ;;  %v1504_v48 = vsel %vm6931_vm0, %v1471_v41, 0.0  ;;  %v1567_v45 = vrot.slane %v1423_v40, 1 }
 0x1c6   : > { %v1520_v10 = vadd.f32 %v1504_v48, %v1372_v51 }
 0x1c7   : > { %v7287_v60 = vpack.c.bf16 %v1649_v47, %v1648_v59  ;;  %v1568_v34 = vsel %vm9307_vm14, %v1565_v55, %v1567_v45  ;;  %v1569_v5 = vsel %vm9311_vm2, %v1567_v45, %v6937_v15  ;;  %v1374_v59 = vpop.f32.mrf.mxu0  ;;  %vm9313_vm14 = vnez %v9283_v18 }
 0x1c8   : > { %v1616_v29 = vadd.f32 %v1568_v34, %v1520_v10  ;;  %v1601_v55 = vsel %vm9313_vm14, %v1569_v5, 0.0  ;;  %v7309_v45 = vrot.slane %v9214_v32, 6  ;;  %vm2161_vm2 = vcmp.ge.s32.totalorder %v832_v31, 2 }
 0x1c9   : > { %1954 = vmatmul.bf16.gmra.mxu2 %v7287_v60  ;;  %2003 = vmatmul.bf16.gmra.mxu3 %v7287_v60  ;;  %v1325_v26 = vpop.f32.mrf.mxu3  ;;  %vm9316_vm14 = vcmask 1046528  }
 0x1ca   : > { %2052 = vmatmul.bf16.gmra.mxu0 %v7287_v60  ;;  %2101 = vmatmul.bf16.gmra.mxu1 %v7287_v60  ;;  %v1472_v43 = vrot.slane %v1325_v26, 7  ;;  %v1634_v46 = vadd.f32 %v7133_v24, %v1616_v29  ;;  %9314 = vst [vmem:[#allocation11_spill] sm:$0xff] %v7309_v45 }
 0x1cc   : > { %v1473_v11 = vsel %vm9312_vm13, %v1470_v22, %v1472_v43  ;;  %v1650_v53 = vmax.f32 %v1634_v46, 0.0  ;;  %vm9235_vm13 = vcmask 1041408  }
 0x1cd   : > { %v1521_v51 = vadd.f32 %v1473_v11, %v1374_v59 }
 0x1cf   : > { %v1617_v41 = vadd.f32 %v1601_v55, %v1521_v51 }
 0x1d1   : > { %v1635_v40 = vadd.f32 %v7133_v24, %v1617_v41 }
 0x1d3   : > { %v1651_v3 = vmax.f32 %v1635_v40, 0.0 }
 0x1d5   : > { %v7301_v47 = vpack.c.bf16 %v1651_v3, %v1650_v53 }
 0x1d9   : > { %1959 = vmatmul.bf16.gmra.mxu2 %v7301_v47  ;;  %2008 = vmatmul.bf16.gmra.mxu3 %v7301_v47 }
 0x1da   : > { %2057 = vmatmul.bf16.gmra.mxu0 %v7301_v47  ;;  %2106 = vmatmul.bf16.gmra.mxu1 %v7301_v47 }
 0x1e7   : > { %v2023_v22 = vpop.f32.mrf.mxu0  ;;  %v2072_v48 = vpop.f32.mrf.mxu1 }
 0x1e8   : > { %v2387_v55 = vrot.slane %v2072_v48, 1 }
 0x1e9   : > { %2120 = vmatmul.bf16.vlgmr.msra.gmra.mxu2 %v7143_v0 }
 0x1ec   : > { %v1925_v24 = vpop.f32.mrf.mxu2  ;;  %v1974_v13 = vpop.f32.mrf.mxu3 }
 0x1ed   : > { %v2195_v10 = vrot.slane %v1925_v24, 6  ;;  %v2275_v34 = vrot.slane %v1974_v13, 7 }
 0x1ef   : > { %v2196_v26 = vsel %vm9235_vm13, %v7309_v45, %v2195_v10  ;;  %v2276_v43 = vsel %vm9315_vm11, %v6681_v33, %v2275_v34  ;;  %v2025_v5 = vpop.f32.mrf.mxu0  ;;  %v2074_v29 = vpop.f32.mrf.mxu1 }
 0x1f0   : > { %v2243_v0 = vsel %vm2161_vm2, %v2196_v26, 0.0  ;;  %v2323_v59 = vsel %vm6685_vm1, %v2276_v43, 0.0  ;;  %v2388_v11 = vrot.slane %v2074_v29, 1  ;;  %vm9317_vm1 = vmmov %vm9316_vm14 }
 0x1f1   : > { %v2339_v51 = vadd.f32 %v2323_v59, %v2243_v0  ;;  %vm9319_vm2 = vmmov %vm9315_vm11 }
 0x1f2   : > { %v2389_v31 = vsel %vm9316_vm14, %v2387_v55, %v2388_v11 }
 0x1f3   : > { %v2355_v46 = vadd.f32 %v2339_v51, %v2023_v22 }
 0x1f4   : > { %v1927_v41 = vpop.f32.mrf.mxu2  ;;  %v1976_v40 = vpop.f32.mrf.mxu3 }
 0x1f5   : > { %v2197_v53 = vrot.slane %v1927_v41, 6  ;;  %v2277_v3 = vrot.slane %v1976_v40, 7  ;;  %v7320_v24 = vadd.f32 %v2389_v31, %v2355_v46 }
 0x1f7   : > { %v2198_v13 = vsel %vm9235_vm13, %v2195_v10, %v2197_v53  ;;  %v2278_v32 = vsel %vm9315_vm11, %v2275_v34, %v2277_v3  ;;  %v2028_v26 = vpop.f32.mrf.mxu0  ;;  %v2077_v45 = vpop.f32.mrf.mxu1  ;;  %v9318_v10 = vand.u32 15, %v6700_v49  ;;  %vm9321_vm11 = vmmov %vm9319_vm2 }
 0x1f8   : > { %v2340_v35 = vadd.f32 %v2278_v32, %v2198_v13  ;;  %v2390_v43 = vrot.slane %v2077_v45, 1 }
 0x1f9   : > { %2125 = vmatmul.bf16.gmra.mxu2 %v7159_v9  ;;  %vm2163_vm14 = vcmp.ge.s32.totalorder %v9318_v10, 2 }
 0x1fa   : > { %v2391_v22 = vsel %vm9317_vm1, %v2388_v11, %v2390_v43  ;;  %v2356_v48 = vadd.f32 %v2340_v35, %v2025_v5 }
 0x1fb   : > { %v2436_v29 = vsel %vm6704_vm3, %v2391_v22, 0.0  ;;  %vm9320_vm3 = vmmov %vm9317_vm1 }
 0x1fc   : > { %v1930_v0 = vpop.f32.mrf.mxu2  ;;  %v1979_v59 = vpop.f32.mrf.mxu3  ;;  %v7328_v51 = vadd.f32 %v2436_v29, %v2356_v48 }
 0x1fd   : > { %v2199_v34 = vrot.slane %v1930_v0, 6  ;;  %v2279_v55 = vrot.slane %v1979_v59, 7 }
 0x1ff   : > { %v2200_v32 = vsel %vm9235_vm13, %v2197_v53, %v2199_v34  ;;  %v2280_v45 = vsel %vm9319_vm2, %v2277_v3, %v2279_v55  ;;  %v2030_v9 = vpop.f32.mrf.mxu0  ;;  %v2079_v46 = vpop.f32.mrf.mxu1 }
 0x200   : > { %v2245_v11 = vsel %vm2163_vm14, %v2200_v32, 0.0  ;;  %v2325_v52 = vsel %vm6721_vm4, %v2280_v45, 0.0  ;;  %v2392_v5 = vrot.slane %v2079_v46, 1  ;;  %vm9322_vm4 = vmmov %vm9317_vm1 }
 0x201   : > { %v2341_v31 = vadd.f32 %v2325_v52, %v2245_v11  ;;  %vm9324_vm14 = vmmov %vm9319_vm2 }
 0x202   : > { %v2393_v40 = vsel %vm9320_vm3, %v2390_v43, %v2392_v5 }
 0x203   : > { %v2357_v41 = vadd.f32 %v2341_v31, %v2028_v26 }
 0x204   : > { %v1932_v13 = vpop.f32.mrf.mxu2  ;;  %v1981_v35 = vpop.f32.mrf.mxu3 }
 0x205   : > { %v2201_v22 = vrot.slane %v1932_v13, 6  ;;  %v2281_v48 = vrot.slane %v1981_v35, 7  ;;  %v7337_v29 = vadd.f32 %v2393_v40, %v2357_v41 }
 0x207   : > { %v2202_v53 = vsel %vm9235_vm13, %v2199_v34, %v2201_v22  ;;  %v2282_v3 = vsel %vm9321_vm11, %v2279_v55, %v2281_v48  ;;  %v2082_v0 = vpop.f32.mrf.mxu1  ;;  %v2033_v1 = vpop.f32.mrf.mxu0  ;;  %v9323_v34 = vand.u32 15, %v6735_v17  ;;  %vm9328_vm11 = vmmov %vm9319_vm2 }
 0x208   : > { %v2342_v59 = vadd.f32 %v2282_v3, %v2202_v53  ;;  %v2394_v10 = vrot.slane %v2082_v0, 1 }
 0x209   : > { %2130 = vmatmul.bf16.gmra.mxu2 %v7175_v28  ;;  %vm2165_vm1 = vcmp.ge.s32.totalorder %v9323_v34, 2 }
 0x20a   : > { %v2395_v26 = vsel %vm9322_vm4, %v2392_v5, %v2394_v10  ;;  %v2358_v32 = vadd.f32 %v2342_v59, %v2030_v9 }
 0x20b   : > { %v2438_v43 = vsel %vm6739_vm5, %v2395_v26, 0.0  ;;  %vm9325_vm5 = vmmov %vm9320_vm3 }
 0x20c   : > { %v1935_v45 = vpop.f32.mrf.mxu2  ;;  %v1984_v46 = vpop.f32.mrf.mxu3  ;;  %v7345_v11 = vadd.f32 %v2438_v43, %v2358_v32 }
 0x20d   : > { %v2203_v55 = vrot.slane %v1935_v45, 6  ;;  %v2283_v52 = vrot.slane %v1984_v46, 7 }
 0x20f   : > { %v2204_v31 = vsel %vm9235_vm13, %v2201_v22, %v2203_v55  ;;  %v2284_v41 = vsel %vm9324_vm14, %v2281_v48, %v2283_v52  ;;  %v2084_v28 = vpop.f32.mrf.mxu1  ;;  %v2035_v13 = vpop.f32.mrf.mxu0  ;;  %vm9333_vm14 = vmmov %vm9319_vm2 }
 0x210   : > { %v2247_v40 = vsel %vm2165_vm1, %v2204_v31, 0.0  ;;  %v2327_v9 = vsel %vm6751_vm6, %v2284_v41, 0.0  ;;  %v2396_v20 = vrot.slane %v2084_v28, 1  ;;  %vm9326_vm6 = vmmov %vm9320_vm3  ;;  %v9327_v28 = vand.u32 15, %v6765_v58 }
 0x211   : > { %v2343_v5 = vadd.f32 %v2327_v9, %v2247_v40 }
 0x212   : > { %v2397_v53 = vsel %vm9325_vm5, %v2394_v10, %v2396_v20  ;;  %vm2167_vm3 = vcmp.ge.s32.totalorder %v9327_v28, 2 }
 0x213   : > { %v2359_v35 = vadd.f32 %v2343_v5, %v2033_v1 }
 0x214   : > { %v1937_v3 = vpop.f32.mrf.mxu2  ;;  %v1986_v0 = vpop.f32.mrf.mxu3 }
 0x215   : > { %v2205_v59 = vrot.slane %v1937_v3, 6  ;;  %v2285_v26 = vrot.slane %v1986_v0, 7  ;;  %v7354_v32 = vadd.f32 %v2397_v53, %v2359_v35 }
 0x217   : > { %v2206_v22 = vsel %vm9235_vm13, %v2203_v55, %v2205_v59  ;;  %v2286_v48 = vsel %vm9319_vm2, %v2283_v52, %v2285_v26  ;;  %v2087_v43 = vpop.f32.mrf.mxu1  ;;  %v2038_v40 = vpop.f32.mrf.mxu0 }
 0x218   : > { %v2344_v45 = vadd.f32 %v2286_v48, %v2206_v22  ;;  %v2398_v37 = vrot.slane %v2087_v43, 1 }
 0x219   : > { %2135 = vmatmul.bf16.gmra.mxu2 %v7191_v56 }
 0x21a   : > { %v2399_v46 = vsel %vm9326_vm6, %v2396_v20, %v2398_v37  ;;  %v2360_v1 = vadd.f32 %v2344_v45, %v2035_v13 }
 0x21b   : > { %v2440_v10 = vsel %vm6769_vm7, %v2399_v46, 0.0  ;;  %vm9329_vm7 = vmmov %vm9322_vm4 }
 0x21c   : > { %v1940_v34 = vpop.f32.mrf.mxu2  ;;  %v1989_v31 = vpop.f32.mrf.mxu3  ;;  %v7362_v41 = vadd.f32 %v2440_v10, %v2360_v1  ;;  %vm9330_vm4 = vmmov %vm9319_vm2 }
 0x21d   : > { %v2207_v55 = vrot.slane %v1940_v34, 6  ;;  %v2287_v52 = vrot.slane %v1989_v31, 7 }
 0x21f   : > { %v2208_v9 = vsel %vm9235_vm13, %v2205_v59, %v2207_v55  ;;  %v2288_v56 = vsel %vm9328_vm11, %v2285_v26, %v2287_v52  ;;  %v2089_v5 = vpop.f32.mrf.mxu1  ;;  %v2040_v1 = vpop.f32.mrf.mxu0 }
 0x220   : > { %v2249_v20 = vsel %vm2167_vm3, %v2208_v9, 0.0  ;;  %v2329_v62 = vsel %vm6781_vm8, %v2288_v56, 0.0  ;;  %v2400_v13 = vrot.slane %v2089_v5, 1  ;;  %vm9331_vm8 = vmmov %vm9325_vm5 }
 0x221   : > { %v2345_v35 = vadd.f32 %v2329_v62, %v2249_v20 }
 0x222   : > { %v2401_v3 = vsel %vm9329_vm7, %v2398_v37, %v2400_v13 }
 0x223   : > { %v2361_v53 = vadd.f32 %v2345_v35, %v2038_v40 }
 0x224   : > { %v1942_v0 = vpop.f32.mrf.mxu2  ;;  %v1991_v22 = vpop.f32.mrf.mxu3 }
 0x225   : > { %v2209_v48 = vrot.slane %v1942_v0, 6  ;;  %v2289_v43 = vrot.slane %v1991_v22, 7  ;;  %v7371_v45 = vadd.f32 %v2401_v3, %v2361_v53 }
 0x227   : > { %v2210_v59 = vsel %vm9235_vm13, %v2207_v55, %v2209_v48  ;;  %v2290_v26 = vsel %vm9330_vm4, %v2287_v52, %v2289_v43  ;;  %v2092_v46 = vpop.f32.mrf.mxu1  ;;  %v9332_v55 = vand.u32 15, %v6795_v38  ;;  %v2043_v53 = vpop.f32.mrf.mxu0 }
 0x228   : > { %v2346_v10 = vadd.f32 %v2290_v26, %v2210_v59  ;;  %v2402_v12 = vrot.slane %v2092_v46, 1 }
 0x229   : > { %2140 = vmatmul.bf16.gmra.mxu2 %v7207_v14  ;;  %vm2169_vm1 = vcmp.ge.s32.totalorder %v9332_v55, 2 }
 0x22a   : > { %v2403_v34 = vsel %vm9331_vm8, %v2400_v13, %v2402_v12  ;;  %v2362_v31 = vadd.f32 %v2346_v10, %v2040_v1  ;;  %vm9348_vm8 = vmmov %vm9330_vm4 }
 0x22b   : > { %v2442_v37 = vsel %vm6799_vm9, %v2403_v34, 0.0  ;;  %vm9334_vm9 = vmmov %vm9325_vm5  ;;  %vm9234_vm5 = vcmask 1045504  }
 0x22c   : > { %v1945_v28 = vpop.f32.mrf.mxu2  ;;  %v1994_v40 = vpop.f32.mrf.mxu3  ;;  %v7379_v9 = vadd.f32 %v2442_v37, %v2362_v31 }
 0x22d   : > { %v2211_v52 = vrot.slane %v1945_v28, 6  ;;  %v2291_v56 = vrot.slane %v1994_v40, 7 }
 0x22f   : > { %v2212_v5 = vsel %vm9235_vm13, %v2209_v48, %v2211_v52  ;;  %v2292_v20 = vsel %vm9333_vm14, %v2289_v43, %v2291_v56  ;;  %v7385_v14 = vpop.f32.mrf.mxu1 }
 0x230   : > { %v2251_v62 = vsel %vm2169_vm1, %v2212_v5, 0.0  ;;  %v2331_v42 = vsel %vm6811_vm10, %v2292_v20, 0.0  ;;  %v9216_v13 = vrot.slane %v7385_v14, 1  ;;  %vm9335_vm10 = vmmov %vm9319_vm2  ;;  %v9337_v20 = vand.u32 15, %v6692_v39 }
 0x231   : > { %v2347_v35 = vadd.f32 %v2331_v42, %v2251_v62 }
 0x232   : > { %v2405_v38 = vsel %vm9334_vm9, %v2402_v12, %v9216_v13  ;;  %vm2468_vm2 = vcmp.lt.s32.totalorder %v9337_v20, 14  ;;  %v9343_v20 = vand.u32 15, %v6757_v44  ;;  %vm9357_vm9 = vmmov %vm9330_vm4 }
 0x233   : > { %v2363_v3 = vadd.f32 %v2347_v35, %v2043_v53 }
 0x234   : > { %v7393_v0 = vpop.f32.mrf.mxu2  ;;  %v7395_v22 = vpop.f32.mrf.mxu3  ;;  %vm2472_vm3 = vcmp.lt.s32.totalorder %v9343_v20, 14 }
 0x235   : > { %v9218_v48 = vrot.slane %v7393_v0, 6  ;;  %v9217_v43 = vrot.slane %v7395_v22, 7  ;;  %v7399_v59 = vadd.f32 %v2405_v38, %v2363_v3 }
 0x237   : > { %v2214_v63 = vsel %vm9235_vm13, %v2211_v52, %v9218_v48  ;;  %v2294_v26 = vsel %vm9335_vm10, %v2291_v56, %v9217_v43  ;;  %vm9358_vm10 = vmmov %vm9330_vm4 }
 0x238   : > { %v7407_v46 = vadd.f32 %v2294_v26, %v2214_v63  ;;  %v9340_v26 = vand.u32 15, %v6727_v7 }
 0x239   : > { %2145 = vmatmul.bf16.gmra.mxu2 %v7247_v19 }
 0x23a   : > { %vm2470_vm6 = vcmp.lt.s32.totalorder %v9340_v26, 14 }
 0x23c   : > { %v7410_v1 = vpop.f32.mrf.mxu2 }
 0x23d   : > { %v2215_v49 = vrot.slane %v7410_v1, 6 }
 0x244   : > { %v7412_v10 = vpop.f32.mrf.mxu2 }
 0x249   : > { %2150 = vmatmul.bf16.gmra.mxu2 %v7287_v60 }
 0x24c   : > { %v7415_v12 = vpop.f32.mrf.mxu2 }
 0x24d   : > { %v2219_v33 = vrot.slane %v7415_v12, 6 }
 0x254   : > { %v7417_v34 = vpop.f32.mrf.mxu2 }
 0x255   : > { %v2221_v27 = vrot.slane %v7417_v34, 6  ;;  %v9349_v34 = vand.u32 15, %v6825_v23 }
 0x257   : > { %vm7524_vm1 = vcmp.ge.s32.totalorder %v9349_v34, 2 }
 0x259   : > { %2155 = vmatmul.bf16.gmra.mxu2 %v7301_v47 }
 0x25c   : > { %v7420_v31 = vpop.f32.mrf.mxu2 }
 0x25d   : > { %v2223_v58 = vrot.slane %v7420_v31, 6 }
 0x264   : > { %v7422_v37 = vpop.f32.mrf.mxu2 }
 0x265   : > { %v2225_v17 = vrot.slane %v7422_v37, 6  ;;  %v2224_v37 = vsel %vm9235_vm13, %v2221_v27, %v2223_v58 }
 0x26c   : > { %v2121_v28 = vpop.f32.mrf.mxu2 }
 0x26d   : > { %v2500_v19 = vrot.slane %v2121_v28, 2 }
 0x274   : > { %v2123_v40 = vpop.f32.mrf.mxu2 }
 0x275   : > { %v2501_v55 = vrot.slane %v2123_v40, 2 }
 0x277   : > { %v2502_v52 = vsel %vm9234_vm5, %v2500_v19, %v2501_v55 }
 0x278   : > { %v7426_v56 = vadd.f32 %v2502_v52, %v7320_v24 }
 0x27a   : > { %9336 = vst [vmem:[#allocation12_spill] sm:$0xff] %v7426_v56 }
 0x27c   : > { %v2126_v60 = vpop.f32.mrf.mxu2 }
 0x27d   : > { %v2503_v5 = vrot.slane %v2126_v60, 2 }
 0x27f   : > { %v2504_v47 = vsel %vm9234_vm5, %v2501_v55, %v2503_v5 }
 0x280   : > { %v2550_v62 = vsel %vm2468_vm2, %v2504_v47, 0.0  ;;  %vm9359_vm2 = vmmov %vm9330_vm4 }
 0x281   : > { %v7432_v42 = vadd.f32 %v2550_v62, %v7328_v51 }
 0x283   : > { %9338 = vst [vmem:[#allocation13_spill] sm:$0xff] %v7432_v42  ;;  %v2217_v42 = vrot.slane %v7412_v10, 6 }
 0x284   : > { %v2128_v35 = vpop.f32.mrf.mxu2 }
 0x285   : > { %v2505_v53 = vrot.slane %v2128_v35, 2 }
 0x287   : > { %v2506_v3 = vsel %vm9234_vm5, %v2503_v5, %v2505_v53 }
 0x288   : > { %v7436_v38 = vadd.f32 %v2506_v3, %v7337_v29  ;;  %v7456_v3 = vpop.f32.mrf.mxu0 }
 0x28a   : > { %9339 = vst [vmem:[#allocation14_spill] sm:$0xff] %v7436_v38 }
 0x28c   : > { %v2131_v24 = vpop.f32.mrf.mxu2 }
 0x28d   : > { %v2507_v63 = vrot.slane %v2131_v24, 2 }
 0x28f   : > { %v2508_v28 = vsel %vm9234_vm5, %v2505_v53, %v2507_v63 }
 0x290   : > { %v2552_v40 = vsel %vm2470_vm6, %v2508_v28, 0.0 }
 0x291   : > { %v7442_v19 = vadd.f32 %v2552_v40, %v7345_v11  ;;  %v7454_v11 = vpop.f32.mrf.mxu3 }
 0x292   : > { %v2295_v39 = vrot.slane %v7454_v11, 7  ;;  %v2226_v11 = vsel %vm9235_vm13, %v2223_v58, %v2225_v17  ;;  %v2220_v58 = vsel %vm9235_vm13, %v2217_v42, %v2219_v33 }
 0x293   : > { %9341 = vst [vmem:[#allocation15_spill] sm:$0xff] %v7442_v19  ;;  %v9345_v19 = vand.u32 15, %v6885_v50 }
 0x294   : > { %v2133_v51 = vpop.f32.mrf.mxu2 }
 0x295   : > { %v2509_v55 = vrot.slane %v2133_v51, 2  ;;  %vm7514_vm7 = vcmp.ge.s32.totalorder %v9345_v19, 2  ;;  %v9352_v19 = vand.u32 15, %v6855_v25 }
 0x296   : > { %v2257_v25 = vsel %vm7514_vm7, %v2224_v37, 0.0  ;;  %v2218_v37 = vsel %vm9235_vm13, %v2215_v49, %v2217_v42  ;;  %v9365_v42 = vand.u32 15, %v6909_v16 }
 0x297   : > { %v2510_v52 = vsel %vm9234_vm5, %v2507_v63, %v2509_v55  ;;  %v7459_v63 = vpop.f32.mrf.mxu1  ;;  %vm7531_vm14 = vcmp.ge.s32.totalorder %v9352_v19, 2 }
 0x298   : > { %v7446_v60 = vadd.f32 %v2510_v52, %v7354_v32  ;;  %v2255_v31 = vsel %vm7531_vm14, %v2220_v58, 0.0  ;;  %vm9377_vm14 = vnez %v9273_v36  ;;  %v2364_v36 = vadd.f32 %v7407_v46, %v7456_v3 }
 0x299   : > { %v7464_v28 = vpop.f32.mrf.mxu3 }
 0x29a   : > { %9342 = vst [vmem:[#allocation16_spill] sm:$0xff] %v7446_v60  ;;  %v2297_v50 = vrot.slane %v7464_v28, 7 }
 0x29c   : > { %v2136_v29 = vpop.f32.mrf.mxu2 }
 0x29d   : > { %v2511_v5 = vrot.slane %v2136_v29, 2 }
 0x29f   : > { %v2512_v47 = vsel %vm9234_vm5, %v2509_v55, %v2511_v5  ;;  %v7468_v55 = vpop.f32.mrf.mxu0 }
 0x2a0   : > { %v2554_v62 = vsel %vm2472_vm3, %v2512_v47, 0.0  ;;  %vm7575_vm3 = vcmp.lt.s32.totalorder %v9365_v42, 14  ;;  %v9389_v42 = vld [vmem:[#allocation12_spill] sm:$0xff] }
 0x2a1   : > { %v7452_v35 = vadd.f32 %v2554_v62, %v7362_v41  ;;  %v9344_v41 = vand.u32 15, %v6787_v21  ;;  %v2004_v62 = vpop.f32.mrf.mxu3 }
 0x2a2   : > { %v2299_v38 = vrot.slane %v2004_v62, 7  ;;  %v7567_v62 = vrot.slane %v9363_v2, 2  ;;  %v9381_v2 = vand.u32 15, %v6817_v8 }
 0x2a3   : > { %vm2474_vm11 = vcmp.lt.s32.totalorder %v9344_v41, 14 }
 0x2a4   : > { %v2138_v53 = vpop.f32.mrf.mxu2  ;;  %v2300_v28 = vsel %vm9358_vm10, %v2297_v50, %v2299_v38 }
 0x2a5   : > { %v2513_v24 = vrot.slane %v2138_v53, 2  ;;  %v2335_v6 = vsel %vm9309_vm15, %v2300_v28, 0.0  ;;  %vm9364_vm15 = vnez %v9283_v18 }
 0x2a7   : > { %v2514_v32 = vsel %vm9234_vm5, %v2511_v5, %v2513_v24  ;;  %v7474_v5 = vpop.f32.mrf.mxu1 }
 0x2a8   : > { %v7462_v26 = vadd.f32 %v2514_v32, %v7371_v45 }
 0x2a9   : > { %v2006_v41 = vpop.f32.mrf.mxu3 }
 0x2aa   : > { %v2301_v56 = vrot.slane %v2006_v41, 7 }
 0x2ac   : > { %v2141_v40 = vpop.f32.mrf.mxu2 }
 0x2ad   : > { %v2515_v51 = vrot.slane %v2141_v40, 2  ;;  %v7485_v40 = vpop.f32.mrf.mxu0 }
 0x2af   : > { %v2516_v52 = vsel %vm9234_vm5, %v2513_v24, %v2515_v51  ;;  %v7487_v24 = vpop.f32.mrf.mxu1 }
 0x2b0   : > { %v2556_v29 = vsel %vm2474_vm11, %v2516_v52, 0.0  ;;  %vm9368_vm11 = vnez %v9277_v54 }
 0x2b1   : > { %v7472_v20 = vadd.f32 %v2556_v29, %v7379_v9  ;;  %v2009_v43 = vpop.f32.mrf.mxu3 }
 0x2b2   : > { %v2303_v44 = vrot.slane %v2009_v43, 7 }
 0x2b4   : > { %v7476_v47 = vpop.f32.mrf.mxu2  ;;  %v2304_v1 = vsel %vm9330_vm4, %v2301_v56, %v2303_v44 }
 0x2b5   : > { %v9219_v45 = vrot.slane %v7476_v47, 2  ;;  %v7491_v52 = vpop.f32.mrf.mxu0  ;;  %v2337_v34 = vsel %vm6931_vm0, %v2304_v1, 0.0  ;;  %vm9360_vm0 = vcmask 1046528  }
 0x2b6   : > { %vm9362_vm6 = vmmov %vm9360_vm0 }
 0x2b7   : > { %v2518_v53 = vsel %vm9234_vm5, %v2515_v51, %v9219_v45  ;;  %v7495_v13 = vpop.f32.mrf.mxu1  ;;  %vm9372_vm4 = vmmov %vm9360_vm0 }
 0x2b8   : > { %v7483_v32 = vadd.f32 %v2518_v53, %v7399_v59  ;;  %vm9380_vm10 = vmmov %vm9360_vm0 }
 0x2b9   : > { %v2011_v53 = vpop.f32.mrf.mxu3 }
 0x2ba   : > { %v2305_v7 = vrot.slane %v2011_v53, 7  ;;  %v9355_v53 = vrot.slane %v7393_v0, 6  ;;  %v2222_v0 = vsel %vm9235_vm13, %v2219_v33, %v2221_v27  ;;  %v2412_v27 = vrot.slane %v7495_v13, 1 }
 0x2bb   : > { %v2353_v33 = vadd.f32 %v2337_v34, %v2257_v25 }
 0x2bc   : > { %v7489_v9 = vpop.f32.mrf.mxu2  ;;  %v2306_v12 = vsel %vm9348_vm8, %v2303_v44, %v2305_v7  ;;  %v2216_v17 = vsel %vm9235_vm13, %v9355_v53, %v2215_v49  ;;  %v9356_v7 = vrot.slane %v7395_v22, 7  ;;  %v2302_v53 = vsel %vm9359_vm2, %v2299_v38, %v2301_v56  ;;  %vm9373_vm8 = vmmov %vm9360_vm0 }
 0x2bd   : > { %v7499_v51 = vpop.f32.mrf.mxu0  ;;  %v2354_v19 = vadd.f32 %v2306_v12, %v2226_v11  ;;  %v2352_v1 = vadd.f32 %v2302_v53, %v2222_v0  ;;  %vm9409_vm13 = vcmask 1046528  }
 0x2be   : > { %v2296_v44 = vsel %vm9357_vm9, %v9356_v7, %v2295_v39  ;;  %v2406_v7 = vrot.slane %v7459_v63, 1  ;;  %vm9378_vm9 = vmmov %vm9360_vm0  ;;  %v9386_v63 = vld [vmem:[#allocation15_spill] sm:$0xff] }
 0x2bf   : > { %v7501_v59 = vpop.f32.mrf.mxu1  ;;  %v2333_v60 = vsel %vm6841_vm12, %v2296_v44, 0.0  ;;  %vm9361_vm12 = vmmov %vm9359_vm2  ;;  %v2351_v44 = vadd.f32 %v2335_v6, %v2255_v31  ;;  %v2368_v25 = vadd.f32 %v2352_v1, %v7499_v51  ;;  %vm2476_vm2 = vcmp.lt.s32.totalorder %v9381_v2, 14  ;;  %v6103_v2 = vld [vmem:[%s9179_s4 + $0x50] sm:$0xf0] }
 0x2c0   : > { %v2414_v22 = vrot.slane %v7501_v59, 1  ;;  %v2408_v59 = vrot.slane %v7474_v5, 1  ;;  %v2298_v11 = vsel %vm9361_vm12, %v2295_v39, %v2297_v50  ;;  %vm9384_vm12 = vmmov %vm9372_vm4  ;;  %v6115_v39 = vld [vmem:[%s9179_s4 + $0xb0] sm:$0xf0] }
 0x2c1   : > { %v2350_v28 = vadd.f32 %v2298_v11, %v2218_v37  ;;  %v2367_v31 = vadd.f32 %v2351_v44, %v7491_v52 }
 0x2c2   : > { %v2415_v12 = vsel %vm9362_vm6, %v2412_v27, %v2414_v22 }
 0x2c4   : > { %v7493_v29 = vpop.f32.mrf.mxu2 }
 0x2c5   : > { %v2058_v21 = vpop.f32.mrf.mxu0  ;;  %v2521_v0 = vrot.slane %v7493_v29, 2 }
 0x2c7   : > { %v2109_v43 = vpop.f32.mrf.mxu1 }
 0x2c8   : > { %v2416_v23 = vrot.slane %v2109_v43, 1  ;;  %v2253_v43 = vsel %vm7524_vm1, %v2216_v17, 0.0  ;;  %v2410_v17 = vrot.slane %v7487_v24, 1 }
 0x2c9   : > { %v2349_v13 = vadd.f32 %v2333_v60, %v2253_v43  ;;  %v2448_v60 = vsel %vm9368_vm11, %v2415_v12, 0.0  ;;  %vm9393_vm11 = vmmov %vm9372_vm4 }
 0x2ca   : > { %v2418_v38 = vsel %vm9360_vm0, %v2416_v23, %v6937_v15  ;;  %v2417_v54 = vsel %vm9373_vm8, %v2414_v22, %v2416_v23  ;;  %v9374_v22 = vand.u32 15, %v6847_v4  ;;  %v2413_v37 = vsel %vm9378_vm9, %v2410_v17, %v2412_v27 }
 0x2cb   : > { %v2450_v58 = vsel %vm9364_vm15, %v2418_v38, 0.0  ;;  %v2365_v11 = vadd.f32 %v2349_v13, %v7468_v55  ;;  %vm9383_vm0 = vnez %v9269_v30  ;;  %v2409_v55 = vsel %vm9384_vm12, %v2406_v7, %v2408_v59  ;;  %v9385_v30 = vld [vmem:[#allocation16_spill] sm:$0xff]  ;;  %v5409_v38 = vld [vmem:[%s9179_s4 + $0x68] sm:$0xf] }
 0x2cc   : > { %v7497_v48 = vpop.f32.mrf.mxu2  ;;  %vm7605_vm1 = vcmp.lt.s32.totalorder %v9374_v22, 14  ;;  %v6106_v22 = vld [vmem:[%s9179_s4 + $0x68] sm:$0xf0]  ;;  %vm9392_vm15 = vcmask 1040384  }
 0x2cd   : > { %v2060_v56 = vpop.f32.mrf.mxu0  ;;  %v2523_v18 = vrot.slane %v7497_v48, 2  ;;  %v2461_v3 = vadd.f32 %v2409_v55, %v2365_v11  ;;  %v6102_v55 = vld [vmem:[%s9179_s4 + $0x4c] sm:$0xf] }
 0x2ce   : > { %v2370_v57 = vadd.f32 %v2354_v19, %v2060_v56  ;;  %v2519_v56 = vrot.slane %v7489_v9, 2 }
 0x2cf   : > { %v2524_v29 = vsel %vm9234_vm5, %v2521_v0, %v2523_v18 }
 0x2d0   : > { %v2466_v24 = vadd.f32 %v2450_v58, %v2370_v57  ;;  %v2463_v57 = vadd.f32 %v2413_v37, %v2367_v31  ;;  %v2560_v12 = vsel %vm7605_vm1, %v2524_v29, 0.0  ;;  %v2522_v13 = vsel %vm9234_vm5, %v2519_v56, %v2521_v0  ;;  %v5421_v0 = vld [vmem:[%s9179_s4 + $0x80] sm:$0xf]  ;;  %v6111_v31 = vld [vmem:[%s9179_s4 + $0x94] sm:$0xf]  ;;  %vm9396_vm1 = vmmov %vm9378_vm9 }
 0x2d1   : > { %v2575_v8 = vadd.f32 %v2522_v13, %v2461_v3  ;;  %v6107_v29 = vld [vmem:[%s9179_s4 + $0x70] sm:$0xf0]  ;;  %v5391_v13 = vld [vmem:[%s9179_s4 + $0x54] sm:$0xf0] }
 0x2d2   : > { %v5410_v37 = vor.u32 %v6107_v29, %v5409_v38  ;;  %v5394_v3 = vor.u32 %v6102_v55, %v5391_v13 }
 0x2d4   : > { %v7503_v45 = vpop.f32.mrf.mxu2 }
 0x2d5   : > { %v2525_v49 = vrot.slane %v7503_v45, 2  ;;  %v9369_v45 = vand.u32 15, %v6879_v61  ;;  %v2464_v61 = vadd.f32 %v2448_v60, %v2368_v25  ;;  %v5425_v60 = vld [vmem:[%s9179_s4 + $0x90] sm:$0xf] }
 0x2d7   : > { %vm7588_vm7 = vcmp.lt.s32.totalorder %v9369_v45, 14  ;;  %v2526_v1 = vsel %vm9234_vm5, %v2523_v18, %v2525_v49  ;;  %v5433_v18 = vld [vmem:[%s9179_s4 + $0x98] sm:$0xf] }
 0x2d8   : > { %v2577_v27 = vadd.f32 %v2526_v1, %v2463_v57  ;;  %v5413_v45 = vld [vmem:[%s9179_s4 + $0x78] sm:$0xf]  ;;  %v2586_v1 = vld [vmem:[%s9185_s10 + $0x28] sm:$0xff] }
 0x2d9   : > { %v5415_v57 = vld [vmem:[%s9179_s4 + $0x84] sm:$0xf0] }
 0x2dc   : > { %v2156_v41 = vpop.f32.mrf.mxu2 }
 0x2dd   : > { %v2527_v10 = vrot.slane %v2156_v41, 2  ;;  %v2369_v41 = vadd.f32 %v2353_v33, %v2058_v21  ;;  %v2411_v21 = vsel %vm9372_vm4, %v2408_v59, %v2410_v17  ;;  %v2366_v33 = vadd.f32 %v2350_v28, %v7485_v40  ;;  %v9388_v59 = vld [vmem:[#allocation13_spill] sm:$0xff]  ;;  %vm9395_vm4 = vmmov %vm9392_vm15 }
 0x2de   : > { %v2446_v52 = vsel %vm9377_vm14, %v2411_v21, 0.0  ;;  %v9379_v40 = vrot.slane %v7385_v14, 1  ;;  %v9382_v14 = vrot.slane %v7476_v47, 2  ;;  %v6116_v28 = vld [vmem:[%s9179_s4 + $0xb8] sm:$0xf0]  ;;  %vm9398_vm9 = vmmov %vm9395_vm4 }
 0x2df   : > { %v2528_v34 = vsel %vm9234_vm5, %v2525_v49, %v2527_v10  ;;  %v2465_v43 = vadd.f32 %v2417_v54, %v2369_v41  ;;  %v2581_v49 = vld [vmem:[%s9185_s10] sm:$0xff]  ;;  %v6114_v54 = vld [vmem:[%s9179_s4 + $0xac] sm:$0xf]  ;;  %vm9401_vm12 = vmmov %vm9395_vm4 }
 0x2e0   : > { %v2562_v6 = vsel %vm7588_vm7, %v2528_v34, 0.0  ;;  %v2407_v9 = vsel %vm9380_vm10, %v9379_v40, %v2406_v7  ;;  %v2520_v17 = vsel %vm9234_vm5, %v9382_v14, %v2519_v56  ;;  %v9387_v7 = vld [vmem:[#allocation14_spill] sm:$0xff]  ;;  %v2587_v40 = vld [vmem:[%s9185_s10 + $0x30] sm:$0xff] }
 0x2e1   : > { %v2578_v4 = vadd.f32 %v2562_v6, %v2464_v61  ;;  %v2444_v44 = vsel %vm9383_vm0, %v2407_v9, 0.0  ;;  %v2558_v58 = vsel %vm2476_vm2, %v2520_v17, 0.0  ;;  %v6113_v34 = vld [vmem:[%s9179_s4 + $0xa0] sm:$0xf0]  ;;  %v5427_v61 = vld [vmem:[%s9179_s4 + $0x9c] sm:$0xf0]  ;;  %vm9399_vm2 = vmmov %vm9396_vm1 }
 0x2e2   : > { %v5434_v19 = vor.u32 %v6113_v34, %v5433_v18  ;;  %v6109_v21 = vld [vmem:[%s9179_s4 + $0x80] sm:$0xf0]  ;;  %v2588_v9 = vld [vmem:[%s9185_s10 + $0x38] sm:$0xff]  ;;  %v5397_v14 = vld [vmem:[%s9179_s4 + $0x50] sm:$0xf] }
 0x2e3   : > { %v5414_v6 = vor.u32 %v6109_v21, %v5413_v45  ;;  %v6095_v34 = vld [vmem:[%s9179_s4 + $0x10] sm:$0xf0]  ;;  %v5355_v45 = vld [vmem:[%s9179_s4 + $0xc] sm:$0xf0] }
 0x2e4   : > { %v2158_v5 = vpop.f32.mrf.mxu2 }
 0x2e5   : > { %v2529_v50 = vrot.slane %v2158_v5, 2  ;;  %v2460_v5 = vadd.f32 %v2444_v44, %v2364_v36  ;;  %v5403_v36 = vld [vmem:[%s9179_s4 + $0x6c] sm:$0xf0]  ;;  %v6104_v44 = vld [vmem:[%s9179_s4 + $0x58] sm:$0xf0] }
 0x2e7   : > { %v2532_v16 = vsel %vm9234_vm5, %v2529_v50, %v7567_v62  ;;  %v2530_v48 = vsel %vm9234_vm5, %v2527_v10, %v2529_v50  ;;  %v2462_v10 = vadd.f32 %v2446_v52, %v2366_v33  ;;  %v2574_v47 = vadd.f32 %v2558_v58, %v2460_v5  ;;  %v5445_v50 = vld [vmem:[%s9179_s4 + $0xb0] sm:$0xf]  ;;  %v5385_v5 = vld [vmem:[%s9179_s4 + $0x38] sm:$0xf] }
 0x2e8   : > { %v2564_v51 = vsel %vm7575_vm3, %v2532_v16, 0.0  ;;  %v2579_v23 = vadd.f32 %v2530_v48, %v2465_v43  ;;  %v5446_v25 = vor.u32 %v6116_v28, %v5445_v50  ;;  %v2585_v48 = vld [vmem:[%s9185_s10 + $0x20] sm:$0xff]  ;;  %v5430_v33 = vor.u32 %v6111_v31, %v5427_v61  ;;  %v5377_v58 = vld [vmem:[%s9179_s4 + $0x30] sm:$0xf]  ;;  %v5367_v50 = vld [vmem:[%s9179_s4 + $0x24] sm:$0xf0] }
 0x2e9   : > { %v2580_v53 = vadd.f32 %v2564_v51, %v2466_v24  ;;  %v2576_v46 = vadd.f32 %v2560_v12, %v2462_v10  ;;  %v6112_v24 = vld [vmem:[%s9179_s4 + $0x98] sm:$0xf0]  ;;  %v5439_v51 = vld [vmem:[%s9179_s4 + $0xb4] sm:$0xf0]  ;;  %v6105_v12 = vld [vmem:[%s9179_s4 + $0x64] sm:$0xf] }
 0x2ea   : > { %v5426_v16 = vor.u32 %v6112_v24, %v5425_v60  ;;  %2862 = vmatpush.bf16.msrb.mxu1 %v5446_v25  ;;  %v5442_v43 = vor.u32 %v6114_v54, %v5439_v51  ;;  %v5389_v10 = vld [vmem:[%s9179_s4 + $0x48] sm:$0xf]  ;;  %v5353_v60 = vld [vmem:[%s9179_s4] sm:$0xf]  ;;  %v6094_v24 = vld [vmem:[%s9179_s4 + $0x8] sm:$0xf0] }
 0x2eb   : > { %2591 = vmatpush.msra.mxu3 %v2580_v53  ;;  %v6110_v53 = vld [vmem:[%s9179_s4 + $0x88] sm:$0xf0]  ;;  %v5390_v17 = vor.u32 %v6103_v2, %v5389_v10  ;;  %v5361_v25 = vld [vmem:[%s9179_s4 + $0x8] sm:$0xf]  ;;  %v5354_v18 = vor.u32 %v6094_v24, %v5353_v60  ;;  %v6280_v51 = vld [vmem:[%s9187_s12 + $0x2] ss:$0 sm:$0xff] }
 0x2ec   : > { %2833 = vmatpush.bf16.msrb.mxu0 %v5442_v43  ;;  %v5422_v56 = vor.u32 %v6110_v53, %v5421_v0  ;;  %v5511_v60 = vld [vmem:[%s9180_s5 + $0x84] sm:$0xf0]  ;;  %vm9408_vm5 = vcmask 1040384  }
 0x2ed   : > { %2592 = vmatpush.msra.mxu3 %v2579_v23  ;;  %v5401_v23 = vld [vmem:[%s9179_s4 + $0x60] sm:$0xf] }
 0x2ee   : > { %2863 = vmatpush.bf16.msrb.mxu1 %v5434_v19  ;;  %v5402_v52 = vor.u32 %v6106_v22, %v5401_v23  ;;  %v5362_v19 = vor.u32 %v6095_v34, %v5361_v25  ;;  %v6130_v34 = vld [vmem:[%s9180_s5 + $0x68] sm:$0xf0] }
 0x2ef   : > { %2593 = vmatpush.msra.mxu3 %v2578_v4  ;;  %v6108_v4 = vld [vmem:[%s9179_s4 + $0x7c] sm:$0xf] }
 0x2f0   : > { %2834 = vmatpush.bf16.msrb.mxu0 %v5430_v33  ;;  %v5418_v11 = vor.u32 %v6108_v4, %v5415_v57  ;;  %v6140_v4 = vld [vmem:[%s9180_s5 + $0xb8] sm:$0xf0] }
 0x2f1   : > { %2594 = vmatpush.msra.mxu3 %v2577_v27  ;;  %v5406_v27 = vor.u32 %v6105_v12, %v5403_v36 }
 0x2f2   : > { %2864 = vmatpush.bf16.msrb.mxu1 %v5422_v56 }
 0x2f3   : > { %2595 = vmatpush.msra.mxu3 %v2576_v46  ;;  %v5398_v46 = vor.u32 %v6104_v44, %v5397_v14 }
 0x2f4   : > { %2835 = vmatpush.bf16.msrb.mxu0 %v5418_v11 }
 0x2f5   : > { %2596 = vmatpush.msra.mxu3 %v2575_v8  ;;  %v6100_v8 = vld [vmem:[%s9179_s4 + $0x38] sm:$0xf0] }
 0x2f6   : > { %2865 = vmatpush.bf16.msrb.mxu1 %v5410_v37  ;;  %v5533_v37 = vld [vmem:[%s9180_s5 + $0xa8] sm:$0xf] }
 0x2f7   : > { %2597 = vmatpush.msra.mxu3 %v2574_v47  ;;  %v5378_v47 = vor.u32 %v6100_v8, %v5377_v58  ;;  %v6138_v58 = vld [vmem:[%s9180_s5 + $0xac] sm:$0xf]  ;;  %v5535_v8 = vld [vmem:[%s9180_s5 + $0xb4] sm:$0xf0] }
 0x2f8   : > { %2836 = vmatpush.bf16.msrb.mxu0 %v5406_v27 }
 0x2f9   : > { %2598 = vmatpush.msra.mxu3 %v7483_v32  ;;  %v5437_v32 = vld [vmem:[%s9179_s4 + $0xa8] sm:$0xf] }
 0x2fa   : > { %v5438_v41 = vor.u32 %v6115_v39, %v5437_v32  ;;  %2866 = vmatpush.bf16.msrb.mxu1 %v5398_v46  ;;  %v6098_v32 = vld [vmem:[%s9179_s4 + $0x28] sm:$0xf0]  ;;  %v6096_v39 = vld [vmem:[%s9179_s4 + $0x1c] sm:$0xf] }
 0x2fb   : > { %2599 = vmatpush.msra.mxu3 %v7472_v20  ;;  %v2584_v20 = vld [vmem:[%s9185_s10 + $0x18] sm:$0xff]  ;;  %v5370_v28 = vor.u32 %v6096_v39, %v5367_v50  ;;  %v5517_v39 = vld [vmem:[%s9180_s5 + $0x80] sm:$0xf] }
 0x2fc   : > { %2837 = vmatpush.bf16.msrb.mxu0 %v5394_v3 }
 0x2fd   : > { %2600 = vmatpush.msra.mxu3 %v7462_v26  ;;  %v2582_v26 = vld [vmem:[%s9185_s10 + $0x8] sm:$0xff] }
 0x2ff   : > { %2601 = vmatpush.msra.mxu3 %v7452_v35  ;;  %v2583_v35 = vld [vmem:[%s9185_s10 + $0x10] sm:$0xff] }
 0x301   : > { %2602 = vmatpush.msra.mxu3 %v9385_v30  ;;  %v6101_v30 = vld [vmem:[%s9179_s4 + $0x40] sm:$0xf0] }
 0x303   : > { %2603 = vmatpush.msra.mxu3 %v9386_v63  ;;  %v6099_v63 = vld [vmem:[%s9179_s4 + $0x34] sm:$0xf] }
 0x305   : > { %2604 = vmatpush.msra.mxu3 %v9387_v7  ;;  %v5379_v7 = vld [vmem:[%s9179_s4 + $0x3c] sm:$0xf0] }
 0x307   : > { %2605 = vmatpush.msra.mxu3 %v9388_v59  ;;  %v5386_v59 = vor.u32 %v6101_v30, %v5385_v5  ;;  %v5538_v5 = vor.u32 %v6138_v58, %v5535_v8  ;;  %v6136_v30 = vld [vmem:[%s9180_s5 + $0x98] sm:$0xf0]  ;;  %v6117_v58 = vld [vmem:[%s9180_s5 + $0x4] sm:$0xf] }
 0x309   : > { %2606 = vmatpush.msra.mxu3 %v9389_v42  ;;  %2867 = vmatpush.bf16.msrb.mxu1 %v5386_v59  ;;  %v5365_v42 = vld [vmem:[%s9179_s4 + $0x18] sm:$0xf]  ;;  %v6137_v59 = vld [vmem:[%s9180_s5 + $0xa0] sm:$0xf0] }
 0x30a   : > { %2607 = vmatmul.f32.vlgmr.msra.gmra.mxu3 %v2581_v49  ;;  %v5382_v49 = vor.u32 %v6099_v63, %v5379_v7  ;;  %v5529_v63 = vld [vmem:[%s9180_s5 + $0x98] sm:$0xf] }
 0x30b   : > { %2804 = vmatpush.bf16.msrb.mxu3 %v5438_v41 }
 0x30c   : > { %2838 = vmatpush.bf16.msrb.mxu0 %v5382_v49  ;;  %v6135_v49 = vld [vmem:[%s9180_s5 + $0x94] sm:$0xf] }
 0x30f   : > { %2805 = vmatpush.bf16.msrb.mxu3 %v5426_v16  ;;  %v6093_v16 = vld [vmem:[%s9179_s4 + $0x4] sm:$0xf] }
 0x310   : > { %2839 = vmatpush.bf16.msrb.mxu0 %v5370_v28  ;;  %v5358_v21 = vor.u32 %v6093_v16, %v5355_v45  ;;  %v6132_v28 = vld [vmem:[%s9180_s5 + $0x7c] sm:$0xf]  ;;  %v5505_v45 = vld [vmem:[%s9180_s5 + $0x68] sm:$0xf] }
 0x311   : > { %v5514_v25 = vor.u32 %v6132_v28, %v5511_v60  ;;  %v9394_v60 = vld [vmem:[#allocation4_spill] sm:$0xff] }
 0x312   : > { %2610 = vmatmul.f32.gmra.mxu3 %v2582_v26  ;;  %v6097_v26 = vld [vmem:[%s9179_s4 + $0x20] sm:$0xf0] }
 0x313   : > { %2806 = vmatpush.bf16.msrb.mxu3 %v5414_v6 }
 0x314   : > { %2840 = vmatpush.bf16.msrb.mxu0 %v5358_v21  ;;  %v6129_v21 = vld [vmem:[%s9180_s5 + $0x64] sm:$0xf] }
 0x317   : > { %2807 = vmatpush.bf16.msrb.mxu3 %v5402_v52 }
 0x31a   : > { %2613 = vmatmul.f32.gmra.mxu3 %v2583_v35  ;;  %v5373_v35 = vld [vmem:[%s9179_s4 + $0x20] sm:$0xf] }
 0x31b   : > { %2808 = vmatpush.bf16.msrb.mxu3 %v5390_v17  ;;  %v5374_v41 = vor.u32 %v6098_v32, %v5373_v35  ;;  %v6133_v32 = vld [vmem:[%s9180_s5 + $0x80] sm:$0xf0] }
 0x31d   : > { %2868 = vmatpush.bf16.msrb.mxu1 %v5374_v41  ;;  %v6134_v41 = vld [vmem:[%s9180_s5 + $0x88] sm:$0xf0] }
 0x31e   : > { %v5518_v24 = vor.u32 %v6134_v41, %v5517_v39 }
 0x31f   : > { %2809 = vmatpush.bf16.msrb.mxu3 %v5378_v47  ;;  %v5521_v47 = vld [vmem:[%s9180_s5 + $0x90] sm:$0xf] }
 0x320   : > { %v5522_v7 = vor.u32 %v6136_v30, %v5521_v47 }
 0x321   : > { %2869 = vmatpush.bf16.msrb.mxu1 %v5362_v19  ;;  %v6131_v19 = vld [vmem:[%s9180_s5 + $0x70] sm:$0xf0] }
 0x322   : > { %2616 = vmatmul.f32.gmra.mxu3 %v2584_v20  ;;  %v5366_v20 = vor.u32 %v6097_v26, %v5365_v42  ;;  %v5523_v42 = vld [vmem:[%s9180_s5 + $0x9c] sm:$0xf0]  ;;  %v5530_v26 = vor.u32 %v6137_v59, %v5529_v63 }
 0x323   : > { %v5526_v35 = vor.u32 %v6135_v49, %v5523_v42 }
 0x324   : > { %2810 = vmatpush.bf16.msrb.mxu3 %v5366_v20  ;;  %v5509_v20 = vld [vmem:[%s9180_s5 + $0x78] sm:$0xf] }
 0x325   : > { %v5510_v50 = vor.u32 %v6133_v32, %v5509_v20  ;;  %v9391_v32 = vld [vmem:[#allocation3_spill] sm:$0xff] }
 0x328   : > { %2811 = vmatpush.bf16.msrb.mxu3 %v5354_v18  ;;  %v5497_v18 = vld [vmem:[%s9180_s5 + $0x60] sm:$0xf] }
 0x329   : > { %v5498_v16 = vor.u32 %v6130_v34, %v5497_v18 }
 0x32a   : > { %2619 = vmatmul.f32.gmra.mxu3 %v2585_v48 }
 0x32c   : > { %3222 = vmatpush.bf16.msra.mxu3 %v5538_v5  ;;  %v5451_v5 = vld [vmem:[%s9180_s5 + $0xc] sm:$0xf0] }
 0x32d   : > { %v5454_v47 = vor.u32 %v6117_v58, %v5451_v5 }
 0x330   : > { %3223 = vmatpush.bf16.msra.mxu3 %v5526_v35 }
 0x332   : > { %2622 = vmatmul.f32.gmra.mxu3 %v2586_v1  ;;  %v6139_v1 = vld [vmem:[%s9180_s5 + $0xb0] sm:$0xf0] }
 0x334   : > { %3224 = vmatpush.bf16.msra.mxu3 %v5514_v25 }
 0x33a   : > { %2625 = vmatmul.f32.gmra.mxu3 %v2587_v40  ;;  %v5541_v40 = vld [vmem:[%s9180_s5 + $0xb0] sm:$0xf] }
 0x33b   : > { %v5542_v57 = vor.u32 %v6140_v4, %v5541_v40 }
 0x33d   : > { %3251 = vmatpush.bf16.msra.mxu0 %v5542_v57  ;;  %v5461_v57 = vld [vmem:[%s9180_s5 + $0x18] sm:$0xf] }
 0x341   : > { %3252 = vmatpush.bf16.msra.mxu0 %v5530_v26 }
 0x342   : > { %2628 = vmatmul.f32.gmra.mxu3 %v2588_v9  ;;  %v5534_v9 = vor.u32 %v6139_v1, %v5533_v37  ;;  %v6125_v37 = vld [vmem:[%s9180_s5 + $0x40] sm:$0xf0]  ;;  %v6123_v1 = vld [vmem:[%s9180_s5 + $0x34] sm:$0xf] }
 0x344   : > { %3193 = vmatpush.bf16.msrb.mxu2 %v5534_v9  ;;  %v5475_v9 = vld [vmem:[%s9180_s5 + $0x3c] sm:$0xf0] }
 0x345   : > { %3253 = vmatpush.bf16.msra.mxu0 %v5518_v24  ;;  %v5478_v4 = vor.u32 %v6123_v1, %v5475_v9  ;;  %v7970_v24 = vand.u32 7, %v9394_v60 }
 0x347   : > { %vm2900_vm7 = vcmp.ge.s32.totalorder %v7970_v24, 1  ;;  %vm9238_vm8 = vcmp.lt.s32.totalorder %v7970_v24, 7 }
 0x348   : > { %3194 = vmatpush.bf16.msrb.mxu2 %v5522_v7  ;;  %v9390_v7 = vld [vmem:[#allocation2_spill] sm:$0xff] }
 0x349   : > { %v7960_v59 = vand.u32 7, %v9390_v7 }
 0x34b   : > { %vm2899_vm6 = vcmp.ge.s32.totalorder %v7960_v59, 1  ;;  %vm2955_vm3 = vcmp.lt.s32.totalorder %v7960_v59, 7 }
 0x34c   : > { %3195 = vmatpush.bf16.msrb.mxu2 %v5510_v50 }
 0x350   : > { %3196 = vmatpush.bf16.msrb.mxu2 %v5498_v16 }
 0x38d   : > { %v2608_v54 = vpop.f32.mrf.mxu3 }
 0x38e   : > { %v2609_v48 = vadd.f32 %v6280_v51, %v2608_v54  ;;  %v5506_v54 = vor.u32 %v6131_v19, %v5505_v45 }
 0x390   : > { %v2632_v43 = vmax.f32 %v2609_v48, 0.0  ;;  %3254 = vmatpush.bf16.msra.mxu0 %v5506_v54 }
 0x395   : > { %v2611_v0 = vpop.f32.mrf.mxu3 }
 0x396   : > { %v2612_v53 = vadd.f32 %v6280_v51, %v2611_v0  ;;  %v5485_v0 = vld [vmem:[%s9180_s5 + $0x48] sm:$0xf] }
 0x398   : > { %v2633_v31 = vmax.f32 %v2612_v53, 0.0  ;;  %v6127_v53 = vld [vmem:[%s9180_s5 + $0x50] sm:$0xf0] }
 0x39a   : > { %v2640_v61 = vpack.c.bf16 %v2633_v31, %v2632_v43  ;;  %v5493_v43 = vld [vmem:[%s9180_s5 + $0x50] sm:$0xf]  ;;  %v5486_v31 = vor.u32 %v6127_v53, %v5485_v0 }
 0x39c   : > { %2812 = vmatmul.bf16.vlgmr.msrb.gmra.mxu3 %v2640_v61  ;;  %2870 = vmatmul.bf16.vlgmr.msrb.gmra.mxu1 %v2640_v61 }
 0x39d   : > { %v2614_v6 = vpop.f32.mrf.mxu3  ;;  %2841 = vmatmul.bf16.vlgmr.msrb.gmra.mxu0 %v2640_v61  ;;  %v6128_v61 = vld [vmem:[%s9180_s5 + $0x58] sm:$0xf0]  ;;  %3197 = vmatpush.bf16.msrb.mxu2 %v5486_v31 }
 0x39e   : > { %v2615_v33 = vadd.f32 %v6280_v51, %v2614_v6  ;;  %v6126_v6 = vld [vmem:[%s9180_s5 + $0x4c] sm:$0xf]  ;;  %v9397_v31 = vld [vmem:[#allocation5_spill] sm:$0xff] }
 0x3a0   : > { %v2634_v22 = vmax.f32 %v2615_v33, 0.0  ;;  %v5494_v33 = vor.u32 %v6128_v61, %v5493_v43  ;;  %v7986_v61 = vand.u32 7, %v9397_v31 }
 0x3a2   : > { %3255 = vmatpush.bf16.msra.mxu0 %v5494_v33  ;;  %vm2901_vm14 = vcmp.ge.s32.totalorder %v7986_v61, 1  ;;  %vm9239_vm10 = vcmp.lt.s32.totalorder %v7986_v61, 7 }
 0x3a5   : > { %v2617_v56 = vpop.f32.mrf.mxu3 }
 0x3a6   : > { %v2618_v23 = vadd.f32 %v6280_v51, %v2617_v56  ;;  %v5487_v56 = vld [vmem:[%s9180_s5 + $0x54] sm:$0xf0] }
 0x3a8   : > { %v2635_v38 = vmax.f32 %v2618_v23, 0.0  ;;  %v5490_v23 = vor.u32 %v6126_v6, %v5487_v56 }
 0x3aa   : > { %v2641_v29 = vpack.c.bf16 %v2635_v38, %v2634_v22  ;;  %v5473_v22 = vld [vmem:[%s9180_s5 + $0x30] sm:$0xf]  ;;  %v6124_v38 = vld [vmem:[%s9180_s5 + $0x38] sm:$0xf0] }
 0x3ac   : > { %2817 = vmatmul.bf16.gmra.mxu3 %v2641_v29  ;;  %2875 = vmatmul.bf16.gmra.mxu1 %v2641_v29 }
 0x3ad   : > { %v2620_v52 = vpop.f32.mrf.mxu3  ;;  %2846 = vmatmul.bf16.gmra.mxu0 %v2641_v29  ;;  %v5474_v29 = vor.u32 %v6124_v38, %v5473_v22 }
 0x3ae   : > { %v2621_v11 = vadd.f32 %v6280_v51, %v2620_v52  ;;  %v5481_v52 = vld [vmem:[%s9180_s5 + $0x38] sm:$0xf] }
 0x3af   : > { %v5482_v40 = vor.u32 %v6125_v37, %v5481_v52  ;;  %3198 = vmatpush.bf16.msrb.mxu2 %v5474_v29 }
 0x3b0   : > { %v2636_v27 = vmax.f32 %v2621_v11, 0.0  ;;  %v6121_v11 = vld [vmem:[%s9180_s5 + $0x20] sm:$0xf0] }
 0x3b1   : > { %3256 = vmatpush.bf16.msra.mxu0 %v5482_v40 }
 0x3b5   : > { %v2623_v12 = vpop.f32.mrf.mxu3 }
 0x3b6   : > { %v2624_v36 = vadd.f32 %v6280_v51, %v2623_v12  ;;  %v5469_v12 = vld [vmem:[%s9180_s5 + $0x20] sm:$0xf] }
 0x3b8   : > { %v2637_v10 = vmax.f32 %v2624_v36, 0.0  ;;  %v5462_v36 = vor.u32 %v6121_v11, %v5461_v57 }
 0x3ba   : > { %v2642_v2 = vpack.c.bf16 %v2637_v10, %v2636_v27  ;;  %v6122_v27 = vld [vmem:[%s9180_s5 + $0x28] sm:$0xf0]  ;;  %v6120_v10 = vld [vmem:[%s9180_s5 + $0x1c] sm:$0xf]  ;;  %3199 = vmatpush.bf16.msrb.mxu2 %v5462_v36 }
 0x3bc   : > { %2822 = vmatmul.bf16.gmra.mxu3 %v2642_v2  ;;  %2880 = vmatmul.bf16.gmra.mxu1 %v2642_v2 }
 0x3bd   : > { %v2626_v14 = vpop.f32.mrf.mxu3  ;;  %2851 = vmatmul.bf16.gmra.mxu0 %v2642_v2  ;;  %v5463_v2 = vld [vmem:[%s9180_s5 + $0x24] sm:$0xf0] }
 0x3be   : > { %v2627_v17 = vadd.f32 %v6280_v51, %v2626_v14  ;;  %v5470_v14 = vor.u32 %v6122_v27, %v5469_v12  ;;  %v9400_v12 = vld [vmem:[#allocation6_spill] sm:$0xff] }
 0x3bf   : > { %v7999_v36 = vand.u32 7, %v9400_v12 }
 0x3c0   : > { %v2638_v13 = vmax.f32 %v2627_v17, 0.0  ;;  %v5466_v17 = vor.u32 %v6120_v10, %v5463_v2  ;;  %3257 = vmatpush.bf16.msra.mxu0 %v5470_v14 }
 0x3c1   : > { %vm2902_vm0 = vcmp.ge.s32.totalorder %v7999_v36, 1 }
 0x3c5   : > { %v2629_v44 = vpop.f32.mrf.mxu3 }
 0x3c6   : > { %v2630_v55 = vadd.f32 %v6280_v51, %v2629_v44  ;;  %v5499_v51 = vld [vmem:[%s9180_s5 + $0x6c] sm:$0xf0]  ;;  %v5449_v44 = vld [vmem:[%s9180_s5] sm:$0xf] }
 0x3c7   : > { %v5502_v48 = vor.u32 %v6129_v21, %v5499_v51  ;;  %v7978_v21 = vld [vmem:[%s9187_s12 + $0x3] ss:$0 sm:$0xff] }
 0x3c8   : > { %v2639_v46 = vmax.f32 %v2630_v55, 0.0  ;;  %v6118_v55 = vld [vmem:[%s9180_s5 + $0x8] sm:$0xf0] }
 0x3c9   : > { %3225 = vmatpush.bf16.msra.mxu3 %v5502_v48 }
 0x3ca   : > { %v2643_v3 = vpack.c.bf16 %v2639_v46, %v2638_v13  ;;  %v5450_v13 = vor.u32 %v6118_v55, %v5449_v44  ;;  %v5457_v46 = vld [vmem:[%s9180_s5 + $0x8] sm:$0xf] }
 0x3cc   : > { %2827 = vmatmul.bf16.gmra.mxu3 %v2643_v3  ;;  %2885 = vmatmul.bf16.gmra.mxu1 %v2643_v3 }
 0x3cd   : > { %2856 = vmatmul.bf16.gmra.mxu0 %v2643_v3  ;;  %3226 = vmatpush.bf16.msra.mxu3 %v5490_v23  ;;  %v6119_v3 = vld [vmem:[%s9180_s5 + $0x10] sm:$0xf0] }
 0x3ce   : > { %v5458_v8 = vor.u32 %v6119_v3, %v5457_v46  ;;  %3200 = vmatpush.bf16.msrb.mxu2 %v5450_v13  ;;  %v9402_v3 = vld [vmem:[#allocation7_spill] sm:$0xff] }
 0x3cf   : > { %v8009_v58 = vand.u32 7, %v9402_v3 }
 0x3d0   : > { %3258 = vmatpush.bf16.msra.mxu0 %v5458_v8 }
 0x3d1   : > { %3227 = vmatpush.bf16.msra.mxu3 %v5478_v4 }
 0x3d5   : > { %3228 = vmatpush.bf16.msra.mxu3 %v5466_v17 }
 0x3d9   : > { %3229 = vmatpush.bf16.msra.mxu3 %v5454_v47 }
 0x419   : > { %v2871_v30 = vpop.f32.mrf.mxu1 }
 0x41a   : > { %v2842_v63 = vpop.f32.mrf.mxu0  ;;  %v2971_v35 = vrot.slane %v2871_v30, 1 }
 0x41f   : > { %v2813_v49 = vpop.f32.mrf.mxu3 }
 0x420   : > { %v2915_v42 = vrot.slane %v2813_v49, 7 }
 0x421   : > { %v2873_v26 = vpop.f32.mrf.mxu1 }
 0x422   : > { %v2972_v20 = vrot.slane %v2873_v26, 1  ;;  %v2916_v39 = vsel %vm9392_vm15, %v9391_v32, %v2915_v42  ;;  %v2844_v50 = vpop.f32.mrf.mxu0  ;;  %vm9240_vm15 = vcmp.lt.s32.totalorder %v7999_v36, 7 }
 0x423   : > { %v2939_v41 = vsel %vm2899_vm6, %v2916_v39, 0.0 }
 0x424   : > { %v2973_v28 = vsel %vm9393_vm11, %v2971_v35, %v2972_v20  ;;  %v2947_v25 = vadd.f32 %v2939_v41, %v2842_v63  ;;  %vm9403_vm11 = vmmov %vm9396_vm1 }
 0x425   : > { %v2995_v18 = vsel %vm2955_vm3, %v2973_v28, 0.0 }
 0x426   : > { %v3003_v19 = vadd.f32 %v2995_v18, %v2947_v25 }
 0x427   : > { %v2815_v34 = vpop.f32.mrf.mxu3 }
 0x428   : > { %v2917_v16 = vrot.slane %v2815_v34, 7  ;;  %v3013_v33 = vadd.f32 %v7978_v21, %v3003_v19 }
 0x429   : > { %v2876_v45 = vpop.f32.mrf.mxu1 }
 0x42a   : > { %v2974_v54 = vrot.slane %v2876_v45, 1  ;;  %v2918_v51 = vsel %vm9395_vm4, %v2915_v42, %v2917_v16  ;;  %v2847_v48 = vpop.f32.mrf.mxu0  ;;  %v3021_v52 = vmax.f32 %v3013_v33, 0.0  ;;  %vm2903_vm4 = vcmp.ge.s32.totalorder %v8009_v58, 1 }
 0x42b   : > { %v2940_v0 = vsel %vm2900_vm7, %v2918_v51, 0.0 }
 0x42c   : > { %v2975_v53 = vsel %vm9396_vm1, %v2972_v20, %v2974_v54  ;;  %v2948_v43 = vadd.f32 %v2940_v0, %v2844_v50  ;;  %vm9404_vm1 = vmmov %vm9398_vm9  ;;  %v5685_v0 = vld [vmem:[%s9181_s6 + $0x118] sm:$0xf] }
 0x42d   : > { %v2996_v6 = vsel %vm9238_vm8, %v2975_v53, 0.0  ;;  %v6178_v53 = vld [vmem:[%s9181_s6 + $0x128] sm:$0xf0] }
 0x42e   : > { %v3004_v56 = vadd.f32 %v2996_v6, %v2948_v43  ;;  %v6176_v43 = vld [vmem:[%s9181_s6 + $0x11c] sm:$0xf]  ;;  %v5686_v33 = vor.u32 %v6178_v53, %v5685_v0  ;;  %v5693_v0 = vld [vmem:[%s9181_s6 + $0x120] sm:$0xf]  ;;  %v6179_v53 = vld [vmem:[%s9181_s6 + $0x130] sm:$0xf0] }
 0x42f   : > { %v2818_v23 = vpop.f32.mrf.mxu3 }
 0x430   : > { %v3014_v22 = vadd.f32 %v7978_v21, %v3004_v56  ;;  %v2919_v38 = vrot.slane %v2818_v23, 7  ;;  %v5687_v56 = vld [vmem:[%s9181_s6 + $0x12c] sm:$0xf0]  ;;  %3654 = vmatpush.bf16.msra.mxu1 %v5686_v33 }
 0x431   : > { %v2878_v29 = vpop.f32.mrf.mxu1 }
 0x432   : > { %v3022_v37 = vmax.f32 %v3014_v22, 0.0  ;;  %v2976_v1 = vrot.slane %v2878_v29, 1  ;;  %v2920_v40 = vsel %vm9398_vm9, %v2917_v16, %v2919_v38  ;;  %v2849_v4 = vpop.f32.mrf.mxu0  ;;  %vm2959_vm9 = vcmp.lt.s32.totalorder %v8009_v58, 7  ;;  %v9405_v16 = vld [vmem:[#allocation8_spill] sm:$0xff] }
 0x433   : > { %v2941_v9 = vsel %vm2901_vm14, %v2920_v40, 0.0  ;;  %v8023_v45 = vand.u32 7, %v9405_v16  ;;  %v5690_v22 = vor.u32 %v6176_v43, %v5687_v56  ;;  %v6177_v43 = vld [vmem:[%s9181_s6 + $0x124] sm:$0xf]  ;;  %v5665_v56 = vld [vmem:[%s9181_s6 + $0xf0] sm:$0xf] }
 0x434   : > { %v3029_v57 = vpack.c.bf16 %v3022_v37, %v3021_v52  ;;  %v2977_v11 = vsel %vm9399_vm2, %v2974_v54, %v2976_v1  ;;  %v2949_v27 = vadd.f32 %v2941_v9, %v2847_v48 }
 0x435   : > { %v2997_v10 = vsel %vm9239_vm10, %v2977_v11, 0.0  ;;  %3683 = vmatpush.bf16.msra.mxu2 %v5690_v22  ;;  %v6171_v22 = vld [vmem:[%s9181_s6 + $0xf4] sm:$0xf] }
 0x436   : > { %3201 = vmatmul.bf16.vlgmr.msrb.gmra.mxu2 %v3029_v57  ;;  %3259 = vmatmul.bf16.vlgmr.msra.gmra.mxu0 %v3029_v57  ;;  %v3005_v44 = vadd.f32 %v2997_v10, %v2949_v27 }
 0x437   : > { %v2820_v2 = vpop.f32.mrf.mxu3  ;;  %3230 = vmatmul.bf16.vlgmr.msra.gmra.mxu3 %v3029_v57 }
 0x438   : > { %v2921_v14 = vrot.slane %v2820_v2, 7  ;;  %v3015_v63 = vadd.f32 %v7978_v21, %v3005_v44 }
 0x439   : > { %v2881_v17 = vpop.f32.mrf.mxu1 }
 0x43a   : > { %v2978_v55 = vrot.slane %v2881_v17, 1  ;;  %v2922_v13 = vsel %vm9401_vm12, %v2919_v38, %v2921_v14  ;;  %v2852_v30 = vpop.f32.mrf.mxu0  ;;  %v3023_v39 = vmax.f32 %v3015_v63, 0.0  ;;  %vm2904_vm12 = vcmp.ge.s32.totalorder %v8023_v45, 1  ;;  %v9410_v63 = vld [vmem:[#allocation10_spill] sm:$0xff] }
 0x43b   : > { %v2942_v46 = vsel %vm2902_vm0, %v2922_v13, 0.0 }
 0x43c   : > { %v2979_v8 = vsel %vm9403_vm11, %v2976_v1, %v2978_v55  ;;  %v2950_v5 = vadd.f32 %v2942_v46, %v2849_v4  ;;  %vm9406_vm11 = vmmov %vm9404_vm1  ;;  %v9407_v1 = vld [vmem:[#allocation9_spill] sm:$0xff] }
 0x43d   : > { %v2998_v47 = vsel %vm9240_vm15, %v2979_v8, 0.0  ;;  %v8045_v40 = vand.u32 7, %v9407_v1 }
 0x43e   : > { %v3006_v49 = vadd.f32 %v2998_v47, %v2950_v5 }
 0x43f   : > { %v2823_v42 = vpop.f32.mrf.mxu3 }
 0x440   : > { %v3016_v26 = vadd.f32 %v7978_v21, %v3006_v49  ;;  %v2923_v35 = vrot.slane %v2823_v42, 7  ;;  %v8059_v49 = vand.u32 7, %v9410_v63  ;;  %v6161_v63 = vld [vmem:[%s9181_s6 + $0xa4] sm:$0xf] }
 0x441   : > { %v2883_v20 = vpop.f32.mrf.mxu1 }
 0x442   : > { %v2980_v50 = vrot.slane %v2883_v20, 1  ;;  %v2924_v41 = vsel %vm9404_vm1, %v2921_v14, %v2923_v35  ;;  %v3024_v28 = vmax.f32 %v3016_v26, 0.0  ;;  %v2854_v48 = vpop.f32.mrf.mxu0  ;;  %vm9237_vm1 = vcmp.lt.s32.totalorder %v8023_v45, 7 }
 0x443   : > { %v2943_v25 = vsel %vm2903_vm4, %v2924_v41, 0.0 }
 0x444   : > { %v2981_v18 = vsel %vm9399_vm2, %v2978_v55, %v2980_v50  ;;  %v3030_v34 = vpack.c.bf16 %v3024_v28, %v3023_v39  ;;  %v2951_v19 = vadd.f32 %v2943_v25, %v2852_v30 }
 0x445   : > { %v2999_v54 = vsel %vm2959_vm9, %v2981_v18, 0.0 }
 0x446   : > { %3206 = vmatmul.bf16.gmra.mxu2 %v3030_v34  ;;  %3264 = vmatmul.bf16.gmra.mxu0 %v3030_v34  ;;  %v3007_v38 = vadd.f32 %v2999_v54, %v2951_v19 }
 0x447   : > { %v2825_v51 = vpop.f32.mrf.mxu3  ;;  %3235 = vmatmul.bf16.gmra.mxu3 %v3030_v34 }
 0x448   : > { %v2925_v6 = vrot.slane %v2825_v51, 7  ;;  %v3017_v11 = vadd.f32 %v7978_v21, %v3007_v38 }
 0x449   : > { %v2886_v23 = vpop.f32.mrf.mxu1 }
 0x44a   : > { %v2982_v29 = vrot.slane %v2886_v23, 1  ;;  %v2926_v52 = vsel %vm9406_vm11, %v2923_v35, %v2925_v6  ;;  %vm9236_vm11 = vcmp.ge.s32.totalorder %v8045_v40, 1  ;;  %v2857_v17 = vpop.f32.mrf.mxu0  ;;  %v3025_v55 = vmax.f32 %v3017_v11, 0.0  ;;  %v6173_v23 = vld [vmem:[%s9181_s6 + $0x100] sm:$0xf0] }
 0x44b   : > { %v2944_v37 = vsel %vm2904_vm12, %v2926_v52, 0.0  ;;  %v5666_v38 = vor.u32 %v6173_v23, %v5665_v56  ;;  %v5673_v52 = vld [vmem:[%s9181_s6 + $0xf8] sm:$0xf]  ;;  %v5585_v56 = vld [vmem:[%s9181_s6 + $0x50] sm:$0xf] }
 0x44c   : > { %v2983_v9 = vsel %vm9399_vm2, %v2980_v50, %v2982_v29  ;;  %v2952_v4 = vadd.f32 %v2944_v37, %v2854_v48  ;;  %vm2961_vm2 = vcmp.lt.s32.totalorder %v8045_v40, 7  ;;  %v6174_v37 = vld [vmem:[%s9181_s6 + $0x108] sm:$0xf0]  ;;  %v6153_v23 = vld [vmem:[%s9181_s6 + $0x60] sm:$0xf0] }
 0x44d   : > { %v3000_v57 = vsel %vm9237_vm1, %v2983_v9, 0.0  ;;  %vm2962_vm1 = vcmp.lt.s32.totalorder %v8059_v49, 7  ;;  %v5674_v9 = vor.u32 %v6174_v37, %v5673_v52  ;;  %3655 = vmatpush.bf16.msra.mxu1 %v5666_v38  ;;  %v5586_v38 = vor.u32 %v6153_v23, %v5585_v56  ;;  %v5593_v52 = vld [vmem:[%s9181_s6 + $0x58] sm:$0xf]  ;;  %v6154_v37 = vld [vmem:[%s9181_s6 + $0x68] sm:$0xf0] }
 0x44e   : > { %v3008_v27 = vadd.f32 %v3000_v57, %v2952_v4  ;;  %v6172_v4 = vld [vmem:[%s9181_s6 + $0xfc] sm:$0xf]  ;;  %v5675_v57 = vld [vmem:[%s9181_s6 + $0x10c] sm:$0xf0] }
 0x44f   : > { %v2828_v10 = vpop.f32.mrf.mxu3  ;;  %v8113_v11 = vor.u32 %v6172_v4, %v5675_v57  ;;  %v6152_v4 = vld [vmem:[%s9181_s6 + $0x5c] sm:$0xf]  ;;  %v5595_v57 = vld [vmem:[%s9181_s6 + $0x6c] sm:$0xf0] }
 0x450   : > { %v3018_v2 = vadd.f32 %v7978_v21, %v3008_v27  ;;  %v2927_v14 = vrot.slane %v2828_v10, 7  ;;  %v5645_v27 = vld [vmem:[%s9181_s6 + $0xc8] sm:$0xf]  ;;  %v6168_v10 = vld [vmem:[%s9181_s6 + $0xd8] sm:$0xf0] }
 0x451   : > { %v2888_v44 = vpop.f32.mrf.mxu1 }
 0x452   : > { %v2928_v13 = vsel %vm9408_vm5, %v2925_v6, %v2927_v14  ;;  %v3026_v46 = vmax.f32 %v3018_v2, 0.0  ;;  %v2984_v3 = vrot.slane %v2888_v44, 1  ;;  %vm2906_vm5 = vcmp.ge.s32.totalorder %v8059_v49, 1  ;;  %v2859_v41 = vpop.f32.mrf.mxu0  ;;  %v6166_v2 = vld [vmem:[%s9181_s6 + $0xcc] sm:$0xf] }
 0x453   : > { %v2945_v8 = vsel %vm9236_vm11, %v2928_v13, 0.0  ;;  %vm9411_vm11 = vcmask 1040384   ;;  %v5694_v6 = vor.u32 %v6179_v53, %v5693_v0  ;;  %v5653_v44 = vld [vmem:[%s9181_s6 + $0xd0] sm:$0xf]  ;;  %v6159_v0 = vld [vmem:[%s9181_s6 + $0x90] sm:$0xf0] }
 0x454   : > { %v3031_v5 = vpack.c.bf16 %v3026_v46, %v3025_v55  ;;  %v2985_v47 = vsel %vm9409_vm13, %v2982_v29, %v2984_v3  ;;  %v2953_v30 = vadd.f32 %v2945_v8, %v2857_v17  ;;  %v2986_v50 = vsel %vm9409_vm13, %v2984_v3, %v6937_v15  ;;  %v5667_v29 = vld [vmem:[%s9181_s6 + $0x104] sm:$0xf0]  ;;  %v5647_v17 = vld [vmem:[%s9181_s6 + $0xdc] sm:$0xf0]  ;;  %v6169_v55 = vld [vmem:[%s9181_s6 + $0xe0] sm:$0xf0] }
 0x455   : > { %v3001_v26 = vsel %vm2961_vm2, %v2985_v47, 0.0  ;;  %v3002_v18 = vsel %vm2962_vm1, %v2986_v50, 0.0  ;;  %3712 = vmatpush.bf16.msrb.mxu3 %v5694_v6  ;;  %v5670_v1 = vor.u32 %v6171_v22, %v5667_v29  ;;  %v5650_v13 = vor.u32 %v6166_v2, %v5647_v17  ;;  %v6167_v3 = vld [vmem:[%s9181_s6 + $0xd4] sm:$0xf]  ;;  %v5655_v8 = vld [vmem:[%s9181_s6 + $0xe4] sm:$0xf0] }
 0x456   : > { %3211 = vmatmul.bf16.gmra.mxu2 %v3031_v5  ;;  %3269 = vmatmul.bf16.gmra.mxu0 %v3031_v5  ;;  %v3009_v20 = vadd.f32 %v3001_v26, %v2953_v30  ;;  %v5654_v46 = vor.u32 %v6169_v55, %v5653_v44  ;;  %v5625_v47 = vld [vmem:[%s9181_s6 + $0xa0] sm:$0xf]  ;;  %v6163_v30 = vld [vmem:[%s9181_s6 + $0xb0] sm:$0xf0]  ;;  %v5627_v26 = vld [vmem:[%s9181_s6 + $0xb4] sm:$0xf0] }
 0x457   : > { %v2830_v42 = vpop.f32.mrf.mxu3  ;;  %3240 = vmatmul.bf16.gmra.mxu3 %v3031_v5  ;;  %3684 = vmatpush.bf16.msra.mxu2 %v5670_v1  ;;  %v8140_v5 = vor.u32 %v6167_v3, %v5655_v8  ;;  %v6157_v53 = vld [vmem:[%s9181_s6 + $0x84] sm:$0xf]  ;;  %v6151_v22 = vld [vmem:[%s9181_s6 + $0x54] sm:$0xf]  ;;  %v5587_v29 = vld [vmem:[%s9181_s6 + $0x64] sm:$0xf0] }
 0x458   : > { %v2929_v35 = vrot.slane %v2830_v42, 7  ;;  %v3019_v16 = vadd.f32 %v7978_v21, %v3009_v20  ;;  %v5626_v42 = vor.u32 %v6163_v30, %v5625_v47  ;;  %v6164_v20 = vld [vmem:[%s9181_s6 + $0xb8] sm:$0xf0]  ;;  %v5590_v1 = vor.u32 %v6151_v22, %v5587_v29  ;;  %v5567_v44 = vld [vmem:[%s9181_s6 + $0x3c] sm:$0xf0] }
 0x459   : > { %3713 = vmatpush.bf16.msrb.mxu3 %v5674_v9  ;;  %v5594_v9 = vor.u32 %v6154_v37, %v5593_v52  ;;  %v6148_v2 = vld [vmem:[%s9181_s6 + $0x38] sm:$0xf0]  ;;  %v5573_v55 = vld [vmem:[%s9181_s6 + $0x30] sm:$0xf]  ;;  %v6147_v8 = vld [vmem:[%s9181_s6 + $0x34] sm:$0xf] }
 0x45a   : > { %v2930_v39 = vsel %vm9411_vm11, %v2927_v14, %v2929_v35  ;;  %v3027_v51 = vmax.f32 %v3019_v16, 0.0  ;;  %v5646_v14 = vor.u32 %v6168_v10, %v5645_v27  ;;  %v5633_v35 = vld [vmem:[%s9181_s6 + $0xa8] sm:$0xf]  ;;  %v6156_v16 = vld [vmem:[%s9181_s6 + $0x7c] sm:$0xf]  ;;  %v5598_v27 = vor.u32 %v6152_v4, %v5595_v57 }
 0x45b   : > { %v2946_v28 = vsel %vm2906_vm5, %v2930_v39, 0.0  ;;  %3685 = vmatpush.bf16.msra.mxu2 %v5650_v13  ;;  %v5630_v39 = vor.u32 %v6161_v63, %v5627_v26  ;;  %v5634_v50 = vor.u32 %v6164_v20, %v5633_v35  ;;  %v5565_v10 = vld [vmem:[%s9181_s6 + $0x28] sm:$0xf]  ;;  %v6149_v13 = vld [vmem:[%s9181_s6 + $0x40] sm:$0xf0] }
 0x45c   : > { %v2954_v25 = vadd.f32 %v2946_v28, %v2859_v41  ;;  %3656 = vmatpush.bf16.msra.mxu1 %v5646_v14  ;;  %v6162_v41 = vld [vmem:[%s9181_s6 + $0xac] sm:$0xf]  ;;  %v5635_v28 = vld [vmem:[%s9181_s6 + $0xbc] sm:$0xf0]  ;;  %v5566_v17 = vor.u32 %v6148_v2, %v5565_v10  ;;  %v5574_v3 = vor.u32 %v6149_v13, %v5573_v55  ;;  %v5575_v47 = vld [vmem:[%s9181_s6 + $0x44] sm:$0xf0] }
 0x45d   : > { %3714 = vmatpush.bf16.msrb.mxu3 %v5654_v46  ;;  %v6146_v14 = vld [vmem:[%s9181_s6 + $0x2c] sm:$0xf]  ;;  %v5578_v30 = vor.u32 %v6147_v8, %v5575_v47  ;;  %v5545_v63 = vld [vmem:[%s9181_s6] sm:$0xf]  ;;  %v6141_v26 = vld [vmem:[%s9181_s6 + $0x4] sm:$0xf] }
 0x45e   : > { %v3010_v34 = vadd.f32 %v3002_v18, %v2954_v25  ;;  %v8167_v25 = vor.u32 %v6162_v41, %v5635_v28  ;;  %v5605_v18 = vld [vmem:[%s9181_s6 + $0x78] sm:$0xf]  ;;  %v5570_v46 = vor.u32 %v6146_v14, %v5567_v44  ;;  %v8284_v37 = vld [vmem:[%s9187_s12 + $0x4] ss:$0 sm:$0xff] }
 0x45f   : > { %3686 = vmatpush.bf16.msra.mxu2 %v5630_v39  ;;  %v5547_v20 = vld [vmem:[%s9181_s6 + $0x14] sm:$0xf0]  ;;  %v5553_v39 = vld [vmem:[%s9181_s6 + $0x8] sm:$0xf] }
 0x460   : > { %v3020_v19 = vadd.f32 %v7978_v21, %v3010_v34  ;;  %v5695_v21 = vld [vmem:[%s9181_s6 + $0x134] sm:$0xf0]  ;;  %3657 = vmatpush.bf16.msra.mxu1 %v5626_v42  ;;  %v6158_v34 = vld [vmem:[%s9181_s6 + $0x88] sm:$0xf0]  ;;  %v6143_v42 = vld [vmem:[%s9181_s6 + $0x10] sm:$0xf0]  ;;  %v5550_v41 = vor.u32 %v6141_v26, %v5547_v20 }
 0x461   : > { %v8086_v33 = vor.u32 %v6177_v43, %v5695_v21  ;;  %3715 = vmatpush.bf16.msrb.mxu3 %v5634_v50  ;;  %v5615_v43 = vld [vmem:[%s9181_s6 + $0x94] sm:$0xf0]  ;;  %v5546_v35 = vor.u32 %v6143_v42, %v5545_v63  ;;  %v6144_v50 = vld [vmem:[%s9181_s6 + $0x18] sm:$0xf0] }
 0x462   : > { %v3028_v54 = vmax.f32 %v3020_v19, 0.0  ;;  %v5606_v19 = vor.u32 %v6158_v34, %v5605_v18  ;;  %v8194_v21 = vor.u32 %v6157_v53, %v5615_v43  ;;  %v5554_v28 = vor.u32 %v6144_v50, %v5553_v39  ;;  %v6142_v18 = vld [vmem:[%s9181_s6 + $0xc] sm:$0xf]  ;;  %v5555_v34 = vld [vmem:[%s9181_s6 + $0x1c] sm:$0xf0] }
 0x463   : > { %3741 = vmatpush.bf16.msrb.mxu0 %v8086_v33 }
 0x464   : > { %v3032_v48 = vpack.c.bf16 %v3028_v54, %v3027_v51  ;;  %v5607_v54 = vld [vmem:[%s9181_s6 + $0x8c] sm:$0xf0]  ;;  %v5613_v51 = vld [vmem:[%s9181_s6 + $0x80] sm:$0xf]  ;;  %3658 = vmatpush.bf16.msra.mxu1 %v5606_v19 }
 0x465   : > { %v5614_v6 = vor.u32 %v6159_v0, %v5613_v51 }
 0x466   : > { %3216 = vmatmul.bf16.gmra.mxu2 %v3032_v48  ;;  %3274 = vmatmul.bf16.gmra.mxu0 %v3032_v48 }
 0x467   : > { %3245 = vmatmul.bf16.gmra.mxu3 %v3032_v48  ;;  %3742 = vmatpush.bf16.msrb.mxu0 %v8113_v11  ;;  %v5610_v48 = vor.u32 %v6156_v16, %v5607_v54  ;;  %v5558_v16 = vor.u32 %v6142_v18, %v5555_v34 }
 0x468   : > { %3716 = vmatpush.bf16.msrb.mxu3 %v5614_v6  ;;  %3659 = vmatpush.bf16.msra.mxu1 %v5586_v38 }
 0x469   : > { %3687 = vmatpush.bf16.msra.mxu2 %v5610_v48 }
 0x46b   : > { %3743 = vmatpush.bf16.msrb.mxu0 %v8140_v5 }
 0x46c   : > { %3717 = vmatpush.bf16.msrb.mxu3 %v5594_v9  ;;  %3660 = vmatpush.bf16.msra.mxu1 %v5566_v17 }
 0x46d   : > { %3688 = vmatpush.bf16.msra.mxu2 %v5590_v1 }
 0x46f   : > { %3744 = vmatpush.bf16.msrb.mxu0 %v8167_v25 }
 0x470   : > { %3718 = vmatpush.bf16.msrb.mxu3 %v5574_v3  ;;  %3661 = vmatpush.bf16.msra.mxu1 %v5546_v35  ;;  %v6180_v35 = vld [vmem:[%s9181_s6 + $0x138] sm:$0xf0] }
 0x471   : > { %3689 = vmatpush.bf16.msra.mxu2 %v5570_v46 }
 0x473   : > { %3745 = vmatpush.bf16.msrb.mxu0 %v8194_v21 }
 0x474   : > { %3719 = vmatpush.bf16.msrb.mxu3 %v5554_v28 }
 0x475   : > { %3690 = vmatpush.bf16.msra.mxu2 %v5550_v41 }
 0x477   : > { %3746 = vmatpush.bf16.msrb.mxu0 %v5598_v27 }
 0x479   : > { %6253 = vmatpush.bf16.msrb.mxu2 %v8086_v33 }
 0x47b   : > { %3747 = vmatpush.bf16.msrb.mxu0 %v5578_v30 }
 0x47d   : > { %6254 = vmatpush.bf16.msrb.mxu2 %v8113_v11 }
 0x47f   : > { %3748 = vmatpush.bf16.msrb.mxu0 %v5558_v16 }
 0x481   : > { %6255 = vmatpush.bf16.msrb.mxu2 %v8140_v5 }
 0x485   : > { %6256 = vmatpush.bf16.msrb.mxu2 %v8167_v25 }
 0x489   : > { %6257 = vmatpush.bf16.msrb.mxu2 %v8194_v21 }
 0x48d   : > { %6258 = vmatpush.bf16.msrb.mxu2 %v5598_v27 }
 0x491   : > { %6259 = vmatpush.bf16.msrb.mxu2 %v5578_v30  ;;  %v5701_v30 = vld [vmem:[%s9181_s6 + $0x128] sm:$0xf] }
 0x492   : > { %v5702_v39 = vor.u32 %v6180_v35, %v5701_v30 }
 0x494   : > { %3770 = vmatpush.bf16.msrb.mxu1 %v5702_v39  ;;  %v5581_v39 = vld [vmem:[%s9181_s6 + $0x38] sm:$0xf] }
 0x495   : > { %6260 = vmatpush.bf16.msrb.mxu2 %v5558_v16  ;;  %v5681_v16 = vld [vmem:[%s9181_s6 + $0x100] sm:$0xf] }
 0x4b3   : > { %v3260_v19 = vpop.f32.mrf.mxu0 }
 0x4b4   : > { %v3336_v53 = vrot.slane %v3260_v19, 1  ;;  %v6175_v19 = vld [vmem:[%s9181_s6 + $0x110] sm:$0xf0] }
 0x4b9   : > { %v3202_v54 = vpop.f32.mrf.mxu2 }
 0x4ba   : > { %v3288_v51 = vrot.slane %v3202_v54, 7  ;;  %v3231_v48 = vpop.f32.mrf.mxu3 }
 0x4bb   : > { %v3262_v0 = vpop.f32.mrf.mxu0 }
 0x4bc   : > { %v3337_v43 = vrot.slane %v3262_v0, 1  ;;  %v3289_v6 = vsel %vm9411_vm11, %v9391_v32, %v3288_v51 }
 0x4bd   : > { %v3312_v56 = vsel %vm2899_vm6, %v3289_v6, 0.0 }
 0x4be   : > { %v3338_v33 = vsel %vm9409_vm13, %v3336_v53, %v3337_v43  ;;  %v3320_v23 = vadd.f32 %v3312_v56, %v3231_v48  ;;  %v5682_v48 = vor.u32 %v6175_v19, %v5681_v16 }
 0x4bf   : > { %v3360_v11 = vsel %vm2955_vm3, %v3338_v33, 0.0  ;;  %v5661_v33 = vld [vmem:[%s9181_s6 + $0xd8] sm:$0xf] }
 0x4c0   : > { %v3368_v52 = vadd.f32 %v3360_v11, %v3320_v23  ;;  %3771 = vmatpush.bf16.msrb.mxu1 %v5682_v48  ;;  %v6170_v23 = vld [vmem:[%s9181_s6 + $0xe8] sm:$0xf0]  ;;  %v5561_v48 = vld [vmem:[%s9181_s6 + $0x10] sm:$0xf] }
 0x4c1   : > { %v3204_v5 = vpop.f32.mrf.mxu2 }
 0x4c2   : > { %v3290_v22 = vrot.slane %v3204_v5, 7  ;;  %v3233_v38 = vpop.f32.mrf.mxu3  ;;  %v3378_v10 = vadd.f32 %v8284_v37, %v3368_v52  ;;  %v5662_v5 = vor.u32 %v6170_v23, %v5661_v33 }
 0x4c3   : > { %v3265_v29 = vpop.f32.mrf.mxu0 }
 0x4c4   : > { %v3339_v1 = vrot.slane %v3265_v29, 1  ;;  %v3291_v25 = vsel %vm9411_vm11, %v3288_v51, %v3290_v22  ;;  %v3386_v46 = vmax.f32 %v3378_v10, 0.0  ;;  %3772 = vmatpush.bf16.msrb.mxu1 %v5662_v5 }
 0x4c5   : > { %v3313_v9 = vsel %vm2900_vm7, %v3291_v25, 0.0 }
 0x4c6   : > { %v3340_v4 = vsel %vm9409_vm13, %v3337_v43, %v3339_v1  ;;  %v3321_v57 = vadd.f32 %v3313_v9, %v3233_v38  ;;  %v5641_v9 = vld [vmem:[%s9181_s6 + $0xb0] sm:$0xf] }
 0x4c7   : > { %v3361_v21 = vsel %vm9238_vm8, %v3340_v4, 0.0  ;;  %v6165_v4 = vld [vmem:[%s9181_s6 + $0xc0] sm:$0xf0]  ;;  %vm9412_vm8 = vcmp.lt.s32.totalorder %v8023_v45, 7 }
 0x4c8   : > { %v3369_v2 = vadd.f32 %v3361_v21, %v3321_v57 }
 0x4c9   : > { %v3207_v14 = vpop.f32.mrf.mxu2 }
 0x4ca   : > { %v3379_v17 = vadd.f32 %v8284_v37, %v3369_v2  ;;  %v3292_v44 = vrot.slane %v3207_v14, 7  ;;  %v3236_v55 = vpop.f32.mrf.mxu3  ;;  %v5642_v2 = vor.u32 %v6165_v4, %v5641_v9 }
 0x4cb   : > { %v3267_v13 = vpop.f32.mrf.mxu0 }
 0x4cc   : > { %v3387_v3 = vmax.f32 %v3379_v17, 0.0  ;;  %v3341_v8 = vrot.slane %v3267_v13, 1  ;;  %v3293_v27 = vsel %vm9411_vm11, %v3290_v22, %v3292_v44  ;;  %3773 = vmatpush.bf16.msrb.mxu1 %v5642_v2  ;;  %v6160_v13 = vld [vmem:[%s9181_s6 + $0x98] sm:$0xf0] }
 0x4cd   : > { %v3314_v47 = vsel %vm2901_vm14, %v3293_v27, 0.0  ;;  %v6155_v27 = vld [vmem:[%s9181_s6 + $0x70] sm:$0xf0] }
 0x4ce   : > { %v8297_v63 = vpack.c.bf16 %v3387_v3, %v3386_v46  ;;  %v3342_v42 = vsel %vm9409_vm13, %v3339_v1, %v3341_v8  ;;  %v3322_v26 = vadd.f32 %v3314_v47, %v3236_v55  ;;  %v5621_v55 = vld [vmem:[%s9181_s6 + $0x88] sm:$0xf] }
 0x4cf   : > { %v3362_v20 = vsel %vm9239_vm10, %v3342_v42, 0.0  ;;  %v5622_v3 = vor.u32 %v6160_v13, %v5621_v55  ;;  %vm9415_vm10 = vmmov %vm9409_vm13 }
 0x4d0   : > { %3662 = vmatmul.bf16.vlgmr.msra.gmra.mxu1 %v8297_v63  ;;  %3691 = vmatmul.bf16.vlgmr.msra.gmra.mxu2 %v8297_v63  ;;  %v3370_v18 = vadd.f32 %v3362_v20, %v3322_v26 }
 0x4d1   : > { %v3209_v50 = vpop.f32.mrf.mxu2  ;;  %3720 = vmatmul.bf16.vlgmr.msrb.gmra.mxu3 %v8297_v63  ;;  %3749 = vmatmul.bf16.vlgmr.msrb.gmra.mxu0 %v8297_v63 }
 0x4d2   : > { %v3294_v41 = vrot.slane %v3209_v50, 7  ;;  %v3238_v28 = vpop.f32.mrf.mxu3  ;;  %v3380_v6 = vadd.f32 %v8284_v37, %v3370_v18  ;;  %3774 = vmatpush.bf16.msrb.mxu1 %v5622_v3  ;;  %v6150_v50 = vld [vmem:[%s9181_s6 + $0x48] sm:$0xf0] }
 0x4d3   : > { %v3270_v34 = vpop.f32.mrf.mxu0 }
 0x4d4   : > { %v3343_v54 = vrot.slane %v3270_v34, 1  ;;  %v3295_v51 = vsel %vm9411_vm11, %v3292_v44, %v3294_v41  ;;  %v3388_v1 = vmax.f32 %v3380_v6, 0.0 }
 0x4d5   : > { %v3315_v0 = vsel %vm2902_vm0, %v3295_v51, 0.0 }
 0x4d6   : > { %v3344_v53 = vsel %vm9409_vm13, %v3341_v8, %v3343_v54  ;;  %v3323_v43 = vadd.f32 %v3315_v0, %v3238_v28  ;;  %v5601_v8 = vld [vmem:[%s9181_s6 + $0x60] sm:$0xf]  ;;  %v6145_v0 = vld [vmem:[%s9181_s6 + $0x20] sm:$0xf0] }
 0x4d7   : > { %v3363_v56 = vsel %vm9240_vm15, %v3344_v53, 0.0  ;;  %v5602_v35 = vor.u32 %v6155_v27, %v5601_v8  ;;  %v5562_v23 = vor.u32 %v6145_v0, %v5561_v48  ;;  %vm3800_vm15 = vcmp.ge.s32.totalorder %v7970_v24, 2 }
 0x4d8   : > { %v3371_v11 = vadd.f32 %v3363_v56, %v3323_v43 }
 0x4d9   : > { %v3212_v22 = vpop.f32.mrf.mxu2  ;;  %3775 = vmatpush.bf16.msrb.mxu1 %v5602_v35 }
 0x4da   : > { %v3381_v38 = vadd.f32 %v8284_v37, %v3371_v11  ;;  %v3296_v29 = vrot.slane %v3212_v22, 7  ;;  %v3241_v52 = vpop.f32.mrf.mxu3 }
 0x4db   : > { %v3272_v25 = vpop.f32.mrf.mxu0 }
 0x4dc   : > { %v3389_v57 = vmax.f32 %v3381_v38, 0.0  ;;  %v3345_v21 = vrot.slane %v3272_v25, 1  ;;  %v3297_v10 = vsel %vm9411_vm11, %v3294_v41, %v3296_v29 }
 0x4dd   : > { %v3316_v14 = vsel %vm2903_vm4, %v3297_v10, 0.0 }
 0x4de   : > { %v8341_v17 = vpack.c.bf16 %v3389_v57, %v3388_v1  ;;  %v3346_v44 = vsel %vm9409_vm13, %v3343_v54, %v3345_v21  ;;  %v3324_v46 = vadd.f32 %v3316_v14, %v3241_v52  ;;  %v5582_v54 = vor.u32 %v6150_v50, %v5581_v39 }
 0x4df   : > { %v3364_v47 = vsel %vm2959_vm9, %v3346_v44, 0.0 }
 0x4e0   : > { %3667 = vmatmul.bf16.gmra.mxu1 %v8341_v17  ;;  %3696 = vmatmul.bf16.gmra.mxu2 %v8341_v17  ;;  %v3372_v41 = vadd.f32 %v3364_v47, %v3324_v46 }
 0x4e1   : > { %v3214_v42 = vpop.f32.mrf.mxu2  ;;  %3725 = vmatmul.bf16.gmra.mxu3 %v8341_v17  ;;  %3754 = vmatmul.bf16.gmra.mxu0 %v8341_v17 }
 0x4e2   : > { %v3298_v26 = vrot.slane %v3214_v42, 7  ;;  %v3243_v30 = vpop.f32.mrf.mxu3  ;;  %v3382_v53 = vadd.f32 %v8284_v37, %v3372_v41  ;;  %3776 = vmatpush.bf16.msrb.mxu1 %v5582_v54 }
 0x4e3   : > { %v3275_v20 = vpop.f32.mrf.mxu0 }
 0x4e4   : > { %v3347_v28 = vrot.slane %v3275_v20, 1  ;;  %v3299_v18 = vsel %vm9411_vm11, %v3296_v29, %v3298_v26  ;;  %v3390_v22 = vmax.f32 %v3382_v53, 0.0 }
 0x4e5   : > { %v3317_v34 = vsel %vm2904_vm12, %v3299_v18, 0.0 }
 0x4e6   : > { %v3348_v16 = vsel %vm9409_vm13, %v3345_v21, %v3347_v28  ;;  %v3325_v19 = vadd.f32 %v3317_v34, %v3243_v30  ;;  %3777 = vmatpush.bf16.msrb.mxu1 %v5562_v23 }
 0x4e7   : > { %v3365_v51 = vsel %vm9412_vm8, %v3348_v16, 0.0  ;;  %vm9413_vm8 = vmmov %vm9411_vm11  ;;  %vm9414_vm11 = vcmp.ge.s32.totalorder %v8045_v40, 1 }
 0x4e8   : > { %v3373_v43 = vadd.f32 %v3365_v51, %v3325_v19 }
 0x4e9   : > { %v3217_v6 = vpop.f32.mrf.mxu2 }
 0x4ea   : > { %v3383_v56 = vadd.f32 %v8284_v37, %v3373_v43  ;;  %v3300_v33 = vrot.slane %v3217_v6, 7  ;;  %v3246_v11 = vpop.f32.mrf.mxu3 }
 0x4eb   : > { %v3277_v5 = vpop.f32.mrf.mxu0 }
 0x4ec   : > { %v3391_v38 = vmax.f32 %v3383_v56, 0.0  ;;  %v3301_v29 = vsel %vm9413_vm8, %v3298_v26, %v3300_v33  ;;  %v3349_v52 = vrot.slane %v3277_v5, 1 }
 0x4ed   : > { %v3318_v1 = vsel %vm9414_vm11, %v3301_v29, 0.0  ;;  %vm9417_vm11 = vcmask 1041408  }
 0x4ee   : > { %v3396_v25 = vpack.c.bf16 %v3391_v38, %v3390_v22  ;;  %v3350_v9 = vsel %vm9409_vm13, %v3347_v28, %v3349_v52  ;;  %v3326_v4 = vadd.f32 %v3318_v1, %v3246_v11  ;;  %v3351_v44 = vsel %vm9415_vm10, %v3349_v52, %v6937_v15  ;;  %vm9418_vm13 = vmmov %vm9413_vm8 }
 0x4ef   : > { %v3366_v21 = vsel %vm2961_vm2, %v3350_v9, 0.0  ;;  %v3367_v3 = vsel %vm2962_vm1, %v3351_v44, 0.0  ;;  %vm3799_vm10 = vcmp.ge.s32.totalorder %v7960_v59, 2 }
 0x4f0   : > { %3672 = vmatmul.bf16.gmra.mxu1 %v3396_v25  ;;  %3701 = vmatmul.bf16.gmra.mxu2 %v3396_v25  ;;  %v3374_v2 = vadd.f32 %v3366_v21, %v3326_v4 }
 0x4f1   : > { %v3219_v57 = vpop.f32.mrf.mxu2  ;;  %3730 = vmatmul.bf16.gmra.mxu3 %v3396_v25  ;;  %3759 = vmatmul.bf16.gmra.mxu0 %v3396_v25 }
 0x4f2   : > { %v3302_v10 = vrot.slane %v3219_v57, 7  ;;  %v3248_v55 = vpop.f32.mrf.mxu3  ;;  %v3384_v8 = vadd.f32 %v8284_v37, %v3374_v2 }
 0x4f4   : > { %v3303_v14 = vsel %vm9413_vm8, %v3300_v33, %v3302_v10  ;;  %v3392_v42 = vmax.f32 %v3384_v8, 0.0  ;;  %vm9419_vm8 = vmmov %vm9417_vm11 }
 0x4f5   : > { %v3319_v13 = vsel %vm2906_vm5, %v3303_v14, 0.0 }
 0x4f6   : > { %v3327_v46 = vadd.f32 %v3319_v13, %v3248_v55 }
 0x4f8   : > { %v3375_v27 = vadd.f32 %v3367_v3, %v3327_v46 }
 0x4fa   : > { %v3385_v47 = vadd.f32 %v8284_v37, %v3375_v27  ;;  %v9416_v37 = vld [vmem:[#allocation11_spill] sm:$0xff] }
 0x4fc   : > { %v3393_v26 = vmax.f32 %v3385_v47, 0.0 }
 0x4fe   : > { %v3397_v30 = vpack.c.bf16 %v3393_v26, %v3392_v42 }
 0x500   : > { %3677 = vmatmul.bf16.gmra.mxu1 %v3397_v30  ;;  %3706 = vmatmul.bf16.gmra.mxu2 %v3397_v30 }
 0x501   : > { %3735 = vmatmul.bf16.gmra.mxu3 %v3397_v30 }
 0x510   : > { %3764 = vmatmul.bf16.vlgmr.msrb.gmra.mxu2 %v3397_v30  ;;  %3778 = vmatmul.bf16.vlgmr.msrb.gmra.mxu1 %v8297_v63 }
 0x520   : > { %3783 = vmatmul.bf16.gmra.mxu1 %v8341_v17 }
 0x530   : > { %3788 = vmatmul.bf16.gmra.mxu1 %v3396_v25 }
 0x540   : > { %3793 = vmatmul.bf16.gmra.mxu1 %v3397_v30 }
 0x54d   : > { %v3663_v35 = vpop.f32.mrf.mxu1 }
 0x54e   : > { %v3815_v20 = vrot.slane %v3663_v35, 6  ;;  %v3750_v8 = vpop.f32.mrf.mxu0 }
 0x550   : > { %v3816_v41 = vsel %vm9417_vm11, %v9416_v37, %v3815_v20  ;;  %vm9420_vm11 = vmmov %vm9418_vm13 }
 0x551   : > { %v3839_v16 = vsel %vm3799_vm10, %v3816_v41, 0.0  ;;  %vm3801_vm10 = vcmp.ge.s32.totalorder %v7986_v61, 2 }
 0x553   : > { %v3692_v39 = vpop.f32.mrf.mxu2 }
 0x554   : > { %v3855_v50 = vrot.slane %v3692_v39, 7  ;;  %v3721_v54 = vpop.f32.mrf.mxu3 }
 0x555   : > { %v3665_v28 = vpop.f32.mrf.mxu1 }
 0x556   : > { %v3817_v18 = vrot.slane %v3665_v28, 6  ;;  %v3856_v34 = vsel %vm9418_vm13, %v9391_v32, %v3855_v50  ;;  %vm9422_vm13 = vmmov %vm9420_vm11  ;;  %v8439_v26 = vpop.f32.mrf.mxu0 }
 0x557   : > { %v3879_v63 = vsel %vm2899_vm6, %v3856_v34, 0.0  ;;  %vm9421_vm6 = vmmov %vm9419_vm8  ;;  %v3912_v35 = vrot.slane %v8439_v26, 1 }
 0x558   : > { %v3887_v17 = vadd.f32 %v3879_v63, %v3839_v16  ;;  %v3818_v19 = vsel %vm9419_vm8, %v3815_v20, %v3817_v18  ;;  %vm9425_vm8 = vmmov %vm9421_vm6  ;;  %v3911_v20 = vrot.slane %v3750_v8, 1 }
 0x559   : > { %v3840_v56 = vsel %vm3800_vm15, %v3818_v19, 0.0  ;;  %vm9424_vm15 = vmmov %vm9421_vm6 }
 0x55a   : > { %v3895_v51 = vadd.f32 %v3887_v17, %v3721_v54 }
 0x55b   : > { %v3694_v48 = vpop.f32.mrf.mxu2 }
 0x55c   : > { %v3857_v0 = vrot.slane %v3694_v48, 7  ;;  %v8437_v42 = vpop.f32.mrf.mxu3 }
 0x55d   : > { %v3668_v53 = vpop.f32.mrf.mxu1 }
 0x55e   : > { %v3819_v43 = vrot.slane %v3668_v53, 6  ;;  %v3858_v6 = vsel %vm9420_vm11, %v3855_v50, %v3857_v0  ;;  %vm9426_vm11 = vmmov %vm9421_vm6  ;;  %v8462_v53 = vpop.f32.mrf.mxu0 }
 0x55f   : > { %v3880_v33 = vsel %vm2900_vm7, %v3858_v6, 0.0  ;;  %vm9423_vm7 = vmmov %vm9421_vm6 }
 0x560   : > { %v8411_v23 = vadd.f32 %v3880_v33, %v3840_v56  ;;  %v3820_v11 = vsel %vm9421_vm6, %v3817_v18, %v3819_v43  ;;  %vm3951_vm6 = vcmp.lt.s32.totalorder %v7960_v59, 6 }
 0x561   : > { %v3841_v1 = vsel %vm3801_vm10, %v3820_v11, 0.0  ;;  %vm9428_vm10 = vcmask 1045504  }
 0x563   : > { %v8414_v5 = vpop.f32.mrf.mxu2 }
 0x564   : > { %v3859_v22 = vrot.slane %v8414_v5, 7  ;;  %v8442_v50 = vpop.f32.mrf.mxu3  ;;  %v3914_v5 = vrot.slane %v8462_v53, 1 }
 0x565   : > { %v3670_v38 = vpop.f32.mrf.mxu1 }
 0x566   : > { %v3821_v29 = vrot.slane %v3670_v38, 6  ;;  %v3860_v52 = vsel %vm9422_vm13, %v3857_v0, %v3859_v22  ;;  %v8466_v56 = vpop.f32.mrf.mxu0 }
 0x567   : > { %v3881_v25 = vsel %vm2901_vm14, %v3860_v52, 0.0  ;;  %vm9427_vm14 = vcmask 1046528  }
 0x568   : > { %v8423_v9 = vadd.f32 %v3881_v25, %v3841_v1  ;;  %v8426_v4 = vsel %vm9423_vm7, %v3819_v43, %v3821_v29  ;;  %v3913_v37 = vsel %vm9427_vm14, %v3911_v20, %v3912_v35  ;;  %vm3806_vm14 = vcmp.ge.s32.totalorder %v8059_v49, 2 }
 0x569   : > { %v3935_v34 = vsel %vm2955_vm3, %v3913_v37, 0.0  ;;  %vm9429_vm3 = vmmov %vm9422_vm13 }
 0x56a   : > { %v3943_v63 = vadd.f32 %v3935_v34, %v3895_v51  ;;  %vm9430_vm13 = vmmov %vm9429_vm3 }
 0x56b   : > { %v3699_v13 = vpop.f32.mrf.mxu2  ;;  %vm9431_vm7 = vmmov %vm9429_vm3 }
 0x56c   : > { %v8458_v48 = vpop.f32.mrf.mxu3 }
 0x56d   : > { %v3673_v57 = vpop.f32.mrf.mxu1 }
 0x56e   : > { %v3823_v21 = vrot.slane %v3673_v57, 6  ;;  %v8470_v38 = vpop.f32.mrf.mxu0  ;;  %v3861_v57 = vrot.slane %v3699_v13, 7 }
 0x570   : > { %v8429_v10 = vsel %vm9424_vm15, %v3821_v29, %v3823_v21  ;;  %vm9432_vm15 = vmmov %vm9429_vm3 }
 0x571   : > { %v3862_v37 = vsel %vm9432_vm15, %v3859_v22, %v3861_v57 }
 0x573   : > { %v3702_v47 = vpop.f32.mrf.mxu2 }
 0x574   : > { %v3731_v59 = vpop.f32.mrf.mxu3  ;;  %v3863_v52 = vrot.slane %v3702_v47, 7 }
 0x575   : > { %v3675_v2 = vpop.f32.mrf.mxu1 }
 0x576   : > { %v3825_v14 = vrot.slane %v3675_v2, 6  ;;  %v3762_v47 = vpop.f32.mrf.mxu0 }
 0x578   : > { %v8432_v44 = vsel %vm9425_vm8, %v3823_v21, %v3825_v14  ;;  %vm3803_vm8 = vcmp.ge.s32.totalorder %v8009_v58, 2 }
 0x57b   : > { %v3704_v39 = vpop.f32.mrf.mxu2 }
 0x57c   : > { %v3733_v11 = vpop.f32.mrf.mxu3  ;;  %v3865_v1 = vrot.slane %v3704_v39, 7 }
 0x57d   : > { %v3678_v55 = vpop.f32.mrf.mxu1 }
 0x57e   : > { %v3827_v46 = vrot.slane %v3678_v55, 6 }
 0x580   : > { %v8435_v3 = vsel %vm9426_vm11, %v3825_v14, %v3827_v46  ;;  %v3864_v14 = vsel %vm9429_vm3, %v3861_v57, %v3863_v52  ;;  %vm3804_vm11 = vcmp.ge.s32.totalorder %v8023_v45, 2 }
 0x581   : > { %v3883_v13 = vsel %vm2903_vm4, %v3864_v14, 0.0  ;;  %vm3805_vm4 = vcmp.ge.s32.totalorder %v8045_v40, 2  ;;  %v3918_v14 = vrot.slane %v8470_v38, 1 }
 0x583   : > { %v3707_v54 = vpop.f32.mrf.mxu2 }
 0x584   : > { %v3867_v21 = vrot.slane %v3707_v54, 7  ;;  %v3736_v55 = vpop.f32.mrf.mxu3  ;;  %v3920_v54 = vrot.slane %v3762_v47, 1 }
 0x585   : > { %v3680_v27 = vpop.f32.mrf.mxu1 }
 0x586   : > { %v3829_v2 = vrot.slane %v3680_v27, 6 }
 0x58b   : > { %v3709_v6 = vpop.f32.mrf.mxu2 }
 0x58c   : > { %v3869_v25 = vrot.slane %v3709_v6, 7  ;;  %v3844_v6 = vsel %vm3804_vm11, %v8432_v44, 0.0  ;;  %vm3957_vm11 = vcmp.lt.s32.totalorder %v8045_v40, 6 }
 0x58d   : > { %v3779_v30 = vpop.f32.mrf.mxu1 }
 0x58e   : > { %v3967_v28 = vrot.slane %v3779_v30, 2  ;;  %v3866_v30 = vsel %vm9430_vm13, %v3863_v52, %v3865_v1  ;;  %v3870_v20 = vsel %vm9431_vm7, %v3867_v21, %v3869_v25  ;;  %vm9435_vm13 = vcmp.ge.s32.totalorder %v8045_v40, 1 }
 0x58f   : > { %v3884_v22 = vsel %vm2904_vm12, %v3866_v30, 0.0  ;;  %v3916_v30 = vrot.slane %v8466_v56, 1 }
 0x590   : > { %v3892_v25 = vadd.f32 %v3884_v22, %v3844_v6 }
 0x593   : > { %v3765_v51 = vpop.f32.mrf.mxu2 }
 0x594   : > { %v3922_v57 = vrot.slane %v3765_v51, 1 }
 0x595   : > { %v8447_v41 = vpop.f32.mrf.mxu1 }
 0x596   : > { %v3968_v18 = vrot.slane %v8447_v41, 2 }
 0x598   : > { %v3969_v16 = vsel %vm9428_vm10, %v3967_v28, %v3968_v18  ;;  %vm9434_vm10 = vcmask 1041408  }
 0x599   : > { %v3991_v17 = vsel %vm3951_vm6, %v3969_v16, 0.0  ;;  %vm9433_vm6 = vmmov %vm9429_vm3  ;;  %v3830_v28 = vsel %vm9434_vm10, %v3827_v46, %v3829_v2  ;;  %vm3802_vm3 = vcmp.ge.s32.totalorder %v7999_v36, 2  ;;  %v3886_v16 = vsel %vm2906_vm5, %v3870_v20, 0.0 }
 0x59a   : > { %v8456_v19 = vadd.f32 %v3991_v17, %v3943_v63  ;;  %v3868_v27 = vsel %vm9433_vm6, %v3865_v1, %v3867_v21  ;;  %v3882_v63 = vsel %vm2902_vm0, %v3862_v37, 0.0  ;;  %v3843_v17 = vsel %vm3803_vm8, %v8429_v10, 0.0 }
 0x59b   : > { %v3767_v8 = vpop.f32.mrf.mxu2  ;;  %v3891_v46 = vadd.f32 %v3883_v13, %v3843_v17  ;;  %v3885_v52 = vsel %vm9435_vm13, %v3868_v27, 0.0  ;;  %v3846_v1 = vsel %vm3806_vm14, %v3830_v28, 0.0  ;;  %vm9436_vm0 = vcmask 1046528   ;;  %v3738_v13 = vpop.f32.mrf.mxu3 }
 0x59c   : > { %v3924_v39 = vrot.slane %v3767_v8, 1  ;;  %v3894_v21 = vadd.f32 %v3886_v16, %v3846_v1  ;;  %v3842_v2 = vsel %vm3802_vm3, %v8426_v4, 0.0  ;;  %v3845_v8 = vsel %vm3805_vm4, %v8435_v3, 0.0  ;;  %vm9437_vm12 = vmmov %vm9436_vm0 }
 0x59d   : > { %v8460_v0 = vpop.f32.mrf.mxu1  ;;  %v3915_v44 = vsel %vm9437_vm12, %v3912_v35, %v3914_v5  ;;  %v3890_v20 = vadd.f32 %v3882_v63, %v3842_v2  ;;  %v3893_v51 = vadd.f32 %v3885_v52, %v3845_v8  ;;  %vm9438_vm5 = vmmov %vm9436_vm0  ;;  %v3899_v3 = vadd.f32 %v3891_v46, %v3731_v59 }
 0x59e   : > { %v3926_v10 = vsel %vm9436_vm0, %v3924_v39, %v6937_v15  ;;  %v3921_v37 = vsel %vm9438_vm5, %v3918_v14, %v3920_v54  ;;  %vm9439_vm7 = vmmov %vm9436_vm0  ;;  %v3900_v27 = vadd.f32 %v3892_v25, %v3733_v11  ;;  %v3902_v26 = vadd.f32 %v3894_v21, %v3738_v13 }
 0x59f   : > { %v3925_v47 = vsel %vm9439_vm7, %v3922_v57, %v3924_v39  ;;  %v3942_v4 = vsel %vm2962_vm1, %v3926_v10, 0.0  ;;  %vm9440_vm15 = vmmov %vm9436_vm0  ;;  %vm3958_vm8 = vcmp.lt.s32.totalorder %v8059_v49, 6  ;;  %v3901_v16 = vadd.f32 %v3893_v51, %v3736_v55 }
 0x5a0   : > { %v3923_v28 = vsel %vm9440_vm15, %v3920_v54, %v3922_v57  ;;  %v3941_v39 = vsel %vm2961_vm2, %v3925_v47, 0.0  ;;  %v3950_v63 = vadd.f32 %v3942_v4, %v3902_v26  ;;  %vm3956_vm1 = vcmp.lt.s32.totalorder %v8023_v45, 6  ;;  %vm9446_vm13 = vmmov %vm9436_vm0  ;;  %v6200_v47 = vld [vmem:[%s9182_s7 + $0x98] sm:$0xf0]  ;;  %v5757_v26 = vld [vmem:[%s9182_s7 + $0x60] sm:$0xf] }
 0x5a1   : > { %vm9441_vm14 = vcmask 1045504   ;;  %vm9444_vm3 = vcmp.lt.s32.totalorder %v8023_v45, 7  ;;  %vm3955_vm4 = vcmp.lt.s32.totalorder %v8009_v58, 6  ;;  %v3898_v6 = vadd.f32 %v3890_v20, %v8458_v48 }
 0x5a2   : > { %vm9442_vm6 = vmmov %vm9441_vm14  ;;  %v3940_v49 = vsel %vm9444_vm3, %v3923_v28, 0.0  ;;  %v3919_v52 = vsel %vm9446_vm13, %v3916_v30, %v3918_v14  ;;  %v3970_v1 = vrot.slane %v8460_v0, 2  ;;  %vm3954_vm12 = vcmp.lt.s32.totalorder %v7999_v36, 6 }
 0x5a3   : > { %vm9443_vm10 = vmmov %vm9442_vm6  ;;  %v3948_v21 = vadd.f32 %v3940_v49, %v3900_v27  ;;  %v3917_v48 = vsel %vm9438_vm5, %v3914_v5, %v3916_v30  ;;  %v3939_v0 = vsel %vm2959_vm9, %v3921_v37, 0.0  ;;  %vm3953_vm15 = vcmp.lt.s32.totalorder %v7986_v61, 6  ;;  %v5793_v37 = vld [vmem:[%s9182_s7 + $0xa8] sm:$0xf]  ;;  %v4007_v27 = vld [vmem:[%s9186_s11] sm:$0xff] }
 0x5a4   : > { %vm9445_vm2 = vmmov %vm9442_vm6  ;;  %v3947_v14 = vadd.f32 %v3939_v0, %v3899_v3  ;;  %vm3952_vm9 = vcmp.lt.s32.totalorder %v7970_v24, 6  ;;  %v3896_v58 = vadd.f32 %v8411_v23, %v8437_v42  ;;  %v6203_v23 = vld [vmem:[%s9182_s7 + $0xb0] sm:$0xf0]  ;;  %v6197_v3 = vld [vmem:[%s9182_s7 + $0x80] sm:$0xf0]  ;;  %vm9455_vm3 = vcmask 1040384  }
 0x5a5   : > { %v8464_v43 = vpop.f32.mrf.mxu1  ;;  %vm9447_vm0 = vmmov %vm9445_vm2  ;;  %v6196_v49 = vld [vmem:[%s9182_s7 + $0x7c] sm:$0xf]  ;;  %v5735_v0 = vld [vmem:[%s9182_s7 + $0x3c] sm:$0xf0] }
 0x5a6   : > { %v3972_v40 = vrot.slane %v8464_v43, 2  ;;  %v3897_v43 = vadd.f32 %v8423_v9, %v8442_v50  ;;  %vm9448_vm7 = vmmov %vm9447_vm0 }
 0x5a8   : > { %v3973_v10 = vsel %vm9448_vm7, %v3970_v1, %v3972_v40 }
 0x5a9   : > { %v3993_v20 = vsel %vm3953_vm15, %v3973_v10, 0.0  ;;  %v5721_v10 = vld [vmem:[%s9182_s7 + $0x18] sm:$0xf] }
 0x5ad   : > { %v8468_v33 = vpop.f32.mrf.mxu1 }
 0x5ae   : > { %v3974_v59 = vrot.slane %v8468_v33, 2  ;;  %v3949_v33 = vadd.f32 %v3941_v39, %v3901_v16  ;;  %v4010_v16 = vld [vmem:[%s9186_s11 + $0x18] sm:$0xff]  ;;  %v6202_v39 = vld [vmem:[%s9182_s7 + $0xac] sm:$0xf] }
 0x5b0   : > { %v3975_v25 = vsel %vm9447_vm0, %v3972_v40, %v3974_v59  ;;  %v6193_v40 = vld [vmem:[%s9182_s7 + $0x64] sm:$0xf] }
 0x5b1   : > { %v3994_v53 = vsel %vm3954_vm12, %v3975_v25, 0.0 }
 0x5b5   : > { %v8472_v29 = vpop.f32.mrf.mxu1 }
 0x5b6   : > { %v3976_v35 = vrot.slane %v8472_v29, 2 }
 0x5b8   : > { %v3977_v54 = vsel %vm9445_vm2, %v3974_v59, %v3976_v35  ;;  %vm9458_vm2 = vmmov %vm9438_vm5 }
 0x5b9   : > { %v3995_v45 = vsel %vm3955_vm4, %v3977_v54, 0.0  ;;  %v5759_v54 = vld [vmem:[%s9182_s7 + $0x6c] sm:$0xf0]  ;;  %vm9464_vm5 = vmmov %vm9458_vm2 }
 0x5ba   : > { %v4003_v5 = vadd.f32 %v3995_v45, %v3947_v14  ;;  %v6184_v14 = vld [vmem:[%s9182_s7 + $0x1c] sm:$0xf] }
 0x5bd   : > { %v3794_v34 = vpop.f32.mrf.mxu1 }
 0x5be   : > { %v3978_v38 = vrot.slane %v3794_v34, 2 }
 0x5c0   : > { %v3979_v11 = vsel %vm9441_vm14, %v3976_v35, %v3978_v38  ;;  %vm9452_vm14 = vcmp.lt.s32.totalorder %v7970_v24, 7 }
 0x5c5   : > { %v3796_v22 = vpop.f32.mrf.mxu1 }
 0x5c6   : > { %v3980_v56 = vrot.slane %v3796_v22, 2  ;;  %v6194_v22 = vld [vmem:[%s9182_s7 + $0x68] sm:$0xf0] }
 0x5c7   : > { %v5758_v35 = vor.u32 %v6194_v22, %v5757_v26  ;;  %v6189_v26 = vld [vmem:[%s9182_s7 + $0x40] sm:$0xf0] }
 0x5c8   : > { %v3981_v34 = vsel %vm9442_vm6, %v3978_v38, %v3980_v56  ;;  %v3982_v29 = vsel %vm9443_vm10, %v3980_v56, %v7567_v62  ;;  %v3996_v62 = vsel %vm3956_vm1, %v3979_v11, 0.0  ;;  %vm9451_vm1 = vcmp.lt.s32.totalorder %v7986_v61, 7  ;;  %v5781_v61 = vld [vmem:[%s9182_s7 + $0x90] sm:$0xf]  ;;  %v5769_v38 = vld [vmem:[%s9182_s7 + $0x78] sm:$0xf] }
 0x5c9   : > { %v3998_v17 = vsel %vm3958_vm8, %v3982_v29, 0.0  ;;  %v3997_v55 = vsel %vm3957_vm11, %v3981_v34, 0.0  ;;  %v4004_v2 = vadd.f32 %v3996_v62, %v3948_v21  ;;  %vm9449_vm8 = vcmp.lt.s32.totalorder %v7999_v36, 7  ;;  %vm9450_vm11 = vmmov %vm9447_vm0  ;;  %v4008_v56 = vld [vmem:[%s9186_s11 + $0x8] sm:$0xff]  ;;  %v6199_v11 = vld [vmem:[%s9182_s7 + $0x94] sm:$0xf] }
 0x5ca   : > { %v4006_v46 = vadd.f32 %v3998_v17, %v3950_v63  ;;  %v4005_v57 = vadd.f32 %v3997_v55, %v3949_v33  ;;  %v3938_v9 = vsel %vm9449_vm8, %v3919_v52, 0.0  ;;  %v3971_v50 = vsel %vm9450_vm11, %v3968_v18, %v3970_v1  ;;  %v5795_v63 = vld [vmem:[%s9182_s7 + $0xb4] sm:$0xf0]  ;;  %v5783_v34 = vld [vmem:[%s9182_s7 + $0x9c] sm:$0xf0]  ;;  %vm9461_vm0 = vmmov %vm9455_vm3 }
 0x5cb   : > { %v3946_v8 = vadd.f32 %v3938_v9, %v3898_v6  ;;  %v3937_v30 = vsel %vm9451_vm1, %v3917_v48, 0.0  ;;  %v3936_v36 = vsel %vm9452_vm14, %v3915_v44, 0.0  ;;  %v3992_v18 = vsel %vm3952_vm9, %v3971_v50, 0.0  ;;  %v5771_v17 = vld [vmem:[%s9182_s7 + $0x84] sm:$0xf0]  ;;  %vm9467_vm15 = vmmov %vm9461_vm0 }
 0x5cc   : > { %4034 = vmatpush.msra.mxu2 %v4006_v46  ;;  %v3945_v51 = vadd.f32 %v3937_v30, %v3897_v43  ;;  %v3944_v24 = vadd.f32 %v3936_v36, %v3896_v58  ;;  %v5794_v44 = vor.u32 %v6203_v23, %v5793_v37  ;;  %v5782_v4 = vor.u32 %v6200_v47, %v5781_v61  ;;  %v5745_v33 = vld [vmem:[%s9182_s7 + $0x48] sm:$0xf]  ;;  %v6191_v6 = vld [vmem:[%s9182_s7 + $0x50] sm:$0xf0]  ;;  %v6190_v52 = vld [vmem:[%s9182_s7 + $0x4c] sm:$0xf] }
 0x5cd   : > { %v4002_v41 = vadd.f32 %v3994_v53, %v3946_v8  ;;  %vm4013_vm6 = vcmask 523264   ;;  %v5770_v28 = vor.u32 %v6197_v3, %v5769_v38  ;;  %v5798_v59 = vor.u32 %v6202_v39, %v5795_v63  ;;  %v5747_v62 = vld [vmem:[%s9182_s7 + $0x54] sm:$0xf0]  ;;  %v6188_v21 = vld [vmem:[%s9182_s7 + $0x38] sm:$0xf0]  ;;  %vm9470_vm11 = vmmov %vm9461_vm0 }
 0x5ce   : > { %4035 = vmatpush.msra.mxu2 %v4005_v57  ;;  %v4001_v42 = vadd.f32 %v3993_v20, %v3945_v51  ;;  %v4000_v13 = vadd.f32 %v3992_v18, %v3944_v24  ;;  %4221 = vmatpush.bf16.msra.mxu3 %v5794_v44  ;;  %v5786_v29 = vor.u32 %v6199_v11, %v5783_v34  ;;  %v5733_v57 = vld [vmem:[%s9182_s7 + $0x30] sm:$0xf]  ;;  %v6187_v43 = vld [vmem:[%s9182_s7 + $0x34] sm:$0xf]  ;;  %v5723_v50 = vld [vmem:[%s9182_s7 + $0x24] sm:$0xf0] }
 0x5cf   : > { %v5774_v55 = vor.u32 %v6196_v49, %v5771_v17  ;;  %v5762_v46 = vor.u32 %v6193_v40, %v5759_v54  ;;  %v5746_v1 = vor.u32 %v6191_v6, %v5745_v33  ;;  %v5750_v25 = vor.u32 %v6190_v52, %v5747_v62  ;;  %v5709_v58 = vld [vmem:[%s9182_s7] sm:$0xf]  ;;  %v6181_v8 = vld [vmem:[%s9182_s7 + $0x4] sm:$0xf]  ;;  %v5711_v20 = vld [vmem:[%s9182_s7 + $0xc] sm:$0xf0] }
 0x5d0   : > { %4036 = vmatpush.msra.mxu2 %v4004_v2  ;;  %v5734_v48 = vor.u32 %v6188_v21, %v5733_v57  ;;  %v5738_v45 = vor.u32 %v6187_v43, %v5735_v0  ;;  %v6185_v2 = vld [vmem:[%s9182_s7 + $0x20] sm:$0xf0]  ;;  %v5726_v53 = vor.u32 %v6184_v14, %v5723_v50  ;;  %v5714_v36 = vor.u32 %v6181_v8, %v5711_v20  ;;  %v6204_v51 = vld [vmem:[%s9182_s7 + $0xb8] sm:$0xf0]  ;;  %v5789_v37 = vld [vmem:[%s9182_s7 + $0x98] sm:$0xf] }
 0x5d1   : > { %v5722_v9 = vor.u32 %v6185_v2, %v5721_v10  ;;  %v6201_v23 = vld [vmem:[%s9182_s7 + $0xa0] sm:$0xf0]  ;;  %v6198_v24 = vld [vmem:[%s9182_s7 + $0x88] sm:$0xf0]  ;;  %v5765_v47 = vld [vmem:[%s9182_s7 + $0x68] sm:$0xf] }
 0x5d2   : > { %4037 = vmatpush.msra.mxu2 %v4003_v5  ;;  %4222 = vmatpush.bf16.msra.mxu3 %v5782_v4  ;;  %v6182_v5 = vld [vmem:[%s9182_s7 + $0x8] sm:$0xf0]  ;;  %v5790_v61 = vor.u32 %v6201_v23, %v5789_v37  ;;  %v5753_v38 = vld [vmem:[%s9182_s7 + $0x50] sm:$0xf]  ;;  %v6192_v3 = vld [vmem:[%s9182_s7 + $0x58] sm:$0xf0] }
 0x5d3   : > { %v5710_v30 = vor.u32 %v6182_v5, %v5709_v58  ;;  %v5717_v63 = vld [vmem:[%s9182_s7 + $0x8] sm:$0xf]  ;;  %v6228_v57 = vld [vmem:[%s9183_s8 + $0xb8] sm:$0xf0]  ;;  %v6226_v0 = vld [vmem:[%s9183_s8 + $0xac] sm:$0xf] }
 0x5d4   : > { %4038 = vmatpush.msra.mxu2 %v4002_v41  ;;  %v5801_v41 = vld [vmem:[%s9182_s7 + $0xb0] sm:$0xf]  ;;  %v5889_v43 = vld [vmem:[%s9183_s8 + $0xa8] sm:$0xf]  ;;  %v5891_v10 = vld [vmem:[%s9183_s8 + $0xb4] sm:$0xf0] }
 0x5d5   : > { %v5802_v18 = vor.u32 %v6204_v51, %v5801_v41  ;;  %v5894_v2 = vor.u32 %v6226_v0, %v5891_v10  ;;  %v6225_v50 = vld [vmem:[%s9183_s8 + $0xa0] sm:$0xf0]  ;;  %v5873_v5 = vld [vmem:[%s9183_s8 + $0x80] sm:$0xf]  ;;  %v6222_v8 = vld [vmem:[%s9183_s8 + $0x88] sm:$0xf0] }
 0x5d6   : > { %4039 = vmatpush.msra.mxu2 %v4001_v42  ;;  %4223 = vmatpush.bf16.msra.mxu3 %v5770_v28  ;;  %v5777_v42 = vld [vmem:[%s9182_s7 + $0x80] sm:$0xf]  ;;  %v5741_v28 = vld [vmem:[%s9182_s7 + $0x38] sm:$0xf]  ;;  %v6223_v20 = vld [vmem:[%s9183_s8 + $0x94] sm:$0xf]  ;;  %v5874_v41 = vor.u32 %v6222_v8, %v5873_v5 }
 0x5d7   : > { %v5778_v44 = vor.u32 %v6198_v24, %v5777_v42  ;;  %4529 = vmatpush.bf16.msra.mxu1 %v5894_v2  ;;  %v5865_v37 = vld [vmem:[%s9183_s8 + $0x78] sm:$0xf]  ;;  %v6221_v23 = vld [vmem:[%s9183_s8 + $0x80] sm:$0xf0]  ;;  %v6220_v42 = vld [vmem:[%s9183_s8 + $0x7c] sm:$0xf] }
 0x5d8   : > { %4040 = vmatpush.msra.mxu2 %v4000_v13  ;;  %v6195_v13 = vld [vmem:[%s9182_s7 + $0x70] sm:$0xf0]  ;;  %v5867_v24 = vld [vmem:[%s9183_s8 + $0x84] sm:$0xf0]  ;;  %v6206_v5 = vld [vmem:[%s9183_s8 + $0x8] sm:$0xf0] }
 0x5d9   : > { %v5766_v4 = vor.u32 %v6195_v13, %v5765_v47  ;;  %v5861_v13 = vld [vmem:[%s9183_s8 + $0x68] sm:$0xf]  ;;  %v6205_v8 = vld [vmem:[%s9183_s8 + $0x4] sm:$0xf]  ;;  %vm9475_vm14 = vmmov %vm9458_vm2 }
 0x5da   : > { %4041 = vmatpush.msra.mxu2 %v8456_v19  ;;  %4224 = vmatpush.bf16.msra.mxu3 %v5758_v35  ;;  %v4009_v19 = vld [vmem:[%s9186_s11 + $0x10] sm:$0xff]  ;;  %v5742_v35 = vor.u32 %v6189_v26, %v5741_v28  ;;  %v6217_v28 = vld [vmem:[%s9183_s8 + $0x64] sm:$0xf] }
 0x5db   : > { %5703 = vmatmul.msk.f32.vlgmr.msra.gmra.mxu2 %vm4013_vm6, %v4007_v27  ;;  %v5754_v27 = vor.u32 %v6192_v3, %v5753_v38  ;;  %v5853_v38 = vld [vmem:[%s9183_s8 + $0x60] sm:$0xf] }
 0x5dc   : > { %4240 = vmatpush.bf16.msrb.mxu2 %v5798_v59  ;;  %v6183_v59 = vld [vmem:[%s9182_s7 + $0x10] sm:$0xf0] }
 0x5dd   : > { %v5718_v49 = vor.u32 %v6183_v59, %v5717_v63  ;;  %v6215_v63 = vld [vmem:[%s9183_s8 + $0x50] sm:$0xf0] }
 0x5de   : > { %4225 = vmatpush.bf16.msra.mxu3 %v5746_v1 }
 0x5e0   : > { %4241 = vmatpush.bf16.msrb.mxu2 %v5786_v29 }
 0x5e2   : > { %4226 = vmatpush.bf16.msra.mxu3 %v5734_v48  ;;  %v6227_v48 = vld [vmem:[%s9183_s8 + $0xb0] sm:$0xf0] }
 0x5e3   : > { %5704 = vmatmul.msk.f32.gmra.mxu2 %vm4013_vm6, %v4008_v56  ;;  %v5729_v56 = vld [vmem:[%s9182_s7 + $0x20] sm:$0xf] }
 0x5e4   : > { %4242 = vmatpush.bf16.msrb.mxu2 %v5774_v55 }
 0x5e6   : > { %4227 = vmatpush.bf16.msra.mxu3 %v5722_v9  ;;  %v5885_v9 = vld [vmem:[%s9183_s8 + $0x98] sm:$0xf] }
 0x5e7   : > { %v5886_v58 = vor.u32 %v6225_v50, %v5885_v9  ;;  %v5813_v9 = vld [vmem:[%s9183_s8 + $0x8] sm:$0xf]  ;;  %v6207_v50 = vld [vmem:[%s9183_s8 + $0x10] sm:$0xf0] }
 0x5e8   : > { %4243 = vmatpush.bf16.msrb.mxu2 %v5762_v46 }
 0x5ea   : > { %4228 = vmatpush.bf16.msra.mxu3 %v5710_v30  ;;  %v6224_v30 = vld [vmem:[%s9183_s8 + $0x98] sm:$0xf0] }
 0x5eb   : > { %5705 = vmatmul.msk.f32.gmra.mxu2 %vm4013_vm6, %v4009_v19  ;;  %v6186_v19 = vld [vmem:[%s9182_s7 + $0x28] sm:$0xf0] }
 0x5ec   : > { %4244 = vmatpush.bf16.msrb.mxu2 %v5750_v25  ;;  %v5730_v39 = vor.u32 %v6186_v19, %v5729_v56  ;;  %v5897_v25 = vld [vmem:[%s9183_s8 + $0xb0] sm:$0xf]  ;;  %v6216_v19 = vld [vmem:[%s9183_s8 + $0x58] sm:$0xf0] }
 0x5ed   : > { %v5898_v21 = vor.u32 %v6228_v57, %v5897_v25  ;;  %v5849_v56 = vld [vmem:[%s9183_s8 + $0x50] sm:$0xf]  ;;  %v6210_v25 = vld [vmem:[%s9183_s8 + $0x28] sm:$0xf0] }
 0x5ee   : > { %4259 = vmatpush.bf16.msrb.mxu3 %v5802_v18 }
 0x5f0   : > { %4245 = vmatpush.bf16.msrb.mxu2 %v5738_v45  ;;  %v5890_v45 = vor.u32 %v6227_v48, %v5889_v43  ;;  %v6209_v43 = vld [vmem:[%s9183_s8 + $0x20] sm:$0xf0]  ;;  %v6208_v48 = vld [vmem:[%s9183_s8 + $0x1c] sm:$0xf] }
 0x5f2   : > { %4260 = vmatpush.bf16.msrb.mxu3 %v5790_v61  ;;  %4510 = vmatpush.bf16.msra.mxu0 %v5890_v45  ;;  %v5866_v61 = vor.u32 %v6221_v23, %v5865_v37  ;;  %v5819_v45 = vld [vmem:[%s9183_s8 + $0x24] sm:$0xf0] }
 0x5f3   : > { %5706 = vmatmul.msk.f32.gmra.mxu2 %vm4013_vm6, %v4010_v16  ;;  %v6283_v16 = vld [vmem:[%s9187_s12 + $0x5] ss:$0 sm:$0xff]  ;;  %v5822_v10 = vor.u32 %v6208_v48, %v5819_v45  ;;  %vm9476_vm6 = vmmov %vm9458_vm2 }
 0x5f4   : > { %4246 = vmatpush.bf16.msrb.mxu2 %v5726_v53  ;;  %v5877_v53 = vld [vmem:[%s9183_s8 + $0x90] sm:$0xf] }
 0x5f5   : > { %v5878_v51 = vor.u32 %v6224_v30, %v5877_v53  ;;  %v5805_v53 = vld [vmem:[%s9183_s8] sm:$0xf] }
 0x5f6   : > { %4261 = vmatpush.bf16.msrb.mxu3 %v5778_v44  ;;  %v5870_v44 = vor.u32 %v6220_v42, %v5867_v24  ;;  %v5806_v30 = vor.u32 %v6206_v5, %v5805_v53  ;;  %v4279_v24 = vand.u32 3, %v9394_v60 }
 0x5f7   : > { %4511 = vmatpush.bf16.msra.mxu0 %v5878_v51 }
 0x5f8   : > { %4247 = vmatpush.bf16.msrb.mxu2 %v5714_v36  ;;  %v5879_v36 = vld [vmem:[%s9183_s8 + $0x9c] sm:$0xf0]  ;;  %vm8897_vm13 = vcmp.ge.s32.totalorder %v4279_v24, 1  ;;  %vm8919_vm12 = vcmp.lt.s32.totalorder %v4279_v24, 3 }
 0x5f9   : > { %v5882_v18 = vor.u32 %v6223_v20, %v5879_v36  ;;  %v5807_v20 = vld [vmem:[%s9183_s8 + $0xc] sm:$0xf0] }
 0x5fa   : > { %4262 = vmatpush.bf16.msrb.mxu3 %v5766_v4  ;;  %v6219_v4 = vld [vmem:[%s9183_s8 + $0x70] sm:$0xf0]  ;;  %v5810_v36 = vor.u32 %v6205_v8, %v5807_v20 }
 0x5fb   : > { %4530 = vmatpush.bf16.msra.mxu1 %v5882_v18  ;;  %v5862_v3 = vor.u32 %v6219_v4, %v5861_v13  ;;  %4512 = vmatpush.bf16.msra.mxu0 %v5866_v61  ;;  %v4278_v18 = vand.u32 3, %v9390_v7 }
 0x5fc   : > { %4548 = vmatpush.bf16.msra.mxu2 %v5898_v21  ;;  %v5817_v21 = vld [vmem:[%s9183_s8 + $0x18] sm:$0xf] }
 0x5fd   : > { %v5818_v0 = vor.u32 %v6209_v43, %v5817_v21  ;;  %vm8880_vm10 = vcmp.ge.s32.totalorder %v4278_v18, 1  ;;  %vm8888_vm4 = vcmp.lt.s32.totalorder %v4278_v18, 3 }
 0x5fe   : > { %4263 = vmatpush.bf16.msrb.mxu3 %v5754_v27  ;;  %v6218_v27 = vld [vmem:[%s9183_s8 + $0x68] sm:$0xf0] }
 0x5ff   : > { %4531 = vmatpush.bf16.msra.mxu1 %v5870_v44  ;;  %v5854_v26 = vor.u32 %v6218_v27, %v5853_v38 }
 0x600   : > { %4549 = vmatpush.bf16.msra.mxu2 %v5886_v58  ;;  %v5814_v58 = vor.u32 %v6207_v50, %v5813_v9 }
 0x601   : > { %4513 = vmatpush.bf16.msra.mxu0 %v5854_v26  ;;  %v6251_v26 = vld [vmem:[%s9184_s9 + $0xb0] sm:$0xf0] }
 0x602   : > { %4264 = vmatpush.bf16.msrb.mxu3 %v5742_v35 }
 0x604   : > { %4550 = vmatpush.bf16.msra.mxu2 %v5874_v41 }
 0x606   : > { %4265 = vmatpush.bf16.msrb.mxu3 %v5730_v39  ;;  %v5841_v39 = vld [vmem:[%s9183_s8 + $0x48] sm:$0xf] }
 0x607   : > { %v5842_v59 = vor.u32 %v6215_v63, %v5841_v39 }
 0x608   : > { %4551 = vmatpush.bf16.msra.mxu2 %v5862_v3 }
 0x609   : > { %4514 = vmatpush.bf16.msra.mxu0 %v5842_v59 }
 0x60a   : > { %4266 = vmatpush.bf16.msrb.mxu3 %v5718_v49 }
 0x65e   : > { %v4043_v22 = vpop.f32.mrf.mxu2 }
 0x65f   : > { %v4044_v11 = vadd.f32 %v6283_v16, %v4043_v22  ;;  %v5855_v22 = vld [vmem:[%s9183_s8 + $0x6c] sm:$0xf0] }
 0x660   : > { %v5858_v35 = vor.u32 %v6217_v28, %v5855_v22  ;;  %v5985_v28 = vld [vmem:[%s9184_s9 + $0xa8] sm:$0xf]  ;;  %v6250_v22 = vld [vmem:[%s9184_s9 + $0xac] sm:$0xf] }
 0x661   : > { %v4055_v17 = vmax.f32 %v4044_v11, 0.0  ;;  %v6214_v11 = vld [vmem:[%s9183_s8 + $0x4c] sm:$0xf] }
 0x662   : > { %4532 = vmatpush.bf16.msra.mxu1 %v5858_v35 }
 0x666   : > { %v4046_v34 = vpop.f32.mrf.mxu2 }
 0x667   : > { %v4047_v29 = vadd.f32 %v6283_v16, %v4046_v34  ;;  %v5843_v34 = vld [vmem:[%s9183_s8 + $0x54] sm:$0xf0] }
 0x669   : > { %v4056_v55 = vmax.f32 %v4047_v29, 0.0  ;;  %v5846_v29 = vor.u32 %v6214_v11, %v5843_v34  ;;  %v6284_v11 = vld [vmem:[%s9187_s12 + $0x6] ss:$0 sm:$0xff] }
 0x66b   : > { %v4059_v40 = vpack.c.bf16 %v4056_v55, %v4055_v17  ;;  %v5837_v17 = vld [vmem:[%s9183_s8 + $0x38] sm:$0xf]  ;;  %v6213_v55 = vld [vmem:[%s9183_s8 + $0x40] sm:$0xf0]  ;;  %4533 = vmatpush.bf16.msra.mxu1 %v5846_v29 }
 0x66d   : > { %4229 = vmatmul.bf16.vlgmr.msra.gmra.mxu3 %v4059_v40  ;;  %4248 = vmatmul.bf16.vlgmr.msrb.gmra.mxu2 %v4059_v40 }
 0x66e   : > { %v4049_v54 = vpop.f32.mrf.mxu2 }
 0x66f   : > { %v4050_v46 = vadd.f32 %v6283_v16, %v4049_v54  ;;  %v5838_v54 = vor.u32 %v6213_v55, %v5837_v17  ;;  %v4280_v55 = vand.u32 3, %v9397_v31 }
 0x671   : > { %v4057_v52 = vmax.f32 %v4050_v46, 0.0  ;;  %v6212_v46 = vld [vmem:[%s9183_s8 + $0x38] sm:$0xf0]  ;;  %vm8930_vm7 = vcmp.ge.s32.totalorder %v4280_v55, 1  ;;  %vm8940_vm9 = vcmp.lt.s32.totalorder %v4280_v55, 3 }
 0x672   : > { %v5949_v55 = vld [vmem:[%s9184_s9 + $0x60] sm:$0xf] }
 0x676   : > { %v4052_v33 = vpop.f32.mrf.mxu2 }
 0x677   : > { %v4053_v6 = vadd.f32 %v6283_v16, %v4052_v33  ;;  %v5850_v16 = vor.u32 %v6216_v19, %v5849_v56  ;;  %v6211_v33 = vld [vmem:[%s9183_s8 + $0x34] sm:$0xf]  ;;  %v5986_v56 = vor.u32 %v6251_v26, %v5985_v28  ;;  %v5987_v19 = vld [vmem:[%s9184_s9 + $0xb4] sm:$0xf0]  ;;  %v6245_v26 = vld [vmem:[%s9184_s9 + $0x80] sm:$0xf0] }
 0x678   : > { %v5990_v63 = vor.u32 %v6250_v22, %v5987_v19  ;;  %v5961_v28 = vld [vmem:[%s9184_s9 + $0x78] sm:$0xf] }
 0x679   : > { %v4058_v1 = vmax.f32 %v4053_v6, 0.0  ;;  %4552 = vmatpush.bf16.msra.mxu2 %v5850_v16  ;;  %4787 = vmatpush.bf16.msra.mxu3 %v5986_v56  ;;  %v5963_v56 = vld [vmem:[%s9184_s9 + $0x84] sm:$0xf0]  ;;  %v5981_v19 = vld [vmem:[%s9184_s9 + $0x98] sm:$0xf] }
 0x67b   : > { %v4060_v62 = vpack.c.bf16 %v4058_v1, %v4057_v52  ;;  %v5831_v52 = vld [vmem:[%s9183_s8 + $0x3c] sm:$0xf0] }
 0x67c   : > { %v5834_v1 = vor.u32 %v6211_v33, %v5831_v52 }
 0x67d   : > { %4234 = vmatmul.bf16.gmra.mxu3 %v4060_v62  ;;  %4253 = vmatmul.bf16.gmra.mxu2 %v4060_v62 }
 0x67e   : > { %4553 = vmatpush.bf16.msra.mxu2 %v5838_v54  ;;  %4534 = vmatpush.bf16.msra.mxu1 %v5834_v1 }
 0x682   : > { %4535 = vmatpush.bf16.msra.mxu1 %v5822_v10 }
 0x686   : > { %4536 = vmatpush.bf16.msra.mxu1 %v5810_v36 }
 0x68d   : > { %4267 = vmatmul.bf16.vlgmr.msrb.gmra.mxu3 %v4059_v40  ;;  %v5829_v40 = vld [vmem:[%s9183_s8 + $0x30] sm:$0xf] }
 0x68e   : > { %v5830_v6 = vor.u32 %v6212_v46, %v5829_v40  ;;  %v4281_v40 = vand.u32 3, %v9400_v12 }
 0x690   : > { %4515 = vmatpush.bf16.msra.mxu0 %v5830_v6  ;;  %vm8935_vm8 = vcmp.ge.s32.totalorder %v4281_v40, 1  ;;  %vm8944_vm1 = vcmp.lt.s32.totalorder %v4281_v40, 3  ;;  %v6242_v40 = vld [vmem:[%s9184_s9 + $0x68] sm:$0xf0] }
 0x694   : > { %4516 = vmatpush.bf16.msra.mxu0 %v5818_v0 }
 0x698   : > { %4517 = vmatpush.bf16.msra.mxu0 %v5806_v30 }
 0x69c   : > { %4806 = vmatpush.bf16.msrb.mxu0 %v5990_v63 }
 0x69d   : > { %4272 = vmatmul.bf16.gmra.mxu3 %v4060_v62  ;;  %v5825_v62 = vld [vmem:[%s9183_s8 + $0x20] sm:$0xf] }
 0x69e   : > { %v5826_v57 = vor.u32 %v6210_v25, %v5825_v62 }
 0x6a0   : > { %4554 = vmatpush.bf16.msra.mxu2 %v5826_v57 }
 0x6a4   : > { %4555 = vmatpush.bf16.msra.mxu2 %v5814_v58 }
 0x6f0   : > { %v8744_v14 = vpop.f32.mrf.mxu3  ;;  %v4249_v41 = vpop.f32.mrf.mxu2 }
 0x6f1   : > { %v4290_v37 = vrot.slane %v8744_v14, 7 }
 0x6f3   : > { %v4291_v38 = vsel %vm9455_vm3, %v9391_v32, %v4290_v37  ;;  %vm9477_vm3 = vmmov %vm9461_vm0 }
 0x6f4   : > { %v4302_v14 = vsel %vm8880_vm10, %v4291_v38, 0.0  ;;  %v5973_v38 = vld [vmem:[%s9184_s9 + $0x90] sm:$0xf] }
 0x6f5   : > { %v4306_v35 = vadd.f32 %v4302_v14, %v4249_v41  ;;  %v6247_v14 = vld [vmem:[%s9184_s9 + $0x94] sm:$0xf] }
 0x6f8   : > { %v8782_v47 = vpop.f32.mrf.mxu3  ;;  %v4251_v42 = vpop.f32.mrf.mxu2 }
 0x6f9   : > { %v4292_v44 = vrot.slane %v8782_v47, 7 }
 0x6fb   : > { %v4293_v47 = vsel %vm9461_vm0, %v4290_v37, %v4292_v44 }
 0x6fc   : > { %v4303_v39 = vsel %vm8897_vm13, %v4293_v47, 0.0  ;;  %v5975_v47 = vld [vmem:[%s9184_s9 + $0x9c] sm:$0xf0] }
 0x6fd   : > { %v4307_v33 = vadd.f32 %v4303_v39, %v4251_v42  ;;  %v5978_v22 = vor.u32 %v6247_v14, %v5975_v47  ;;  %v6249_v39 = vld [vmem:[%s9184_s9 + $0xa0] sm:$0xf0]  ;;  %v6230_v14 = vld [vmem:[%s9184_s9 + $0x8] sm:$0xf0] }
 0x6ff   : > { %4807 = vmatpush.bf16.msrb.mxu0 %v5978_v22  ;;  %v6231_v22 = vld [vmem:[%s9184_s9 + $0x10] sm:$0xf0] }
 0x700   : > { %v8820_v49 = vpop.f32.mrf.mxu3  ;;  %v4254_v17 = vpop.f32.mrf.mxu2 }
 0x701   : > { %v4294_v54 = vrot.slane %v8820_v49, 7 }
 0x703   : > { %v4295_v12 = vsel %vm9467_vm15, %v4292_v44, %v4294_v54  ;;  %v5993_v44 = vld [vmem:[%s9184_s9 + $0xb0] sm:$0xf]  ;;  %vm9479_vm15 = vmmov %vm9461_vm0 }
 0x708   : > { %v8858_v2 = vpop.f32.mrf.mxu3  ;;  %v4256_v8 = vpop.f32.mrf.mxu2 }
 0x709   : > { %v4296_v46 = vrot.slane %v8858_v2, 7  ;;  %v4304_v2 = vsel %vm8930_vm7, %v4295_v12, 0.0  ;;  %v6239_v12 = vld [vmem:[%s9184_s9 + $0x50] sm:$0xf0] }
 0x70a   : > { %v4308_v20 = vadd.f32 %v4304_v2, %v4254_v17  ;;  %v6240_v2 = vld [vmem:[%s9184_s9 + $0x58] sm:$0xf0] }
 0x70b   : > { %v4297_v49 = vsel %vm9470_vm11, %v4294_v54, %v4296_v46  ;;  %v6241_v54 = vld [vmem:[%s9184_s9 + $0x64] sm:$0xf]  ;;  %v5950_v46 = vor.u32 %v6242_v40, %v5949_v55  ;;  %vm9480_vm11 = vmmov %vm9461_vm0 }
 0x70c   : > { %v4305_v9 = vsel %vm8935_vm8, %v4297_v49, 0.0  ;;  %v6238_v49 = vld [vmem:[%s9184_s9 + $0x4c] sm:$0xf] }
 0x70d   : > { %v4309_v36 = vadd.f32 %v4305_v9, %v4256_v8  ;;  %v5927_v8 = vld [vmem:[%s9184_s9 + $0x3c] sm:$0xf0] }
 0x710   : > { %v4268_v51 = vpop.f32.mrf.mxu3 }
 0x711   : > { %v4318_v13 = vrot.slane %v4268_v51, 1 }
 0x718   : > { %v4270_v23 = vpop.f32.mrf.mxu3 }
 0x719   : > { %v4319_v4 = vrot.slane %v4270_v23, 1 }
 0x71b   : > { %v4320_v7 = vsel %vm9458_vm2, %v4318_v13, %v4319_v4  ;;  %v6252_v13 = vld [vmem:[%s9184_s9 + $0xb8] sm:$0xf0] }
 0x71c   : > { %v4330_v27 = vsel %vm8888_vm4, %v4320_v7, 0.0  ;;  %v6248_v7 = vld [vmem:[%s9184_s9 + $0x98] sm:$0xf0] }
 0x71d   : > { %v4334_v59 = vadd.f32 %v4330_v27, %v4306_v35  ;;  %v5974_v27 = vor.u32 %v6248_v7, %v5973_v38  ;;  %v6244_v35 = vld [vmem:[%s9184_s9 + $0x7c] sm:$0xf]  ;;  %v5901_v7 = vld [vmem:[%s9184_s9] sm:$0xf] }
 0x71e   : > { %v5966_v63 = vor.u32 %v6244_v35, %v5963_v56  ;;  %v5902_v47 = vor.u32 %v6230_v14, %v5901_v7 }
 0x71f   : > { %v4340_v1 = vadd.f32 %v6284_v11, %v4334_v59  ;;  %4788 = vmatpush.bf16.msra.mxu3 %v5974_v27  ;;  %v8998_v59 = vor.u32 %v6249_v39, %v5981_v19  ;;  %v6229_v27 = vld [vmem:[%s9184_s9 + $0x4] sm:$0xf] }
 0x720   : > { %v4273_v16 = vpop.f32.mrf.mxu3  ;;  %4808 = vmatpush.bf16.msrb.mxu0 %v5966_v63 }
 0x721   : > { %v4321_v34 = vrot.slane %v4273_v16, 1  ;;  %v4344_v48 = vmax.f32 %v4340_v1, 0.0  ;;  %v5962_v16 = vor.u32 %v6245_v26, %v5961_v28  ;;  %v5903_v28 = vld [vmem:[%s9184_s9 + $0xc] sm:$0xf0]  ;;  %v5909_v26 = vld [vmem:[%s9184_s9 + $0x8] sm:$0xf] }
 0x722   : > { %v5906_v56 = vor.u32 %v6229_v27, %v5903_v28  ;;  %v5910_v19 = vor.u32 %v6231_v22, %v5909_v26 }
 0x723   : > { %v4322_v6 = vsel %vm9464_vm5, %v4319_v4, %v4321_v34  ;;  %v8965_v4 = vor.u32 %v6252_v13, %v5993_v44  ;;  %4789 = vmatpush.bf16.msra.mxu3 %v5962_v16  ;;  %v6234_v44 = vld [vmem:[%s9184_s9 + $0x28] sm:$0xf0]  ;;  %vm9478_vm5 = vmmov %vm9458_vm2 }
 0x724   : > { %v4331_v52 = vsel %vm8919_vm12, %v4322_v6, 0.0  ;;  %v5957_v6 = vld [vmem:[%s9184_s9 + $0x68] sm:$0xf] }
 0x725   : > { %v4335_v62 = vadd.f32 %v4331_v52, %v4307_v33  ;;  %4825 = vmatpush.bf16.msrb.mxu1 %v8965_v4  ;;  %v5951_v33 = vld [vmem:[%s9184_s9 + $0x6c] sm:$0xf0]  ;;  %v6243_v52 = vld [vmem:[%s9184_s9 + $0x70] sm:$0xf0] }
 0x726   : > { %v5954_v1 = vor.u32 %v6241_v54, %v5951_v33 }
 0x727   : > { %v4341_v31 = vadd.f32 %v6284_v11, %v4335_v62  ;;  %v5958_v62 = vor.u32 %v6243_v52, %v5957_v6  ;;  %4790 = vmatpush.bf16.msra.mxu3 %v5950_v46 }
 0x728   : > { %v4275_v43 = vpop.f32.mrf.mxu3  ;;  %4809 = vmatpush.bf16.msrb.mxu0 %v5954_v1 }
 0x729   : > { %v4345_v0 = vmax.f32 %v4341_v31, 0.0  ;;  %v4323_v45 = vrot.slane %v4275_v43, 1  ;;  %4826 = vmatpush.bf16.msrb.mxu1 %v8998_v59  ;;  %v5937_v31 = vld [vmem:[%s9184_s9 + $0x48] sm:$0xf] }
 0x72a   : > { %v5938_v43 = vor.u32 %v6239_v12, %v5937_v31 }
 0x72b   : > { %v4348_v50 = vpack.c.bf16 %v4345_v0, %v4344_v48  ;;  %v4324_v53 = vsel %vm9475_vm14, %v4321_v34, %v4323_v45  ;;  %v4325_v58 = vsel %vm9476_vm6, %v4323_v45, %v6937_v15  ;;  %v6246_v34 = vld [vmem:[%s9184_s9 + $0x88] sm:$0xf0]  ;;  %v5939_v48 = vld [vmem:[%s9184_s9 + $0x54] sm:$0xf0]  ;;  %v5945_v0 = vld [vmem:[%s9184_s9 + $0x50] sm:$0xf] }
 0x72c   : > { %v4332_v5 = vsel %vm8940_vm9, %v4324_v53, 0.0  ;;  %v4333_v30 = vsel %vm8944_vm1, %v4325_v58, 0.0  ;;  %v5942_v45 = vor.u32 %v6238_v49, %v5939_v48  ;;  %4791 = vmatpush.bf16.msra.mxu3 %v5938_v43  ;;  %v5946_v9 = vor.u32 %v6240_v2, %v5945_v0  ;;  %v6236_v53 = vld [vmem:[%s9184_s9 + $0x38] sm:$0xf0]  ;;  %v6235_v58 = vld [vmem:[%s9184_s9 + $0x34] sm:$0xf]  ;;  %vm9481_vm14 = vmmov %vm9458_vm2 }
 0x72d   : > { %4556 = vmatmul.bf16.vlgmr.msra.gmra.mxu2 %v4348_v50  ;;  %4518 = vmatmul.bf16.vlgmr.msra.gmra.mxu0 %v4348_v50  ;;  %v4336_v41 = vadd.f32 %v4332_v5, %v4308_v20  ;;  %v4337_v51 = vadd.f32 %v4333_v30, %v4309_v36  ;;  %v5933_v30 = vld [vmem:[%s9184_s9 + $0x38] sm:$0xf]  ;;  %v6237_v20 = vld [vmem:[%s9184_s9 + $0x40] sm:$0xf0]  ;;  %v5930_v36 = vor.u32 %v6235_v58, %v5927_v8  ;;  %vm9482_vm6 = vmmov %vm9458_vm2 }
 0x72e   : > { %4537 = vmatmul.bf16.vlgmr.msra.gmra.mxu1 %v4348_v50  ;;  %4810 = vmatpush.bf16.msrb.mxu0 %v5942_v45  ;;  %v5925_v50 = vld [vmem:[%s9184_s9 + $0x30] sm:$0xf]  ;;  %v6285_v49 = vld [vmem:[%s9187_s12 + $0x7] ss:$0 sm:$0xff] }
 0x72f   : > { %v4343_v18 = vadd.f32 %v6284_v11, %v4337_v51  ;;  %v4342_v37 = vadd.f32 %v6284_v11, %v4336_v41  ;;  %v5969_v11 = vld [vmem:[%s9184_s9 + $0x80] sm:$0xf]  ;;  %v5926_v5 = vor.u32 %v6236_v53, %v5925_v50  ;;  %v5934_v41 = vor.u32 %v6237_v20, %v5933_v30  ;;  %v5913_v51 = vld [vmem:[%s9184_s9 + $0x18] sm:$0xf] }
 0x730   : > { %v9007_v17 = vor.u32 %v6246_v34, %v5969_v11 }
 0x731   : > { %v4347_v23 = vmax.f32 %v4343_v18, 0.0  ;;  %v4346_v42 = vmax.f32 %v4342_v37, 0.0  ;;  %4792 = vmatpush.bf16.msra.mxu3 %v5926_v5  ;;  %v6233_v18 = vld [vmem:[%s9184_s9 + $0x20] sm:$0xf0]  ;;  %v6232_v37 = vld [vmem:[%s9184_s9 + $0x1c] sm:$0xf] }
 0x732   : > { %4827 = vmatpush.bf16.msrb.mxu1 %v9007_v17  ;;  %4811 = vmatpush.bf16.msrb.mxu0 %v5930_v36 }
 0x733   : > { %v4349_v24 = vpack.c.bf16 %v4347_v23, %v4346_v42  ;;  %v5914_v23 = vor.u32 %v6233_v18, %v5913_v51  ;;  %v5915_v42 = vld [vmem:[%s9184_s9 + $0x24] sm:$0xf0] }
 0x734   : > { %v5918_v13 = vor.u32 %v6232_v37, %v5915_v42 }
 0x735   : > { %4793 = vmatpush.bf16.msra.mxu3 %v5914_v23 }
 0x736   : > { %4828 = vmatpush.bf16.msrb.mxu1 %v5958_v62  ;;  %4812 = vmatpush.bf16.msrb.mxu0 %v5918_v13 }
 0x739   : > { %4794 = vmatpush.bf16.msra.mxu3 %v5902_v47 }
 0x73a   : > { %4829 = vmatpush.bf16.msrb.mxu1 %v5946_v9  ;;  %4813 = vmatpush.bf16.msrb.mxu0 %v5906_v56 }
 0x73d   : > { %4561 = vmatmul.bf16.gmra.mxu2 %v4349_v24  ;;  %4523 = vmatmul.bf16.gmra.mxu0 %v4349_v24 }
 0x73e   : > { %4542 = vmatmul.bf16.gmra.mxu1 %v4349_v24  ;;  %v5921_v24 = vld [vmem:[%s9184_s9 + $0x20] sm:$0xf]  ;;  %6261 = vmatpush.bf16.msrb.mxu3 %v8965_v4 }
 0x73f   : > { %4830 = vmatpush.bf16.msrb.mxu1 %v5934_v41  ;;  %v5922_v38 = vor.u32 %v6234_v44, %v5921_v24 }
 0x742   : > { %6262 = vmatpush.bf16.msrb.mxu3 %v8998_v59 }
 0x743   : > { %4831 = vmatpush.bf16.msrb.mxu1 %v5922_v38 }
 0x746   : > { %6263 = vmatpush.bf16.msrb.mxu3 %v9007_v17 }
 0x747   : > { %4832 = vmatpush.bf16.msrb.mxu1 %v5910_v19 }
 0x74a   : > { %6264 = vmatpush.bf16.msrb.mxu3 %v5958_v62 }
 0x74e   : > { %6265 = vmatpush.bf16.msrb.mxu3 %v5946_v9 }
 0x752   : > { %6266 = vmatpush.bf16.msrb.mxu3 %v5934_v41 }
 0x756   : > { %6267 = vmatpush.bf16.msrb.mxu3 %v5922_v38 }
 0x75a   : > { %6268 = vmatpush.bf16.msrb.mxu3 %v5910_v19 }
 0x7aa   : > { %v4519_v35 = vpop.f32.mrf.mxu0 }
 0x7ab   : > { %v4538_v16 = vpop.f32.mrf.mxu1  ;;  %v4571_v11 = vrot.slane %v4519_v35, 7 }
 0x7ad   : > { %v4572_v46 = vsel %vm9477_vm3, %v9391_v32, %v4571_v11  ;;  %vm9483_vm3 = vmmov %vm9461_vm0 }
 0x7ae   : > { %v4583_v52 = vsel %vm8880_vm10, %v4572_v46, 0.0 }
 0x7af   : > { %v4587_v1 = vadd.f32 %v4583_v52, %v4538_v16 }
 0x7b0   : > { %v4557_v39 = vpop.f32.mrf.mxu2 }
 0x7b1   : > { %v4595_v40 = vrot.slane %v4557_v39, 1 }
 0x7b2   : > { %v4521_v63 = vpop.f32.mrf.mxu0 }
 0x7b3   : > { %v4540_v55 = vpop.f32.mrf.mxu1  ;;  %v4573_v33 = vrot.slane %v4521_v63, 7 }
 0x7b5   : > { %v4574_v59 = vsel %vm9461_vm0, %v4571_v11, %v4573_v33 }
 0x7b6   : > { %v4584_v31 = vsel %vm8897_vm13, %v4574_v59, 0.0 }
 0x7b7   : > { %v4588_v45 = vadd.f32 %v4584_v31, %v4540_v55 }
 0x7b8   : > { %v4559_v34 = vpop.f32.mrf.mxu2 }
 0x7b9   : > { %v4596_v54 = vrot.slane %v4559_v34, 1 }
 0x7ba   : > { %v4524_v6 = vpop.f32.mrf.mxu0 }
 0x7bb   : > { %v4597_v4 = vsel %vm9458_vm2, %v4595_v40, %v4596_v54  ;;  %v4543_v48 = vpop.f32.mrf.mxu1  ;;  %v4575_v9 = vrot.slane %v4524_v6, 7 }
 0x7bc   : > { %v4607_v17 = vsel %vm8888_vm4, %v4597_v4, 0.0  ;;  %v6286_v4 = vld [vmem:[%s9187_s12 + $0x8] ss:$0 sm:$0xff] }
 0x7bd   : > { %v4611_v12 = vadd.f32 %v4607_v17, %v4587_v1  ;;  %v4576_v30 = vsel %vm9479_vm15, %v4573_v33, %v4575_v9 }
 0x7be   : > { %v4585_v37 = vsel %vm8930_vm7, %v4576_v30, 0.0 }
 0x7bf   : > { %v4617_v58 = vadd.f32 %v6285_v49, %v4611_v12  ;;  %v4589_v14 = vadd.f32 %v4585_v37, %v4543_v48 }
 0x7c0   : > { %v4562_v62 = vpop.f32.mrf.mxu2 }
 0x7c1   : > { %v4598_v43 = vrot.slane %v4562_v62, 1  ;;  %v4621_v41 = vmax.f32 %v4617_v58, 0.0 }
 0x7c2   : > { %v4526_v0 = vpop.f32.mrf.mxu0 }
 0x7c3   : > { %v4599_v2 = vsel %vm9478_vm5, %v4596_v54, %v4598_v43  ;;  %v4577_v50 = vrot.slane %v4526_v0, 7  ;;  %v4545_v38 = vpop.f32.mrf.mxu1  ;;  %vm9486_vm5 = vmmov %vm9461_vm0 }
 0x7c4   : > { %v4608_v53 = vsel %vm8919_vm12, %v4599_v2, 0.0 }
 0x7c5   : > { %v4612_v5 = vadd.f32 %v4608_v53, %v4588_v45  ;;  %v4578_v20 = vsel %vm9480_vm11, %v4575_v9, %v4577_v50 }
 0x7c6   : > { %v4586_v23 = vsel %vm8935_vm8, %v4578_v20, 0.0 }
 0x7c7   : > { %v4618_v8 = vadd.f32 %v6285_v49, %v4612_v5  ;;  %v4590_v27 = vadd.f32 %v4586_v23, %v4545_v38 }
 0x7c8   : > { %v4564_v36 = vpop.f32.mrf.mxu2 }
 0x7c9   : > { %v4622_v51 = vmax.f32 %v4618_v8, 0.0  ;;  %v4600_v18 = vrot.slane %v4564_v36, 1 }
 0x7cb   : > { %v4625_v42 = vpack.c.bf16 %v4622_v51, %v4621_v41  ;;  %v4601_v24 = vsel %vm9481_vm14, %v4598_v43, %v4600_v18  ;;  %v4602_v44 = vsel %vm9482_vm6, %v4600_v18, %v6937_v15 }
 0x7cc   : > { %v4609_v13 = vsel %vm8940_vm9, %v4601_v24, 0.0  ;;  %v4610_v7 = vsel %vm8944_vm1, %v4602_v44, 0.0 }
 0x7cd   : > { %4795 = vmatmul.bf16.vlgmr.msra.gmra.mxu3 %v4625_v42  ;;  %4814 = vmatmul.bf16.vlgmr.msrb.gmra.mxu0 %v4625_v42  ;;  %v4613_v47 = vadd.f32 %v4609_v13, %v4589_v14  ;;  %v4614_v28 = vadd.f32 %v4610_v7, %v4590_v27 }
 0x7ce   : > { %4833 = vmatmul.bf16.vlgmr.msrb.gmra.mxu1 %v4625_v42 }
 0x7cf   : > { %v4620_v26 = vadd.f32 %v6285_v49, %v4614_v28  ;;  %v4619_v22 = vadd.f32 %v6285_v49, %v4613_v47 }
 0x7d1   : > { %v4624_v35 = vmax.f32 %v4620_v26, 0.0  ;;  %v4623_v56 = vmax.f32 %v4619_v22, 0.0 }
 0x7d3   : > { %v4626_v19 = vpack.c.bf16 %v4624_v35, %v4623_v56 }
 0x7dd   : > { %4800 = vmatmul.bf16.gmra.mxu3 %v4626_v19  ;;  %4819 = vmatmul.bf16.gmra.mxu0 %v4626_v19 }
 0x7ed   : > { %4838 = vmatmul.bf16.vlgmr.msrb.gmra.mxu3 %v4626_v19 }
 0x84a   : > { %v4815_v55 = vpop.f32.mrf.mxu0 }
 0x84b   : > { %v4834_v16 = vpop.f32.mrf.mxu1 }
 0x84c   : > { %v4872_v40 = vrot.slane %v4834_v16, 1 }
 0x850   : > { %v4796_v39 = vpop.f32.mrf.mxu3 }
 0x851   : > { %v4848_v63 = vrot.slane %v4796_v39, 7 }
 0x852   : > { %v4817_v1 = vpop.f32.mrf.mxu0 }
 0x853   : > { %v4849_v11 = vsel %vm9483_vm3, %v9391_v32, %v4848_v63  ;;  %v4836_v34 = vpop.f32.mrf.mxu1 }
 0x854   : > { %v4860_v54 = vsel %vm8880_vm10, %v4849_v11, 0.0  ;;  %v4873_v46 = vrot.slane %v4836_v34, 1  ;;  %vm9484_vm10 = vmmov %vm9461_vm0 }
 0x855   : > { %v4864_v33 = vadd.f32 %v4860_v54, %v4815_v55 }
 0x856   : > { %v4874_v6 = vsel %vm9458_vm2, %v4872_v40, %v4873_v46 }
 0x857   : > { %v4884_v52 = vsel %vm8888_vm4, %v4874_v6, 0.0  ;;  %vm9485_vm4 = vmmov %vm9458_vm2 }
 0x858   : > { %v4888_v59 = vadd.f32 %v4884_v52, %v4864_v33  ;;  %v4798_v32 = vpop.f32.mrf.mxu3 }
 0x859   : > { %v4850_v31 = vrot.slane %v4798_v32, 7 }
 0x85a   : > { %v4894_v61 = vadd.f32 %v6286_v4, %v4888_v59  ;;  %v4820_v49 = vpop.f32.mrf.mxu0 }
 0x85b   : > { %v4851_v12 = vsel %vm9484_vm10, %v4848_v63, %v4850_v31 }
 0x85c   : > { %4898 = vst [vmem:[%s9147_s20] sm:$0xff] %v4894_v61  ;;  %v4861_v3 = vsel %vm8897_vm13, %v4851_v12, 0.0  ;;  %vm9487_vm13 = vmmov %vm9458_vm2 }
 0x85d   : > { %v4865_v2 = vadd.f32 %v4861_v3, %v4817_v1 }
 0x860   : > { %v4801_v17 = vpop.f32.mrf.mxu3 }
 0x861   : > { %v4852_v48 = vrot.slane %v4801_v17, 7 }
 0x862   : > { %v4822_v41 = vpop.f32.mrf.mxu0 }
 0x863   : > { %v4853_v53 = vsel %vm9461_vm0, %v4850_v31, %v4852_v48 }
 0x864   : > { %v4862_v60 = vsel %vm8930_vm7, %v4853_v53, 0.0 }
 0x865   : > { %v4866_v29 = vadd.f32 %v4862_v60, %v4820_v49 }
 0x868   : > { %v4803_v62 = vpop.f32.mrf.mxu3 }
 0x869   : > { %v4854_v0 = vrot.slane %v4803_v62, 7 }
 0x86b   : > { %v4855_v58 = vsel %vm9486_vm5, %v4852_v48, %v4854_v0 }
 0x86c   : > { %v4863_v30 = vsel %vm8935_vm8, %v4855_v58, 0.0 }
 0x86d   : > { %v4867_v51 = vadd.f32 %v4863_v30, %v4822_v41 }
 0x870   : > { %v4839_v43 = vpop.f32.mrf.mxu3 }
 0x871   : > { %v4875_v45 = vrot.slane %v4839_v43, 1 }
 0x873   : > { %v4876_v9 = vsel %vm9485_vm4, %v4873_v46, %v4875_v45 }
 0x874   : > { %v4885_v50 = vsel %vm8919_vm12, %v4876_v9, 0.0  ;;  %vm9488_vm12 = vmmov %vm9458_vm2 }
 0x875   : > { %v4889_v5 = vadd.f32 %v4885_v50, %v4865_v2 }
 0x877   : > { %v4895_v8 = vadd.f32 %v6286_v4, %v4889_v5 }
 0x878   : > { %v4841_v20 = vpop.f32.mrf.mxu3 }
 0x879   : > { %4899 = vst [vmem:[%s9147_s20 + $0x8] sm:$0xff] %v4895_v8  ;;  %v4877_v36 = vrot.slane %v4841_v20, 1 }
 0x87b   : > { %v4878_v18 = vsel %vm9487_vm13, %v4875_v45, %v4877_v36  ;;  %v4879_v37 = vsel %vm9488_vm12, %v4877_v36, %v6937_v15 }
 0x87c   : > { %v4886_v25 = vsel %vm8940_vm9, %v4878_v18, 0.0  ;;  %v4887_v57 = vsel %vm8944_vm1, %v4879_v37, 0.0 }
 0x87d   : > { %v4890_v23 = vadd.f32 %v4886_v25, %v4866_v29  ;;  %v4891_v42 = vadd.f32 %v4887_v57, %v4867_v51 }
 0x87f   : > { %v4896_v24 = vadd.f32 %v6286_v4, %v4890_v23  ;;  %v4897_v44 = vadd.f32 %v6286_v4, %v4891_v42 }
 0x881   : > { %4900 = vst [vmem:[%s9147_s20 + $0x10] sm:$0xff] %v4896_v24 }
 0x882   : > { %4901 = vst [vmem:[%s9147_s20 + $0x18] sm:$0xff] %v4897_v44 }
 0x883 PF: > { %s23_s25 = sadd.s32 1, %s6293_s25  }
 0x884   : > { %p20_p5 = scmp.ge.s32.totalorder %s23_s25, 4  }
 0x886   :  { %22 = sbr.rel (!%p20_p5) target bundleno = 1 (0x1), region = 102 }

</bundles_post_ra>
